<compile_context>
chip_gen: v6e
topology: v6e:2x2x1
jax: 0.10.0
libtpu: 0.0.40
codegen_flags: <defaults>
</compile_context>

<pallas_src>
import numpy as np
import jax
import jax.numpy as jnp
from jax import lax
from jax.experimental import pallas as pl
from jax.experimental.pallas import tpu as pltpu

CONV_K = 9
IMG = 50
CONV_OUT = IMG - CONV_K + 1            # 42
POOL_OUT = CONV_OUT // 2               # 21
N_OC = 2                               # conv1 out channels
OCW = N_OC * CONV_OUT                  # 84  (both channels side by side on lanes)
FEAT = N_OC * POOL_OUT * POOL_OUT      # 882
HID = 128
NCLS = 9


# ---------------------------------------------------------------------------
# Single fused kernel.  One grid step processes a block of `bb` images laid out
# as a (bb*50, 50) slab (image b occupies rows [b*50, b*50+50)).
#
#   x_ref:     (bb*50, 50)        input pixels
#   band_ref:  (9, 50, 84)        banded conv weights  (per ky row offset)
#   bcols_ref: (1, 84)            conv bias broadcast over the 2x42 columns
#   selr_ref:  (21*bb, bb*50-9)   0/1 row-pool selection + compaction matrix
#   w1e_ref:   (21, 83, 128)      Linear-1 weights expanded to consume the
#                                 column-pair-max map directly (pool+flatten folded in)
#   b1_ref:    (1, 128)
#   w2_ref:    (128, 9)           Linear-2 weight, pre-transposed
#   b2_ref:    (1, 9)
#   out_ref:   (bb, 9)            log-softmax output
# ---------------------------------------------------------------------------
def fused_net_kernel(x_ref, band_ref, bcols_ref, selr_ref, w1e_ref,
                     b1_ref, w2_ref, b2_ref, out_ref):
    bb = out_ref.shape[0]
    rows = x_ref.shape[0]                 # bb * 50
    r_out = rows - (CONV_K - 1)           # conv output rows incl. inter-image junk

    # --- conv1 as 9 banded MXU matmuls (one per kernel row ky) -------------
    # acc[r, oc*42+ox] = conv(b, oc, oy, ox) for r = b*50+oy (oy < 42);
    # rows with oy >= 42 are junk (cross image boundaries) and are never
    # selected by selr below.
    acc = jnp.zeros((r_out, OCW), jnp.float32)
    for ky in range(CONV_K):
        acc = acc + jnp.dot(x_ref[ky:ky + r_out, :], band_ref[ky],
                            preferred_element_type=jnp.float32)

    # bias + ReLU
    a = jnp.maximum(acc + bcols_ref[...], 0.0)                    # (r_out, 84)

    # 2x2 max pool, rows: pairwise max of adjacent rows, then a selection
    # matmul picks rows b*50+2i and compacts them to (i-major, b-minor) order.
    pair = jnp.maximum(a[0:r_out - 1, :], a[1:r_out, :])          # (r_out-1, 84)
    rsel = jnp.dot(selr_ref[...], pair,
                   preferred_element_type=jnp.float32)            # (21*bb, 84)

    # 2x2 max pool, cols: pairwise max of adjacent columns.
    cpair = jnp.maximum(rsel[:, 0:OCW - 1], rsel[:, 1:OCW])       # (21*bb, 83)

    # --- dense head ---------------------------------------------------------
    # Even-column selection + NCHW flatten are folded into w1e, so Linear-1 is
    # 21 small matmuls accumulating into h (one per pooled spatial row i).
    h = jnp.zeros((bb, HID), jnp.float32)
    for i in range(POOL_OUT):
        h = h + jnp.dot(cpair[i * bb:(i + 1) * bb, :], w1e_ref[i],
                        preferred_element_type=jnp.float32)
    h = jnp.maximum(h + b1_ref[...], 0.0)                         # (bb, 128)

    logits = jnp.dot(h, w2_ref[...],
                     preferred_element_type=jnp.float32) + b2_ref[...]   # (bb, 9)

    # log_softmax(dim=1)
    m = jnp.max(logits, axis=-1, keepdims=True)
    s = logits - m
    lse = jnp.log(jnp.sum(jnp.exp(s), axis=-1, keepdims=True))
    out_ref[...] = s - lse


# ---------------------------------------------------------------------------
# One-time host-side parameter preparation (numpy, done once — not per call).
# ---------------------------------------------------------------------------
def prepare_params(params, block_b):
    w_c1, b_c1, w_d1, b_d1, w_d2, b_d2 = [np.asarray(p, np.float32) for p in params]

    # Banded conv matrices: band[ky, ox+kx, oc*42+ox] = w_c1[oc, 0, ky, kx]
    band = np.zeros((CONV_K, IMG, OCW), np.float32)
    ox = np.arange(CONV_OUT)
    for ky in range(CONV_K):
        for oc in range(N_OC):
            for kx in range(CONV_K):
                band[ky, ox + kx, oc * CONV_OUT + ox] = w_c1[oc, 0, ky, kx]

    # Conv bias broadcast over the 84 output columns.
    bcols = np.zeros((1, OCW), np.float32)
    for oc in range(N_OC):
        bcols[0, oc * CONV_OUT:(oc + 1) * CONV_OUT] = b_c1[oc]

    # Row-pool selection/compaction: picks row b*50+2i -> output row i*bb+b.
    r_out = block_b * IMG - (CONV_K - 1)
    selr = np.zeros((POOL_OUT * block_b, r_out - 1), np.float32)
    for i in range(POOL_OUT):
        for b in range(block_b):
            selr[i * block_b + b, b * IMG + 2 * i] = 1.0

    # Linear-1 weights expanded to consume the (21*bb, 83) column-pair-max map:
    # w1e[i, oc*42+2j, :] = W1[:, oc*441 + i*21 + j]   (NCHW flatten order).
    w1e = np.zeros((POOL_OUT, OCW - 1, HID), np.float32)
    for i in range(POOL_OUT):
        for oc in range(N_OC):
            for j in range(POOL_OUT):
                w1e[i, oc * CONV_OUT + 2 * j, :] = \
                    w_d1[:, oc * POOL_OUT * POOL_OUT + i * POOL_OUT + j]

    return {
        "block_b": block_b,
        "band": jnp.asarray(band),
        "bcols": jnp.asarray(bcols),
        "selr": jnp.asarray(selr),
        "w1e": jnp.asarray(w1e),
        "b1": jnp.asarray(b_d1.reshape(1, HID)),
        "w2t": jnp.asarray(np.ascontiguousarray(w_d2.T)),   # (128, 9)
        "b2": jnp.asarray(b_d2.reshape(1, NCLS)),
    }


def net_forward(x_nchw, prep):
    B = x_nchw.shape[0]
    bb = prep["block_b"]
    assert B % bb == 0, "batch must be a multiple of the block size"
    rows = bb * IMG
    x2d = x_nchw.reshape(B * IMG, IMG)            # free: squeeze ch + collapse

    return pl.pallas_call(
        fused_net_kernel,
        out_shape=jax.ShapeDtypeStruct((B, NCLS), jnp.float32),
        grid=(B // bb,),
        in_specs=[
            pl.BlockSpec((rows, IMG), lambda i: (i, 0)),
            pl.BlockSpec((CONV_K, IMG, OCW), lambda i: (0, 0, 0)),
            pl.BlockSpec((1, OCW), lambda i: (0, 0)),
            pl.BlockSpec((POOL_OUT * bb, rows - CONV_K), lambda i: (0, 0)),
            pl.BlockSpec((POOL_OUT, OCW - 1, HID), lambda i: (0, 0, 0)),
            pl.BlockSpec((1, HID), lambda i: (0, 0)),
            pl.BlockSpec((HID, NCLS), lambda i: (0, 0)),
            pl.BlockSpec((1, NCLS), lambda i: (0, 0)),
        ],
        out_specs=pl.BlockSpec((bb, NCLS), lambda i: (i, 0)),
        compiler_params=pltpu.CompilerParams(
            dimension_semantics=("parallel",)),
    )(x2d, prep["band"], prep["bcols"], prep["selr"], prep["w1e"],
      prep["b1"], prep["w2t"], prep["b2"])


# ---------------------------------------------------------------------------
# Pure-JAX reference (for verification only)
# ---------------------------------------------------------------------------
def reference_forward(x_nchw, params):
    w_c1, b_c1, w_d1, b_d1, w_d2, b_d2 = params
    y = lax.conv_general_dilated(x_nchw, w_c1, (1, 1), 'VALID',
                                 dimension_numbers=('NCHW', 'OIHW', 'NCHW'),
                                 precision=lax.Precision.HIGHEST)
    y = jnp.maximum(y + b_c1[None, :, None, None], 0.0)
    y = lax.reduce_window(y, -jnp.inf, lax.max, (1, 1, 2, 2), (1, 1, 2, 2), 'VALID')
    res = y.reshape(x_nchw.shape[0], -1)
    h = jnp.maximum(jnp.dot(res, w_d1.T, precision=lax.Precision.HIGHEST) + b_d1, 0.0)
    logits = jnp.dot(h, w_d2.T, precision=lax.Precision.HIGHEST) + b_d2
    return jax.nn.log_softmax(logits, axis=1)


if __name__ == "__main__":
    key = jax.random.PRNGKey(0)
    kx, k1, k2, k3, k4, k5 = jax.random.split(key, 6)

    # Input: Linear(in_features=882) = 2*21*21 after conv1+pool  =>  50x50 images.
    B = 2
    x = jax.random.normal(kx, (B, 1, IMG, IMG), jnp.float32)

    # Deterministic synthetic parameters (PyTorch conventions: conv OIHW,
    # Linear weight is (out, in)).  conv2/conv3 params never affect the output.
    w_c1 = jax.random.normal(k1, (N_OC, 1, CONV_K, CONV_K), jnp.float32) * 0.1
    b_c1 = jax.random.normal(k2, (N_OC,), jnp.float32) * 0.1
    w_d1 = jax.random.normal(k3, (HID, FEAT), jnp.float32) * 0.03
    b_d1 = jax.random.normal(k4, (HID,), jnp.float32) * 0.03
    w_d2 = jax.random.normal(k5, (NCLS, HID), jnp.float32) * 0.08
    b_d2 = jnp.zeros((NCLS,), jnp.float32)
    # TODO(synk): training-mode Dropout2d(0.7) lives on the dead conv3 branch; in
    # eval it is identity, so it is not modeled.

    params = (w_c1, b_c1, w_d1, b_d1, w_d2, b_d2)

    block_b = B if B <= 8 else 8            # whole batch per grid step when small
    prep = prepare_params(params, block_b)

    out = net_forward(x, prep)
    out = jax.block_until_ready(out)

    ref = reference_forward(x, params)
    np.testing.assert_allclose(np.asarray(out), np.asarray(ref),
                               atol=2e-2, rtol=2e-2)
    print("KERNEL_OK")
</pallas_src>

<mosaic_0001>
module attributes {stable_mosaic.version = 11 : i64} {
  func.func @fused_net_kernel(%arg0: i32, %arg1: memref<100x50xf32, #tpu.memory_space<vmem>>, %arg2: memref<9x50x84xf32, #tpu.memory_space<vmem>>, %arg3: memref<1x84xf32, #tpu.memory_space<vmem>>, %arg4: memref<42x91xf32, #tpu.memory_space<vmem>>, %arg5: memref<21x83x128xf32, #tpu.memory_space<vmem>>, %arg6: memref<1x128xf32, #tpu.memory_space<vmem>>, %arg7: memref<128x9xf32, #tpu.memory_space<vmem>>, %arg8: memref<1x9xf32, #tpu.memory_space<vmem>>, %arg9: memref<2x9xf32, #tpu.memory_space<vmem>>) attributes {dimension_semantics = [#tpu.dimension_semantics<parallel>], iteration_bounds = array<i64: 1>, scalar_prefetch = 0 : i64, scratch_operands = 0 : i64, tpu.core_type = #tpu.core_type<tc>, window_params = [{transform_indices = @transform_0, window_bounds = array<i64: 100, 50>}, {pipeline_mode = #tpu.pipeline_mode<synchronous>, transform_indices = @transform_1, window_bounds = array<i64: 9, 50, 84>}, {pipeline_mode = #tpu.pipeline_mode<synchronous>, transform_indices = @transform_2, window_bounds = array<i64: 1, 84>}, {pipeline_mode = #tpu.pipeline_mode<synchronous>, transform_indices = @transform_3, window_bounds = array<i64: 42, 91>}, {pipeline_mode = #tpu.pipeline_mode<synchronous>, transform_indices = @transform_4, window_bounds = array<i64: 21, 83, 128>}, {pipeline_mode = #tpu.pipeline_mode<synchronous>, transform_indices = @transform_5, window_bounds = array<i64: 1, 128>}, {pipeline_mode = #tpu.pipeline_mode<synchronous>, transform_indices = @transform_6, window_bounds = array<i64: 128, 9>}, {pipeline_mode = #tpu.pipeline_mode<synchronous>, transform_indices = @transform_7, window_bounds = array<i64: 1, 9>}, {transform_indices = @transform_8, window_bounds = array<i64: 2, 9>}]} {
    %cst = arith.constant 0.000000e+00 : f32
    %0 = vector.broadcast %cst : f32 to vector<92x84xf32>
    %c0 = arith.constant 0 : index
    %c0_0 = arith.constant 0 : index
    %1 = vector.load %arg1[%c0, %c0_0] : memref<100x50xf32, #tpu.memory_space<vmem>>, vector<92x50xf32>
    %c0_1 = arith.constant 0 : index
    %c0_2 = arith.constant 0 : index
    %c0_3 = arith.constant 0 : index
    %2 = vector.load %arg2[%c0_1, %c0_2, %c0_3] : memref<9x50x84xf32, #tpu.memory_space<vmem>>, vector<1x50x84xf32>
    %3 = vector.shape_cast %2 : vector<1x50x84xf32> to vector<50x84xf32>
    %cst_4 = arith.constant dense<0.000000e+00> : vector<92x84xf32>
    %4 = tpu.matmul %1, %3, %cst_4 {dimension_numbers = #tpu.dot_dimension_numbers<[1], [0], [0], [1], [0, 0, 1, 1], [], []>} : vector<92x50xf32>, vector<50x84xf32>, vector<92x84xf32> -> vector<92x84xf32>
    %5 = arith.addf %0, %4 : vector<92x84xf32>
    %c1 = arith.constant 1 : index
    %c0_5 = arith.constant 0 : index
    %6 = vector.load %arg1[%c1, %c0_5] : memref<100x50xf32, #tpu.memory_space<vmem>>, vector<92x50xf32>
    %c1_6 = arith.constant 1 : index
    %c0_7 = arith.constant 0 : index
    %c0_8 = arith.constant 0 : index
    %7 = vector.load %arg2[%c1_6, %c0_7, %c0_8] : memref<9x50x84xf32, #tpu.memory_space<vmem>>, vector<1x50x84xf32>
    %8 = vector.shape_cast %7 : vector<1x50x84xf32> to vector<50x84xf32>
    %cst_9 = arith.constant dense<0.000000e+00> : vector<92x84xf32>
    %9 = tpu.matmul %6, %8, %cst_9 {dimension_numbers = #tpu.dot_dimension_numbers<[1], [0], [0], [1], [0, 0, 1, 1], [], []>} : vector<92x50xf32>, vector<50x84xf32>, vector<92x84xf32> -> vector<92x84xf32>
    %10 = arith.addf %5, %9 : vector<92x84xf32>
    %c2 = arith.constant 2 : index
    %c0_10 = arith.constant 0 : index
    %11 = vector.load %arg1[%c2, %c0_10] : memref<100x50xf32, #tpu.memory_space<vmem>>, vector<92x50xf32>
    %c2_11 = arith.constant 2 : index
    %c0_12 = arith.constant 0 : index
    %c0_13 = arith.constant 0 : index
    %12 = vector.load %arg2[%c2_11, %c0_12, %c0_13] : memref<9x50x84xf32, #tpu.memory_space<vmem>>, vector<1x50x84xf32>
    %13 = vector.shape_cast %12 : vector<1x50x84xf32> to vector<50x84xf32>
    %cst_14 = arith.constant dense<0.000000e+00> : vector<92x84xf32>
    %14 = tpu.matmul %11, %13, %cst_14 {dimension_numbers = #tpu.dot_dimension_numbers<[1], [0], [0], [1], [0, 0, 1, 1], [], []>} : vector<92x50xf32>, vector<50x84xf32>, vector<92x84xf32> -> vector<92x84xf32>
    %15 = arith.addf %10, %14 : vector<92x84xf32>
    %c3 = arith.constant 3 : index
    %c0_15 = arith.constant 0 : index
    %16 = vector.load %arg1[%c3, %c0_15] : memref<100x50xf32, #tpu.memory_space<vmem>>, vector<92x50xf32>
    %c3_16 = arith.constant 3 : index
    %c0_17 = arith.constant 0 : index
    %c0_18 = arith.constant 0 : index
    %17 = vector.load %arg2[%c3_16, %c0_17, %c0_18] : memref<9x50x84xf32, #tpu.memory_space<vmem>>, vector<1x50x84xf32>
    %18 = vector.shape_cast %17 : vector<1x50x84xf32> to vector<50x84xf32>
    %cst_19 = arith.constant dense<0.000000e+00> : vector<92x84xf32>
    %19 = tpu.matmul %16, %18, %cst_19 {dimension_numbers = #tpu.dot_dimension_numbers<[1], [0], [0], [1], [0, 0, 1, 1], [], []>} : vector<92x50xf32>, vector<50x84xf32>, vector<92x84xf32> -> vector<92x84xf32>
    %20 = arith.addf %15, %19 : vector<92x84xf32>
    %c4 = arith.constant 4 : index
    %c0_20 = arith.constant 0 : index
    %21 = vector.load %arg1[%c4, %c0_20] : memref<100x50xf32, #tpu.memory_space<vmem>>, vector<92x50xf32>
    %c4_21 = arith.constant 4 : index
    %c0_22 = arith.constant 0 : index
    %c0_23 = arith.constant 0 : index
    %22 = vector.load %arg2[%c4_21, %c0_22, %c0_23] : memref<9x50x84xf32, #tpu.memory_space<vmem>>, vector<1x50x84xf32>
    %23 = vector.shape_cast %22 : vector<1x50x84xf32> to vector<50x84xf32>
    %cst_24 = arith.constant dense<0.000000e+00> : vector<92x84xf32>
    %24 = tpu.matmul %21, %23, %cst_24 {dimension_numbers = #tpu.dot_dimension_numbers<[1], [0], [0], [1], [0, 0, 1, 1], [], []>} : vector<92x50xf32>, vector<50x84xf32>, vector<92x84xf32> -> vector<92x84xf32>
    %25 = arith.addf %20, %24 : vector<92x84xf32>
    %c5 = arith.constant 5 : index
    %c0_25 = arith.constant 0 : index
    %26 = vector.load %arg1[%c5, %c0_25] : memref<100x50xf32, #tpu.memory_space<vmem>>, vector<92x50xf32>
    %c5_26 = arith.constant 5 : index
    %c0_27 = arith.constant 0 : index
    %c0_28 = arith.constant 0 : index
    %27 = vector.load %arg2[%c5_26, %c0_27, %c0_28] : memref<9x50x84xf32, #tpu.memory_space<vmem>>, vector<1x50x84xf32>
    %28 = vector.shape_cast %27 : vector<1x50x84xf32> to vector<50x84xf32>
    %cst_29 = arith.constant dense<0.000000e+00> : vector<92x84xf32>
    %29 = tpu.matmul %26, %28, %cst_29 {dimension_numbers = #tpu.dot_dimension_numbers<[1], [0], [0], [1], [0, 0, 1, 1], [], []>} : vector<92x50xf32>, vector<50x84xf32>, vector<92x84xf32> -> vector<92x84xf32>
    %30 = arith.addf %25, %29 : vector<92x84xf32>
    %c6 = arith.constant 6 : index
    %c0_30 = arith.constant 0 : index
    %31 = vector.load %arg1[%c6, %c0_30] : memref<100x50xf32, #tpu.memory_space<vmem>>, vector<92x50xf32>
    %c6_31 = arith.constant 6 : index
    %c0_32 = arith.constant 0 : index
    %c0_33 = arith.constant 0 : index
    %32 = vector.load %arg2[%c6_31, %c0_32, %c0_33] : memref<9x50x84xf32, #tpu.memory_space<vmem>>, vector<1x50x84xf32>
    %33 = vector.shape_cast %32 : vector<1x50x84xf32> to vector<50x84xf32>
    %cst_34 = arith.constant dense<0.000000e+00> : vector<92x84xf32>
    %34 = tpu.matmul %31, %33, %cst_34 {dimension_numbers = #tpu.dot_dimension_numbers<[1], [0], [0], [1], [0, 0, 1, 1], [], []>} : vector<92x50xf32>, vector<50x84xf32>, vector<92x84xf32> -> vector<92x84xf32>
    %35 = arith.addf %30, %34 : vector<92x84xf32>
    %c7 = arith.constant 7 : index
    %c0_35 = arith.constant 0 : index
    %36 = vector.load %arg1[%c7, %c0_35] : memref<100x50xf32, #tpu.memory_space<vmem>>, vector<92x50xf32>
    %c7_36 = arith.constant 7 : index
    %c0_37 = arith.constant 0 : index
    %c0_38 = arith.constant 0 : index
    %37 = vector.load %arg2[%c7_36, %c0_37, %c0_38] : memref<9x50x84xf32, #tpu.memory_space<vmem>>, vector<1x50x84xf32>
    %38 = vector.shape_cast %37 : vector<1x50x84xf32> to vector<50x84xf32>
    %cst_39 = arith.constant dense<0.000000e+00> : vector<92x84xf32>
    %39 = tpu.matmul %36, %38, %cst_39 {dimension_numbers = #tpu.dot_dimension_numbers<[1], [0], [0], [1], [0, 0, 1, 1], [], []>} : vector<92x50xf32>, vector<50x84xf32>, vector<92x84xf32> -> vector<92x84xf32>
    %40 = arith.addf %35, %39 : vector<92x84xf32>
    %c8 = arith.constant 8 : index
    %c0_40 = arith.constant 0 : index
    %41 = vector.load %arg1[%c8, %c0_40] : memref<100x50xf32, #tpu.memory_space<vmem>>, vector<92x50xf32>
    %c8_41 = arith.constant 8 : index
    %c0_42 = arith.constant 0 : index
    %c0_43 = arith.constant 0 : index
    %42 = vector.load %arg2[%c8_41, %c0_42, %c0_43] : memref<9x50x84xf32, #tpu.memory_space<vmem>>, vector<1x50x84xf32>
    %43 = vector.shape_cast %42 : vector<1x50x84xf32> to vector<50x84xf32>
    %cst_44 = arith.constant dense<0.000000e+00> : vector<92x84xf32>
    %44 = tpu.matmul %41, %43, %cst_44 {dimension_numbers = #tpu.dot_dimension_numbers<[1], [0], [0], [1], [0, 0, 1, 1], [], []>} : vector<92x50xf32>, vector<50x84xf32>, vector<92x84xf32> -> vector<92x84xf32>
    %45 = arith.addf %40, %44 : vector<92x84xf32>
    %c0_45 = arith.constant 0 : index
    %c0_46 = arith.constant 0 : index
    %46 = vector.load %arg3[%c0_45, %c0_46] : memref<1x84xf32, #tpu.memory_space<vmem>>, vector<1x84xf32>
    %47 = vector.broadcast %46 : vector<1x84xf32> to vector<92x84xf32>
    %48 = arith.addf %45, %47 : vector<92x84xf32>
    %cst_47 = arith.constant 0.000000e+00 : f32
    %49 = vector.broadcast %cst_47 : f32 to vector<92x84xf32>
    %50 = arith.maximumf %48, %49 : vector<92x84xf32>
    %51 = vector.extract_strided_slice %50 {offsets = [0, 0], sizes = [91, 84], strides = [1, 1]} : vector<92x84xf32> to vector<91x84xf32>
    %52 = vector.extract_strided_slice %50 {offsets = [1, 0], sizes = [91, 84], strides = [1, 1]} : vector<92x84xf32> to vector<91x84xf32>
    %53 = arith.maximumf %51, %52 : vector<91x84xf32>
    %c0_48 = arith.constant 0 : index
    %c0_49 = arith.constant 0 : index
    %54 = vector.load %arg4[%c0_48, %c0_49] : memref<42x91xf32, #tpu.memory_space<vmem>>, vector<42x91xf32>
    %cst_50 = arith.constant dense<0.000000e+00> : vector<42x84xf32>
    %55 = tpu.matmul %54, %53, %cst_50 {dimension_numbers = #tpu.dot_dimension_numbers<[1], [0], [0], [1], [0, 0, 1, 1], [], []>} : vector<42x91xf32>, vector<91x84xf32>, vector<42x84xf32> -> vector<42x84xf32>
    %56 = vector.extract_strided_slice %55 {offsets = [0, 0], sizes = [42, 83], strides = [1, 1]} : vector<42x84xf32> to vector<42x83xf32>
    %57 = vector.extract_strided_slice %55 {offsets = [0, 1], sizes = [42, 83], strides = [1, 1]} : vector<42x84xf32> to vector<42x83xf32>
    %58 = arith.maximumf %56, %57 : vector<42x83xf32>
    %cst_51 = arith.constant 0.000000e+00 : f32
    %59 = vector.broadcast %cst_51 : f32 to vector<2x128xf32>
    %60 = vector.extract_strided_slice %58 {offsets = [0, 0], sizes = [2, 83], strides = [1, 1]} : vector<42x83xf32> to vector<2x83xf32>
    %c0_52 = arith.constant 0 : index
    %c0_53 = arith.constant 0 : index
    %c0_54 = arith.constant 0 : index
    %61 = vector.load %arg5[%c0_52, %c0_53, %c0_54] : memref<21x83x128xf32, #tpu.memory_space<vmem>>, vector<1x83x128xf32>
    %62 = vector.shape_cast %61 : vector<1x83x128xf32> to vector<83x128xf32>
    %cst_55 = arith.constant dense<0.000000e+00> : vector<2x128xf32>
    %63 = tpu.matmul %60, %62, %cst_55 {dimension_numbers = #tpu.dot_dimension_numbers<[1], [0], [0], [1], [0, 0, 1, 1], [], []>} : vector<2x83xf32>, vector<83x128xf32>, vector<2x128xf32> -> vector<2x128xf32>
    %64 = arith.addf %59, %63 : vector<2x128xf32>
    %65 = vector.extract_strided_slice %58 {offsets = [2, 0], sizes = [2, 83], strides = [1, 1]} : vector<42x83xf32> to vector<2x83xf32>
    %c1_56 = arith.constant 1 : index
    %c0_57 = arith.constant 0 : index
    %c0_58 = arith.constant 0 : index
    %66 = vector.load %arg5[%c1_56, %c0_57, %c0_58] : memref<21x83x128xf32, #tpu.memory_space<vmem>>, vector<1x83x128xf32>
    %67 = vector.shape_cast %66 : vector<1x83x128xf32> to vector<83x128xf32>
    %cst_59 = arith.constant dense<0.000000e+00> : vector<2x128xf32>
    %68 = tpu.matmul %65, %67, %cst_59 {dimension_numbers = #tpu.dot_dimension_numbers<[1], [0], [0], [1], [0, 0, 1, 1], [], []>} : vector<2x83xf32>, vector<83x128xf32>, vector<2x128xf32> -> vector<2x128xf32>
    %69 = arith.addf %64, %68 : vector<2x128xf32>
    %70 = vector.extract_strided_slice %58 {offsets = [4, 0], sizes = [2, 83], strides = [1, 1]} : vector<42x83xf32> to vector<2x83xf32>
    %c2_60 = arith.constant 2 : index
    %c0_61 = arith.constant 0 : index
    %c0_62 = arith.constant 0 : index
    %71 = vector.load %arg5[%c2_60, %c0_61, %c0_62] : memref<21x83x128xf32, #tpu.memory_space<vmem>>, vector<1x83x128xf32>
    %72 = vector.shape_cast %71 : vector<1x83x128xf32> to vector<83x128xf32>
    %cst_63 = arith.constant dense<0.000000e+00> : vector<2x128xf32>
    %73 = tpu.matmul %70, %72, %cst_63 {dimension_numbers = #tpu.dot_dimension_numbers<[1], [0], [0], [1], [0, 0, 1, 1], [], []>} : vector<2x83xf32>, vector<83x128xf32>, vector<2x128xf32> -> vector<2x128xf32>
    %74 = arith.addf %69, %73 : vector<2x128xf32>
    %75 = vector.extract_strided_slice %58 {offsets = [6, 0], sizes = [2, 83], strides = [1, 1]} : vector<42x83xf32> to vector<2x83xf32>
    %c3_64 = arith.constant 3 : index
    %c0_65 = arith.constant 0 : index
    %c0_66 = arith.constant 0 : index
    %76 = vector.load %arg5[%c3_64, %c0_65, %c0_66] : memref<21x83x128xf32, #tpu.memory_space<vmem>>, vector<1x83x128xf32>
    %77 = vector.shape_cast %76 : vector<1x83x128xf32> to vector<83x128xf32>
    %cst_67 = arith.constant dense<0.000000e+00> : vector<2x128xf32>
    %78 = tpu.matmul %75, %77, %cst_67 {dimension_numbers = #tpu.dot_dimension_numbers<[1], [0], [0], [1], [0, 0, 1, 1], [], []>} : vector<2x83xf32>, vector<83x128xf32>, vector<2x128xf32> -> vector<2x128xf32>
    %79 = arith.addf %74, %78 : vector<2x128xf32>
    %80 = vector.extract_strided_slice %58 {offsets = [8, 0], sizes = [2, 83], strides = [1, 1]} : vector<42x83xf32> to vector<2x83xf32>
    %c4_68 = arith.constant 4 : index
    %c0_69 = arith.constant 0 : index
    %c0_70 = arith.constant 0 : index
    %81 = vector.load %arg5[%c4_68, %c0_69, %c0_70] : memref<21x83x128xf32, #tpu.memory_space<vmem>>, vector<1x83x128xf32>
    %82 = vector.shape_cast %81 : vector<1x83x128xf32> to vector<83x128xf32>
    %cst_71 = arith.constant dense<0.000000e+00> : vector<2x128xf32>
    %83 = tpu.matmul %80, %82, %cst_71 {dimension_numbers = #tpu.dot_dimension_numbers<[1], [0], [0], [1], [0, 0, 1, 1], [], []>} : vector<2x83xf32>, vector<83x128xf32>, vector<2x128xf32> -> vector<2x128xf32>
    %84 = arith.addf %79, %83 : vector<2x128xf32>
    %85 = vector.extract_strided_slice %58 {offsets = [10, 0], sizes = [2, 83], strides = [1, 1]} : vector<42x83xf32> to vector<2x83xf32>
    %c5_72 = arith.constant 5 : index
    %c0_73 = arith.constant 0 : index
    %c0_74 = arith.constant 0 : index
    %86 = vector.load %arg5[%c5_72, %c0_73, %c0_74] : memref<21x83x128xf32, #tpu.memory_space<vmem>>, vector<1x83x128xf32>
    %87 = vector.shape_cast %86 : vector<1x83x128xf32> to vector<83x128xf32>
    %cst_75 = arith.constant dense<0.000000e+00> : vector<2x128xf32>
    %88 = tpu.matmul %85, %87, %cst_75 {dimension_numbers = #tpu.dot_dimension_numbers<[1], [0], [0], [1], [0, 0, 1, 1], [], []>} : vector<2x83xf32>, vector<83x128xf32>, vector<2x128xf32> -> vector<2x128xf32>
    %89 = arith.addf %84, %88 : vector<2x128xf32>
    %90 = vector.extract_strided_slice %58 {offsets = [12, 0], sizes = [2, 83], strides = [1, 1]} : vector<42x83xf32> to vector<2x83xf32>
    %c6_76 = arith.constant 6 : index
    %c0_77 = arith.constant 0 : index
    %c0_78 = arith.constant 0 : index
    %91 = vector.load %arg5[%c6_76, %c0_77, %c0_78] : memref<21x83x128xf32, #tpu.memory_space<vmem>>, vector<1x83x128xf32>
    %92 = vector.shape_cast %91 : vector<1x83x128xf32> to vector<83x128xf32>
    %cst_79 = arith.constant dense<0.000000e+00> : vector<2x128xf32>
    %93 = tpu.matmul %90, %92, %cst_79 {dimension_numbers = #tpu.dot_dimension_numbers<[1], [0], [0], [1], [0, 0, 1, 1], [], []>} : vector<2x83xf32>, vector<83x128xf32>, vector<2x128xf32> -> vector<2x128xf32>
    %94 = arith.addf %89, %93 : vector<2x128xf32>
    %95 = vector.extract_strided_slice %58 {offsets = [14, 0], sizes = [2, 83], strides = [1, 1]} : vector<42x83xf32> to vector<2x83xf32>
    %c7_80 = arith.constant 7 : index
    %c0_81 = arith.constant 0 : index
    %c0_82 = arith.constant 0 : index
    %96 = vector.load %arg5[%c7_80, %c0_81, %c0_82] : memref<21x83x128xf32, #tpu.memory_space<vmem>>, vector<1x83x128xf32>
    %97 = vector.shape_cast %96 : vector<1x83x128xf32> to vector<83x128xf32>
    %cst_83 = arith.constant dense<0.000000e+00> : vector<2x128xf32>
    %98 = tpu.matmul %95, %97, %cst_83 {dimension_numbers = #tpu.dot_dimension_numbers<[1], [0], [0], [1], [0, 0, 1, 1], [], []>} : vector<2x83xf32>, vector<83x128xf32>, vector<2x128xf32> -> vector<2x128xf32>
    %99 = arith.addf %94, %98 : vector<2x128xf32>
    %100 = vector.extract_strided_slice %58 {offsets = [16, 0], sizes = [2, 83], strides = [1, 1]} : vector<42x83xf32> to vector<2x83xf32>
    %c8_84 = arith.constant 8 : index
    %c0_85 = arith.constant 0 : index
    %c0_86 = arith.constant 0 : index
    %101 = vector.load %arg5[%c8_84, %c0_85, %c0_86] : memref<21x83x128xf32, #tpu.memory_space<vmem>>, vector<1x83x128xf32>
    %102 = vector.shape_cast %101 : vector<1x83x128xf32> to vector<83x128xf32>
    %cst_87 = arith.constant dense<0.000000e+00> : vector<2x128xf32>
    %103 = tpu.matmul %100, %102, %cst_87 {dimension_numbers = #tpu.dot_dimension_numbers<[1], [0], [0], [1], [0, 0, 1, 1], [], []>} : vector<2x83xf32>, vector<83x128xf32>, vector<2x128xf32> -> vector<2x128xf32>
    %104 = arith.addf %99, %103 : vector<2x128xf32>
    %105 = vector.extract_strided_slice %58 {offsets = [18, 0], sizes = [2, 83], strides = [1, 1]} : vector<42x83xf32> to vector<2x83xf32>
    %c9 = arith.constant 9 : index
    %c0_88 = arith.constant 0 : index
    %c0_89 = arith.constant 0 : index
    %106 = vector.load %arg5[%c9, %c0_88, %c0_89] : memref<21x83x128xf32, #tpu.memory_space<vmem>>, vector<1x83x128xf32>
    %107 = vector.shape_cast %106 : vector<1x83x128xf32> to vector<83x128xf32>
    %cst_90 = arith.constant dense<0.000000e+00> : vector<2x128xf32>
    %108 = tpu.matmul %105, %107, %cst_90 {dimension_numbers = #tpu.dot_dimension_numbers<[1], [0], [0], [1], [0, 0, 1, 1], [], []>} : vector<2x83xf32>, vector<83x128xf32>, vector<2x128xf32> -> vector<2x128xf32>
    %109 = arith.addf %104, %108 : vector<2x128xf32>
    %110 = vector.extract_strided_slice %58 {offsets = [20, 0], sizes = [2, 83], strides = [1, 1]} : vector<42x83xf32> to vector<2x83xf32>
    %c10 = arith.constant 10 : index
    %c0_91 = arith.constant 0 : index
    %c0_92 = arith.constant 0 : index
    %111 = vector.load %arg5[%c10, %c0_91, %c0_92] : memref<21x83x128xf32, #tpu.memory_space<vmem>>, vector<1x83x128xf32>
    %112 = vector.shape_cast %111 : vector<1x83x128xf32> to vector<83x128xf32>
    %cst_93 = arith.constant dense<0.000000e+00> : vector<2x128xf32>
    %113 = tpu.matmul %110, %112, %cst_93 {dimension_numbers = #tpu.dot_dimension_numbers<[1], [0], [0], [1], [0, 0, 1, 1], [], []>} : vector<2x83xf32>, vector<83x128xf32>, vector<2x128xf32> -> vector<2x128xf32>
    %114 = arith.addf %109, %113 : vector<2x128xf32>
    %115 = vector.extract_strided_slice %58 {offsets = [22, 0], sizes = [2, 83], strides = [1, 1]} : vector<42x83xf32> to vector<2x83xf32>
    %c11 = arith.constant 11 : index
    %c0_94 = arith.constant 0 : index
    %c0_95 = arith.constant 0 : index
    %116 = vector.load %arg5[%c11, %c0_94, %c0_95] : memref<21x83x128xf32, #tpu.memory_space<vmem>>, vector<1x83x128xf32>
    %117 = vector.shape_cast %116 : vector<1x83x128xf32> to vector<83x128xf32>
    %cst_96 = arith.constant dense<0.000000e+00> : vector<2x128xf32>
    %118 = tpu.matmul %115, %117, %cst_96 {dimension_numbers = #tpu.dot_dimension_numbers<[1], [0], [0], [1], [0, 0, 1, 1], [], []>} : vector<2x83xf32>, vector<83x128xf32>, vector<2x128xf32> -> vector<2x128xf32>
    %119 = arith.addf %114, %118 : vector<2x128xf32>
    %120 = vector.extract_strided_slice %58 {offsets = [24, 0], sizes = [2, 83], strides = [1, 1]} : vector<42x83xf32> to vector<2x83xf32>
    %c12 = arith.constant 12 : index
    %c0_97 = arith.constant 0 : index
    %c0_98 = arith.constant 0 : index
    %121 = vector.load %arg5[%c12, %c0_97, %c0_98] : memref<21x83x128xf32, #tpu.memory_space<vmem>>, vector<1x83x128xf32>
    %122 = vector.shape_cast %121 : vector<1x83x128xf32> to vector<83x128xf32>
    %cst_99 = arith.constant dense<0.000000e+00> : vector<2x128xf32>
    %123 = tpu.matmul %120, %122, %cst_99 {dimension_numbers = #tpu.dot_dimension_numbers<[1], [0], [0], [1], [0, 0, 1, 1], [], []>} : vector<2x83xf32>, vector<83x128xf32>, vector<2x128xf32> -> vector<2x128xf32>
    %124 = arith.addf %119, %123 : vector<2x128xf32>
    %125 = vector.extract_strided_slice %58 {offsets = [26, 0], sizes = [2, 83], strides = [1, 1]} : vector<42x83xf32> to vector<2x83xf32>
    %c13 = arith.constant 13 : index
    %c0_100 = arith.constant 0 : index
    %c0_101 = arith.constant 0 : index
    %126 = vector.load %arg5[%c13, %c0_100, %c0_101] : memref<21x83x128xf32, #tpu.memory_space<vmem>>, vector<1x83x128xf32>
    %127 = vector.shape_cast %126 : vector<1x83x128xf32> to vector<83x128xf32>
    %cst_102 = arith.constant dense<0.000000e+00> : vector<2x128xf32>
    %128 = tpu.matmul %125, %127, %cst_102 {dimension_numbers = #tpu.dot_dimension_numbers<[1], [0], [0], [1], [0, 0, 1, 1], [], []>} : vector<2x83xf32>, vector<83x128xf32>, vector<2x128xf32> -> vector<2x128xf32>
    %129 = arith.addf %124, %128 : vector<2x128xf32>
    %130 = vector.extract_strided_slice %58 {offsets = [28, 0], sizes = [2, 83], strides = [1, 1]} : vector<42x83xf32> to vector<2x83xf32>
    %c14 = arith.constant 14 : index
    %c0_103 = arith.constant 0 : index
    %c0_104 = arith.constant 0 : index
    %131 = vector.load %arg5[%c14, %c0_103, %c0_104] : memref<21x83x128xf32, #tpu.memory_space<vmem>>, vector<1x83x128xf32>
    %132 = vector.shape_cast %131 : vector<1x83x128xf32> to vector<83x128xf32>
    %cst_105 = arith.constant dense<0.000000e+00> : vector<2x128xf32>
    %133 = tpu.matmul %130, %132, %cst_105 {dimension_numbers = #tpu.dot_dimension_numbers<[1], [0], [0], [1], [0, 0, 1, 1], [], []>} : vector<2x83xf32>, vector<83x128xf32>, vector<2x128xf32> -> vector<2x128xf32>
    %134 = arith.addf %129, %133 : vector<2x128xf32>
    %135 = vector.extract_strided_slice %58 {offsets = [30, 0], sizes = [2, 83], strides = [1, 1]} : vector<42x83xf32> to vector<2x83xf32>
    %c15 = arith.constant 15 : index
    %c0_106 = arith.constant 0 : index
    %c0_107 = arith.constant 0 : index
    %136 = vector.load %arg5[%c15, %c0_106, %c0_107] : memref<21x83x128xf32, #tpu.memory_space<vmem>>, vector<1x83x128xf32>
    %137 = vector.shape_cast %136 : vector<1x83x128xf32> to vector<83x128xf32>
    %cst_108 = arith.constant dense<0.000000e+00> : vector<2x128xf32>
    %138 = tpu.matmul %135, %137, %cst_108 {dimension_numbers = #tpu.dot_dimension_numbers<[1], [0], [0], [1], [0, 0, 1, 1], [], []>} : vector<2x83xf32>, vector<83x128xf32>, vector<2x128xf32> -> vector<2x128xf32>
    %139 = arith.addf %134, %138 : vector<2x128xf32>
    %140 = vector.extract_strided_slice %58 {offsets = [32, 0], sizes = [2, 83], strides = [1, 1]} : vector<42x83xf32> to vector<2x83xf32>
    %c16 = arith.constant 16 : index
    %c0_109 = arith.constant 0 : index
    %c0_110 = arith.constant 0 : index
    %141 = vector.load %arg5[%c16, %c0_109, %c0_110] : memref<21x83x128xf32, #tpu.memory_space<vmem>>, vector<1x83x128xf32>
    %142 = vector.shape_cast %141 : vector<1x83x128xf32> to vector<83x128xf32>
    %cst_111 = arith.constant dense<0.000000e+00> : vector<2x128xf32>
    %143 = tpu.matmul %140, %142, %cst_111 {dimension_numbers = #tpu.dot_dimension_numbers<[1], [0], [0], [1], [0, 0, 1, 1], [], []>} : vector<2x83xf32>, vector<83x128xf32>, vector<2x128xf32> -> vector<2x128xf32>
    %144 = arith.addf %139, %143 : vector<2x128xf32>
    %145 = vector.extract_strided_slice %58 {offsets = [34, 0], sizes = [2, 83], strides = [1, 1]} : vector<42x83xf32> to vector<2x83xf32>
    %c17 = arith.constant 17 : index
    %c0_112 = arith.constant 0 : index
    %c0_113 = arith.constant 0 : index
    %146 = vector.load %arg5[%c17, %c0_112, %c0_113] : memref<21x83x128xf32, #tpu.memory_space<vmem>>, vector<1x83x128xf32>
    %147 = vector.shape_cast %146 : vector<1x83x128xf32> to vector<83x128xf32>
    %cst_114 = arith.constant dense<0.000000e+00> : vector<2x128xf32>
    %148 = tpu.matmul %145, %147, %cst_114 {dimension_numbers = #tpu.dot_dimension_numbers<[1], [0], [0], [1], [0, 0, 1, 1], [], []>} : vector<2x83xf32>, vector<83x128xf32>, vector<2x128xf32> -> vector<2x128xf32>
    %149 = arith.addf %144, %148 : vector<2x128xf32>
    %150 = vector.extract_strided_slice %58 {offsets = [36, 0], sizes = [2, 83], strides = [1, 1]} : vector<42x83xf32> to vector<2x83xf32>
    %c18 = arith.constant 18 : index
    %c0_115 = arith.constant 0 : index
    %c0_116 = arith.constant 0 : index
    %151 = vector.load %arg5[%c18, %c0_115, %c0_116] : memref<21x83x128xf32, #tpu.memory_space<vmem>>, vector<1x83x128xf32>
    %152 = vector.shape_cast %151 : vector<1x83x128xf32> to vector<83x128xf32>
    %cst_117 = arith.constant dense<0.000000e+00> : vector<2x128xf32>
    %153 = tpu.matmul %150, %152, %cst_117 {dimension_numbers = #tpu.dot_dimension_numbers<[1], [0], [0], [1], [0, 0, 1, 1], [], []>} : vector<2x83xf32>, vector<83x128xf32>, vector<2x128xf32> -> vector<2x128xf32>
    %154 = arith.addf %149, %153 : vector<2x128xf32>
    %155 = vector.extract_strided_slice %58 {offsets = [38, 0], sizes = [2, 83], strides = [1, 1]} : vector<42x83xf32> to vector<2x83xf32>
    %c19 = arith.constant 19 : index
    %c0_118 = arith.constant 0 : index
    %c0_119 = arith.constant 0 : index
    %156 = vector.load %arg5[%c19, %c0_118, %c0_119] : memref<21x83x128xf32, #tpu.memory_space<vmem>>, vector<1x83x128xf32>
    %157 = vector.shape_cast %156 : vector<1x83x128xf32> to vector<83x128xf32>
    %cst_120 = arith.constant dense<0.000000e+00> : vector<2x128xf32>
    %158 = tpu.matmul %155, %157, %cst_120 {dimension_numbers = #tpu.dot_dimension_numbers<[1], [0], [0], [1], [0, 0, 1, 1], [], []>} : vector<2x83xf32>, vector<83x128xf32>, vector<2x128xf32> -> vector<2x128xf32>
    %159 = arith.addf %154, %158 : vector<2x128xf32>
    %160 = vector.extract_strided_slice %58 {offsets = [40, 0], sizes = [2, 83], strides = [1, 1]} : vector<42x83xf32> to vector<2x83xf32>
    %c20 = arith.constant 20 : index
    %c0_121 = arith.constant 0 : index
    %c0_122 = arith.constant 0 : index
    %161 = vector.load %arg5[%c20, %c0_121, %c0_122] : memref<21x83x128xf32, #tpu.memory_space<vmem>>, vector<1x83x128xf32>
    %162 = vector.shape_cast %161 : vector<1x83x128xf32> to vector<83x128xf32>
    %cst_123 = arith.constant dense<0.000000e+00> : vector<2x128xf32>
    %163 = tpu.matmul %160, %162, %cst_123 {dimension_numbers = #tpu.dot_dimension_numbers<[1], [0], [0], [1], [0, 0, 1, 1], [], []>} : vector<2x83xf32>, vector<83x128xf32>, vector<2x128xf32> -> vector<2x128xf32>
    %164 = arith.addf %159, %163 : vector<2x128xf32>
    %c0_124 = arith.constant 0 : index
    %c0_125 = arith.constant 0 : index
    %165 = vector.load %arg6[%c0_124, %c0_125] : memref<1x128xf32, #tpu.memory_space<vmem>>, vector<1x128xf32>
    %166 = vector.broadcast %165 : vector<1x128xf32> to vector<2x128xf32>
    %167 = arith.addf %164, %166 : vector<2x128xf32>
    %cst_126 = arith.constant 0.000000e+00 : f32
    %168 = vector.broadcast %cst_126 : f32 to vector<2x128xf32>
    %169 = arith.maximumf %167, %168 : vector<2x128xf32>
    %c0_127 = arith.constant 0 : index
    %c0_128 = arith.constant 0 : index
    %170 = vector.load %arg7[%c0_127, %c0_128] : memref<128x9xf32, #tpu.memory_space<vmem>>, vector<128x9xf32>
    %cst_129 = arith.constant dense<0.000000e+00> : vector<2x9xf32>
    %171 = tpu.matmul %169, %170, %cst_129 {dimension_numbers = #tpu.dot_dimension_numbers<[1], [0], [0], [1], [0, 0, 1, 1], [], []>} : vector<2x128xf32>, vector<128x9xf32>, vector<2x9xf32> -> vector<2x9xf32>
    %c0_130 = arith.constant 0 : index
    %c0_131 = arith.constant 0 : index
    %172 = vector.load %arg8[%c0_130, %c0_131] : memref<1x9xf32, #tpu.memory_space<vmem>>, vector<1x9xf32>
    %173 = vector.broadcast %172 : vector<1x9xf32> to vector<2x9xf32>
    %174 = arith.addf %171, %173 : vector<2x9xf32>
    %cst_132 = arith.constant dense<0xFF800000> : vector<2xf32>
    %175 = vector.multi_reduction <maximumf>, %174, %cst_132 [1] : vector<2x9xf32> to vector<2xf32>
    %176 = vector.shape_cast %175 : vector<2xf32> to vector<2x1xf32>
    %177 = vector.broadcast %176 : vector<2x1xf32> to vector<2x9xf32>
    %178 = arith.subf %174, %177 : vector<2x9xf32>
    %179 = math.exp %178 : vector<2x9xf32>
    %cst_133 = arith.constant dense<0.000000e+00> : vector<2xf32>
    %180 = vector.multi_reduction <add>, %179, %cst_133 [1] : vector<2x9xf32> to vector<2xf32>
    %181 = vector.shape_cast %180 : vector<2xf32> to vector<2x1xf32>
    %182 = math.log %181 : vector<2x1xf32>
    %183 = vector.broadcast %182 : vector<2x1xf32> to vector<2x9xf32>
    %184 = arith.subf %178, %183 : vector<2x9xf32>
    %c0_134 = arith.constant 0 : index
    %c0_135 = arith.constant 0 : index
    %185 = vector.load %arg9[%c0_134, %c0_135] : memref<2x9xf32, #tpu.memory_space<vmem>>, vector<2x9xf32>
    tpu.vector_store %arg9[%c0_134, %c0_135], %184 {strides = array<i32>} : memref<2x9xf32, #tpu.memory_space<vmem>>, vector<2x9xf32>,
    return
  }
  func.func @transform_0(%arg0: i32) -> (i32, i32) {
    %c0_i32 = arith.constant 0 : i32
    %c0_i32_0 = arith.constant 0 : i32
    return %arg0, %c0_i32 : i32, i32
  }
  func.func @transform_1(%arg0: i32) -> (i32, i32, i32) {
    %c0_i32 = arith.constant 0 : i32
    %c0_i32_0 = arith.constant 0 : i32
    %c0_i32_1 = arith.constant 0 : i32
    %c0_i32_2 = arith.constant 0 : i32
    return %c0_i32, %c0_i32_0, %c0_i32_1 : i32, i32, i32
  }
  func.func @transform_2(%arg0: i32) -> (i32, i32) {
    %c0_i32 = arith.constant 0 : i32
    %c0_i32_0 = arith.constant 0 : i32
    %c0_i32_1 = arith.constant 0 : i32
    return %c0_i32, %c0_i32_0 : i32, i32
  }
  func.func @transform_3(%arg0: i32) -> (i32, i32) {
    %c0_i32 = arith.constant 0 : i32
    %c0_i32_0 = arith.constant 0 : i32
    %c0_i32_1 = arith.constant 0 : i32
    return %c0_i32, %c0_i32_0 : i32, i32
  }
  func.func @transform_4(%arg0: i32) -> (i32, i32, i32) {
    %c0_i32 = arith.constant 0 : i32
    %c0_i32_0 = arith.constant 0 : i32
    %c0_i32_1 = arith.constant 0 : i32
    %c0_i32_2 = arith.constant 0 : i32
    return %c0_i32, %c0_i32_0, %c0_i32_1 : i32, i32, i32
  }
  func.func @transform_5(%arg0: i32) -> (i32, i32) {
    %c0_i32 = arith.constant 0 : i32
    %c0_i32_0 = arith.constant 0 : i32
    %c0_i32_1 = arith.constant 0 : i32
    return %c0_i32, %c0_i32_0 : i32, i32
  }
  func.func @transform_6(%arg0: i32) -> (i32, i32) {
    %c0_i32 = arith.constant 0 : i32
    %c0_i32_0 = arith.constant 0 : i32
    %c0_i32_1 = arith.constant 0 : i32
    return %c0_i32, %c0_i32_0 : i32, i32
  }
  func.func @transform_7(%arg0: i32) -> (i32, i32) {
    %c0_i32 = arith.constant 0 : i32
    %c0_i32_0 = arith.constant 0 : i32
    %c0_i32_1 = arith.constant 0 : i32
    return %c0_i32, %c0_i32_0 : i32, i32
  }
  func.func @transform_8(%arg0: i32) -> (i32, i32) {
    %c0_i32 = arith.constant 0 : i32
    %c0_i32_0 = arith.constant 0 : i32
    return %arg0, %c0_i32 : i32, i32
  }
}

</mosaic_0001>

<bundles_post_ra>
// kernel: tpu_custom_call.1
= control target key start
LH: loop header
LB: loop body
LE: loop exit
PB: predicated region body
PF: predicated region fallthrough
CT: control target
= control target key end

     0   :  { %13 = vsyncpa [#allocation3], 0  ;;  %s6751_s0 = inlined_call_operand.vmem [shape: f32[100,50], index: 0, kind: input, shape index: {}]   ;;  %s6752_s1 = inlined_call_operand.hbm [shape: f32[9,50,84], index: 1, kind: input, shape index: {}]   ;;  %s6753_s2 = inlined_call_operand.vmem [shape: f32[1,84], index: 2, kind: input, shape index: {}]   ;;  %s6754_s3 = inlined_call_operand.vmem [shape: f32[42,91], index: 3, kind: input, shape index: {}]   ;;  %s6755_s4 = inlined_call_operand.hbm [shape: f32[21,83,128], index: 4, kind: input, shape index: {}]   ;;  %s6756_s5 = inlined_call_operand.vmem [shape: f32[1,128], index: 5, kind: input, shape index: {}]   ;;  %s6757_s6 = inlined_call_operand.vmem [shape: f32[128,9], index: 6, kind: input, shape index: {}]   ;;  %s6758_s7 = inlined_call_operand.vmem [shape: f32[1,9], index: 7, kind: input, shape index: {}]   ;;  %s6759_s8 = inlined_call_operand.hbm [shape: f32[2,9], index: 8, kind: output, shape index: {}]  }
   0x1   :  { %14 = vsyncpa [#allocation6], 0 }
   0x2   :  { %15 = vsyncpa [#allocation4], 0  ;;  %s5629_s27 = smov [#allocation2]  }
   0x3   :  { %s23_s28 = sshll.u32 %s5629_s27, 4  ;;  %s24_s28 = int_to_ptr.vmem [resolvable:$true] %s23_s28 }
   0x4   :  { %s5571_s29 = scalar_lea.vmem %s24_s28, 8064  ;;  %p5576_p1 = scmp.lt.s32.totalorder %s24_s28, %s24_s28 }
   0x5   :  { %p5572_p0 = scmp.ne.s32.totalorder %s24_s28, %s5571_s29  ;;  %p5577_p2 = scmp.lt.s32.totalorder %s5571_s29, %s5571_s29 }
   0x7   :  { %p5578_p3 = por %p5577_p2, %p5576_p1 }
   0x9   :  { %p5579_p4 = pnand %p5578_p3, %p5572_p0 }
   0xb   :  { %5582 = shalt.err (!%p5579_p4)
}
   0xc   :  { %s5630_s30 = smov 128   ;;  %s5631_s9 = smov 8  }
   0xd   :  { %29 = dma.hbm_to_vmem [thread:$0]  %s6752_s1, 8064, %s24_s28, [#allocation3], %s5630_s30, %s5630_s30, %s5631_s9  }
   0xe   :  { %s5632_s12 = smov [#allocation5]  }
   0xf   :  { %s39_s13 = sshll.u32 %s5632_s12, 4  ;;  %s40_s13 = int_to_ptr.vmem [resolvable:$true] %s39_s13 }
  0x10   :  { %s5591_s14 = scalar_lea.vmem %s40_s13, 29568  ;;  %p5596_p6 = scmp.lt.s32.totalorder %s40_s13, %s40_s13 }
  0x11   :  { %p5592_p5 = scmp.ne.s32.totalorder %s40_s13, %s5591_s14  ;;  %p5597_p7 = scmp.lt.s32.totalorder %s5591_s14, %s5591_s14 }
  0x13   :  { %p5598_p8 = por %p5597_p7, %p5596_p6 }
  0x15   :  { %p5599_p9 = pnand %p5598_p8, %p5592_p5 }
  0x17   :  { %5602 = shalt.err (!%p5599_p9)
}
  0x18   :  { %45 = dma.hbm_to_vmem [thread:$0]  %s6755_s4, 29568, %s40_s13, [#allocation6], %s5630_s30, %s5630_s30, %s5631_s9  }
  0x19   :  { %5623 = dma.done.wait [#allocation3], 8064  }
  0x1a   :  { %5624 = vsyncadd [#allocation3], 4294959232 }
  0x1b   :  { %5625 = dma.done.wait [#allocation6], 29568  }
  0x1c   :  { %5626 = vsyncadd [#allocation6], 4294937728  ;;  %vm134_vm0 = vcmask 1041408   ;;  %v96_v0 = vld [vmem:[#allocation2 + $0x68] sm:$0x3]  ;;  %v95_v2 = vld [vmem:[#allocation2 + $0x60] sm:$0xff] }
  0x1d   :  { %v76_v1 = vld [vmem:[#allocation2 + $0x30] sm:$0x3]  ;;  %4670 = vmatprep.subr.msk.mxu0 %vm134_vm0, %v96_v0  ;;  %v75_v3 = vld [vmem:[#allocation2 + $0x28] sm:$0xff]  ;;  %v94_v4 = vld [vmem:[#allocation2 + $0x58] sm:$0xff]  ;;  %vm97_vm1 = vcmask 408576   ;;  %vm1896_vm2 = vcmask 744448  }
  0x1e   :  { %4702 = vmatprep.subr.msk.mxu1 %vm134_vm0, %v76_v1  ;;  %4671 = vmatpush3.msk.msra.mxu0 %vm134_vm0, %v96_v0  ;;  %v74_v5 = vld [vmem:[#allocation2 + $0x20] sm:$0xff]  ;;  %v93_v6 = vld [vmem:[#allocation2 + $0x50] sm:$0xff]  ;;  %v73_v7 = vld [vmem:[#allocation2 + $0x18] sm:$0xff]  ;;  %vm1842_vm3 = vcmask 1046528   ;;  %vm1915_vm4 = vcmask 1042432   ;;  %vm5634_vm5 = vmmov 0  }
  0x1f   :  { %4703 = vmatpush3.msk.msra.mxu1 %vm134_vm0, %v76_v1  ;;  %4672 = vmatprep.subr.mxu0 %v95_v2  ;;  %v92_v8 = vld [vmem:[#allocation2 + $0x48] sm:$0xff]  ;;  %v72_v9 = vld [vmem:[#allocation2 + $0x10] sm:$0xff]  ;;  %v91_v10 = vld [vmem:[#allocation2 + $0x40] sm:$0xff]  ;;  %vm2069_vm6 = vcmask 678912   ;;  %vm4013_vm7 = vcmask 66560  }
  0x20   :  { %4704 = vmatprep.subr.mxu1 %v75_v3  ;;  %4673 = vmatpush3.msra.mxu0 %v95_v2  ;;  %v71_v11 = vld [vmem:[#allocation2 + $0x8] sm:$0xff]  ;;  %v90_v12 = vld [vmem:[#allocation2 + $0x38] sm:$0xff]  ;;  %v70_v13 = vld [vmem:[#allocation2] sm:$0xff] }
  0x21   :  { %4705 = vmatpush3.msra.mxu1 %v75_v3  ;;  %4674 = vmatprep.subr.mxu0 %v94_v4  ;;  %v77_v14 = vld [vmem:[%s6751_s0 + $0x1] sm:$0xff]  ;;  %v78_v16 = vld [vmem:[%s6751_s0 + $0x9] sm:$0xff]  ;;  %v79_v19 = vld [vmem:[%s6751_s0 + $0x11] sm:$0xff] }
  0x22   :  { %4706 = vmatprep.subr.mxu1 %v74_v5  ;;  %4675 = vmatpush3.msra.mxu0 %v94_v4  ;;  %v58_v15 = vld [vmem:[%s6751_s0] sm:$0xff]  ;;  %v5704_v17 = vld [vmem:[%s6751_s0 + $0x8] sm:$0xff]  ;;  %v5714_v20 = vld [vmem:[%s6751_s0 + $0x10] sm:$0xff] }
  0x23   :  { %4707 = vmatpush3.msra.mxu1 %v74_v5  ;;  %4676 = vmatprep.subr.mxu0 %v93_v6  ;;  %v446_v18 = vld [vmem:[#allocation2 + $0xa0] sm:$0x3]  ;;  %v445_v21 = vld [vmem:[#allocation2 + $0x98] sm:$0xff]  ;;  %v444_v27 = vld [vmem:[#allocation2 + $0x90] sm:$0xff] }
  0x24   :  { %4708 = vmatprep.subr.mxu1 %v73_v7  ;;  %4677 = vmatpush3.msra.mxu0 %v93_v6  ;;  %v642_v22 = vld [vmem:[#allocation2 + $0xd8] sm:$0x3]  ;;  %v81_v25 = vld [vmem:[%s6751_s0 + $0x21] sm:$0xff]  ;;  %v82_v28 = vld [vmem:[%s6751_s0 + $0x29] sm:$0xff] }
  0x25   :  { %4709 = vmatpush3.msra.mxu1 %v73_v7  ;;  %4678 = vmatprep.subr.mxu0 %v92_v8  ;;  %v80_v23 = vld [vmem:[%s6751_s0 + $0x19] sm:$0xff]  ;;  %v5751_v29 = vld [vmem:[%s6751_s0 + $0x28] sm:$0xff]  ;;  %v83_v30 = vld [vmem:[%s6751_s0 + $0x31] sm:$0xff] }
  0x26   :  { %4710 = vmatprep.subr.mxu1 %v72_v9  ;;  %4679 = vmatpush3.msra.mxu0 %v92_v8  ;;  %v5727_v24 = vld [vmem:[%s6751_s0 + $0x18] sm:$0xff]  ;;  %v5738_v26 = vld [vmem:[%s6751_s0 + $0x20] sm:$0xff]  ;;  %v5761_v31 = vld [vmem:[%s6751_s0 + $0x30] sm:$0xff] }
  0x27   :  { %4711 = vmatpush3.msra.mxu1 %v72_v9  ;;  %4680 = vmatprep.subr.mxu0 %v91_v10  ;;  %v443_v32 = vld [vmem:[#allocation2 + $0x88] sm:$0xff]  ;;  %v641_v33 = vld [vmem:[#allocation2 + $0xd0] sm:$0xff]  ;;  %v84_v34 = vld [vmem:[%s6751_s0 + $0x39] sm:$0xff] }
  0x28   :  { %4712 = vmatprep.subr.mxu1 %v71_v11  ;;  %4681 = vmatpush3.msra.mxu0 %v91_v10  ;;  %v5776_v35 = vld [vmem:[%s6751_s0 + $0x38] sm:$0xff]  ;;  %v442_v36 = vld [vmem:[#allocation2 + $0x80] sm:$0xff]  ;;  %v640_v39 = vld [vmem:[#allocation2 + $0xc8] sm:$0xff] }
  0x29   :  { %4713 = vmatpush3.msra.mxu1 %v71_v11  ;;  %4682 = vmatprep.subr.mxu0 %v90_v12  ;;  %v85_v37 = vld [vmem:[%s6751_s0 + $0x41] sm:$0xff]  ;;  %v441_v40 = vld [vmem:[#allocation2 + $0x78] sm:$0xff]  ;;  %v86_v41 = vld [vmem:[%s6751_s0 + $0x49] sm:$0xff] }
  0x2a   :  { %4714 = vmatprep.subr.mxu1 %v70_v13  ;;  %4683 = vmatpush3.msra.mxu0 %v90_v12  ;;  %v5784_v38 = vld [vmem:[%s6751_s0 + $0x40] sm:$0xff]  ;;  %v5796_v42 = vld [vmem:[%s6751_s0 + $0x48] sm:$0xff]  ;;  %v87_v43 = vld [vmem:[%s6751_s0 + $0x51] sm:$0xff] }
  0x2b   :  { %4684 = vmatprep.mubr.msk.f32.mxu0 %vm97_vm1, %v77_v14  ;;  %4715 = vmatpush3.msra.mxu1 %v70_v13  ;;  %v639_v44 = vld [vmem:[#allocation2 + $0xc0] sm:$0xff]  ;;  %v5806_v45 = vld [vmem:[%s6751_s0 + $0x50] sm:$0xff]  ;;  %v88_v46 = vld [vmem:[%s6751_s0 + $0x59] sm:$0xf] }
  0x2c   :  { %4716 = vmatprep.mubr.msk.f32.mxu1 %vm97_vm1, %v58_v15  ;;  %4685 = vmatmul.mubr.msk.f32.vlgmr.msra.gmra.mxu0 %vm97_vm1, %v78_v16  ;;  %v69_v47 = vld [vmem:[%s6751_s0 + $0x58] sm:$0xf]  ;;  %v440_v49 = vld [vmem:[#allocation2 + $0x70] sm:$0xff]  ;;  %v427_v51 = vld [vmem:[%s6751_s0 + $0x2] sm:$0xff] }
  0x2d   :  { %4717 = vmatmul.mubr.msk.f32.vlgmr.msra.gmra.mxu1 %vm97_vm1, %v5704_v17  ;;  %4734 = vmatprep.subr.msk.mxu0 %vm134_vm0, %v446_v18  ;;  %v638_v48 = vld [vmem:[#allocation2 + $0xb8] sm:$0xff]  ;;  %v637_v50 = vld [vmem:[#allocation2 + $0xb0] sm:$0xff]  ;;  %v636_v53 = vld [vmem:[#allocation2 + $0xa8] sm:$0xff] }
  0x2e   :  { %4687 = vmatprep.mubr.msk.f32.mxu0 %vm97_vm1, %v79_v19  ;;  %4735 = vmatpush3.msk.msra.mxu0 %vm134_vm0, %v446_v18  ;;  %v428_v52 = vld [vmem:[%s6751_s0 + $0xa] sm:$0xff]  ;;  %v429_v57 = vld [vmem:[%s6751_s0 + $0x12] sm:$0xff]  ;;  %v430_v59 = vld [vmem:[%s6751_s0 + $0x1a] sm:$0xff] }
  0x2f   :  { %4719 = vmatprep.mubr.msk.f32.mxu1 %vm97_vm1, %v5714_v20  ;;  %4736 = vmatprep.subr.mxu0 %v445_v21  ;;  %v838_v54 = vld [vmem:[#allocation2 + $0x110] sm:$0x3]  ;;  %v623_v55 = vld [vmem:[%s6751_s0 + $0x3] sm:$0xff]  ;;  %v625_v60 = vld [vmem:[%s6751_s0 + $0x13] sm:$0xff] }
  0x30   :  { %4766 = vmatprep.subr.msk.mxu1 %vm134_vm0, %v642_v22  ;;  %4688 = vmatmul.mubr.msk.f32.gmra.mxu0 %vm97_vm1, %v80_v23  ;;  %v624_v56 = vld [vmem:[%s6751_s0 + $0xb] sm:$0xff]  ;;  %v431_v61 = vld [vmem:[%s6751_s0 + $0x22] sm:$0xff]  ;;  %v835_v2 = vld [vmem:[#allocation2 + $0xf8] sm:$0xff] }
  0x31   :  { %4720 = vmatmul.mubr.msk.f32.gmra.mxu1 %vm97_vm1, %v5727_v24  ;;  %4737 = vmatpush3.msra.mxu0 %v445_v21  ;;  %v837_v58 = vld [vmem:[#allocation2 + $0x108] sm:$0xff]  ;;  %v626_v62 = vld [vmem:[%s6751_s0 + $0x1b] sm:$0xff]  ;;  %v433_v3 = vld [vmem:[%s6751_s0 + $0x32] sm:$0xff] }
  0x32   :  { %4690 = vmatprep.mubr.msk.f32.mxu0 %vm97_vm1, %v81_v25  ;;  %4722 = vmatprep.mubr.msk.f32.mxu1 %vm97_vm1, %v5738_v26  ;;  %v836_v63 = vld [vmem:[#allocation2 + $0x100] sm:$0xff]  ;;  %v432_v1 = vld [vmem:[%s6751_s0 + $0x2a] sm:$0xff]  ;;  %v1034_v5 = vld [vmem:[#allocation2 + $0x148] sm:$0x3] }
  0x33   :  { %4738 = vmatprep.subr.mxu0 %v444_v27  ;;  %4767 = vmatpush3.msk.msra.mxu1 %vm134_vm0, %v642_v22  ;;  %v627_v0 = vld [vmem:[%s6751_s0 + $0x23] sm:$0xff]  ;;  %v628_v4 = vld [vmem:[%s6751_s0 + $0x2b] sm:$0xff]  ;;  %v629_v6 = vld [vmem:[%s6751_s0 + $0x33] sm:$0xff] }
  0x34   :  { %4739 = vmatpush3.msra.mxu0 %v444_v27  ;;  %4768 = vmatprep.subr.mxu1 %v641_v33  ;;  %v434_v7 = vld [vmem:[%s6751_s0 + $0x3a] sm:$0xff]  ;;  %v834_v8 = vld [vmem:[#allocation2 + $0xf0] sm:$0xff]  ;;  %v435_v10 = vld [vmem:[%s6751_s0 + $0x42] sm:$0xff] }
  0x35   :  { %4691 = vmatmul.mubr.msk.f32.gmra.mxu0 %vm97_vm1, %v82_v28  ;;  %4723 = vmatmul.mubr.msk.f32.gmra.mxu1 %vm97_vm1, %v5751_v29  ;;  %v1033_v9 = vld [vmem:[#allocation2 + $0x140] sm:$0xff]  ;;  %v436_v13 = vld [vmem:[%s6751_s0 + $0x4a] sm:$0xff]  ;;  %v1032_v14 = vld [vmem:[#allocation2 + $0x138] sm:$0xff] }
  0x36   :  { %4693 = vmatprep.mubr.msk.f32.mxu0 %vm97_vm1, %v83_v30  ;;  %4725 = vmatprep.mubr.msk.f32.mxu1 %vm97_vm1, %v5761_v31  ;;  %v630_v11 = vld [vmem:[%s6751_s0 + $0x3b] sm:$0xff]  ;;  %v631_v12 = vld [vmem:[%s6751_s0 + $0x43] sm:$0xff]  ;;  %v632_v16 = vld [vmem:[%s6751_s0 + $0x4b] sm:$0xff] }
  0x37   :  { %4740 = vmatprep.subr.mxu0 %v443_v32  ;;  %4769 = vmatpush3.msra.mxu1 %v641_v33  ;;  %v833_v15 = vld [vmem:[#allocation2 + $0xe8] sm:$0xff]  ;;  %v1031_v18 = vld [vmem:[#allocation2 + $0x130] sm:$0xff]  ;;  %v438_v21 = vld [vmem:[%s6751_s0 + $0x5a] sm:$0xf] }
  0x38   :  { %4741 = vmatpush3.msra.mxu0 %v443_v32  ;;  %4770 = vmatprep.subr.mxu1 %v640_v39  ;;  %v437_v19 = vld [vmem:[%s6751_s0 + $0x52] sm:$0xff]  ;;  %v1030_v22 = vld [vmem:[#allocation2 + $0x128] sm:$0xff]  ;;  %v832_v25 = vld [vmem:[#allocation2 + $0xe0] sm:$0xff] }
  0x39   :  { %4694 = vmatmul.mubr.msk.f32.gmra.mxu0 %vm97_vm1, %v84_v34  ;;  %4726 = vmatmul.mubr.msk.f32.gmra.mxu1 %vm97_vm1, %v5776_v35  ;;  %v633_v23 = vld [vmem:[%s6751_s0 + $0x53] sm:$0xff]  ;;  %v634_v27 = vld [vmem:[%s6751_s0 + $0x5b] sm:$0xf]  ;;  %v1029_v28 = vld [vmem:[#allocation2 + $0x120] sm:$0xff] }
  0x3a   :  { %4742 = vmatprep.subr.mxu0 %v442_v36  ;;  %4696 = vmatprep.mubr.msk.f32.mxu0 %vm97_vm1, %v85_v37  ;;  %v819_v30 = vld [vmem:[%s6751_s0 + $0x4] sm:$0xff]  ;;  %v820_v32 = vld [vmem:[%s6751_s0 + $0xc] sm:$0xff]  ;;  %v1028_v33 = vld [vmem:[#allocation2 + $0x118] sm:$0xff] }
  0x3b   :  { %4728 = vmatprep.mubr.msk.f32.mxu1 %vm97_vm1, %v5784_v38  ;;  %4743 = vmatpush3.msra.mxu0 %v442_v36  ;;  %v1230_v34 = vld [vmem:[#allocation2 + $0x180] sm:$0x3]  ;;  %v1015_v36 = vld [vmem:[%s6751_s0 + $0x5] sm:$0xff]  ;;  %v1016_v37 = vld [vmem:[%s6751_s0 + $0xd] sm:$0xff] }
  0x3c   :  { %4744 = vmatprep.subr.mxu0 %v441_v40  ;;  %4771 = vmatpush3.msra.mxu1 %v640_v39  ;;  %v821_v39 = vld [vmem:[%s6751_s0 + $0x14] sm:$0xff] }
  0x3d   :  { %4697 = vmatmul.mubr.msk.f32.gmra.mxu0 %vm97_vm1, %v86_v41  ;;  %4729 = vmatmul.mubr.msk.f32.gmra.mxu1 %vm97_vm1, %v5796_v42  ;;  %v822_v41 = vld [vmem:[%s6751_s0 + $0x1c] sm:$0xff] }
  0x3e   :  { %4699 = vmatprep.mubr.msk.f32.mxu0 %vm97_vm1, %v87_v43  ;;  %4772 = vmatprep.subr.mxu1 %v639_v44  ;;  %v1017_v43 = vld [vmem:[%s6751_s0 + $0x15] sm:$0xff] }
  0x3f   :  { %4731 = vmatprep.mubr.msk.f32.mxu1 %vm97_vm1, %v5806_v45  ;;  %4745 = vmatpush3.msra.mxu0 %v441_v40  ;;  %v1229_v40 = vld [vmem:[#allocation2 + $0x178] sm:$0xff] }
  0x40   :  { %4773 = vmatpush3.msra.mxu1 %v639_v44  ;;  %4746 = vmatprep.subr.mxu0 %v440_v49  ;;  %v823_v44 = vld [vmem:[%s6751_s0 + $0x24] sm:$0xff] }
  0x41   :  { %4700 = vmatmul.mubr.msk.f32.gmra.mxu0 %vm97_vm1, %v88_v46  ;;  %4732 = vmatmul.mubr.msk.f32.gmra.mxu1 %vm97_vm1, %v69_v47  ;;  %v1018_v46 = vld [vmem:[%s6751_s0 + $0x1d] sm:$0xff]  ;;  %v1228_v47 = vld [vmem:[#allocation2 + $0x170] sm:$0xff] }
  0x42   :  { %4774 = vmatprep.subr.mxu1 %v638_v48  ;;  %4747 = vmatpush3.msra.mxu0 %v440_v49  ;;  %v824_v49 = vld [vmem:[%s6751_s0 + $0x2c] sm:$0xff] }
  0x43   :  { %4775 = vmatpush3.msra.mxu1 %v638_v48  ;;  %4748 = vmatprep.mubr.msk.f32.mxu0 %vm97_vm1, %v427_v51  ;;  %v1019_v48 = vld [vmem:[%s6751_s0 + $0x25] sm:$0xff]  ;;  %v825_v51 = vld [vmem:[%s6751_s0 + $0x34] sm:$0xff] }
  0x44   :  { %4776 = vmatprep.subr.mxu1 %v637_v50  ;;  %4798 = vmatprep.subr.msk.mxu0 %vm134_vm0, %v838_v54 }
  0x45   :  { %4777 = vmatpush3.msra.mxu1 %v637_v50  ;;  %4749 = vmatmul.mubr.msk.f32.vlgmr.msra.gmra.mxu0 %vm97_vm1, %v428_v52  ;;  %v1227_v50 = vld [vmem:[#allocation2 + $0x168] sm:$0xff] }
  0x46   :  { %4778 = vmatprep.subr.mxu1 %v636_v53  ;;  %4780 = vmatprep.mubr.msk.f32.mxu1 %vm97_vm1, %v623_v55  ;;  %v1020_v52 = vld [vmem:[%s6751_s0 + $0x2d] sm:$0xff]  ;;  %v826_v55 = vld [vmem:[%s6751_s0 + $0x3c] sm:$0xff] }
  0x47   :  { %4779 = vmatpush3.msra.mxu1 %v636_v53  ;;  %4799 = vmatpush3.msk.msra.mxu0 %vm134_vm0, %v838_v54  ;;  %v1426_v53 = vld [vmem:[#allocation2 + $0x1b8] sm:$0x3] }
  0x48   :  { %4781 = vmatmul.mubr.msk.f32.vlgmr.msra.gmra.mxu1 %vm97_vm1, %v624_v56  ;;  %4751 = vmatprep.mubr.msk.f32.mxu0 %vm97_vm1, %v429_v57  ;;  %v1021_v54 = vld [vmem:[%s6751_s0 + $0x35] sm:$0xff]  ;;  %v1226_v56 = vld [vmem:[#allocation2 + $0x160] sm:$0xff] }
  0x49   :  { %4800 = vmatprep.subr.mxu0 %v837_v58  ;;  %4752 = vmatmul.mubr.msk.f32.gmra.mxu0 %vm97_vm1, %v430_v59  ;;  %v1425_v57 = vld [vmem:[#allocation2 + $0x1b0] sm:$0xff]  ;;  %v1022_v59 = vld [vmem:[%s6751_s0 + $0x3d] sm:$0xff] }
  0x4a   :  { %4783 = vmatprep.mubr.msk.f32.mxu1 %vm97_vm1, %v625_v60  ;;  %4801 = vmatpush3.msra.mxu0 %v837_v58  ;;  %v827_v58 = vld [vmem:[%s6751_s0 + $0x44] sm:$0xff] }
  0x4b   :  { %4754 = vmatprep.mubr.msk.f32.mxu0 %vm97_vm1, %v431_v61  ;;  %4802 = vmatprep.subr.mxu0 %v836_v63  ;;  %v1023_v60 = vld [vmem:[%s6751_s0 + $0x45] sm:$0xff] }
  0x4c   :  { %4784 = vmatmul.mubr.msk.f32.gmra.mxu1 %vm97_vm1, %v626_v62  ;;  %4803 = vmatpush3.msra.mxu0 %v836_v63  ;;  %v828_v61 = vld [vmem:[%s6751_s0 + $0x4c] sm:$0xff]  ;;  %v1225_v63 = vld [vmem:[#allocation2 + $0x158] sm:$0xff] }
  0x4d   :  { %4786 = vmatprep.mubr.msk.f32.mxu1 %vm97_vm1, %v627_v0  ;;  %4755 = vmatmul.mubr.msk.f32.gmra.mxu0 %vm97_vm1, %v432_v1  ;;  %v1424_v62 = vld [vmem:[#allocation2 + $0x1a8] sm:$0xff]  ;;  %v1423_v1 = vld [vmem:[#allocation2 + $0x1a0] sm:$0xff] }
  0x4e   :  { %4804 = vmatprep.subr.mxu0 %v835_v2  ;;  %4757 = vmatprep.mubr.msk.f32.mxu0 %vm97_vm1, %v433_v3  ;;  %v1024_v0 = vld [vmem:[%s6751_s0 + $0x4d] sm:$0xff]  ;;  %v830_v3 = vld [vmem:[%s6751_s0 + $0x5c] sm:$0xf] }
  0x4f   :  { %4805 = vmatpush3.msra.mxu0 %v835_v2  ;;  %4830 = vmatprep.subr.msk.mxu1 %vm134_vm0, %v1034_v5  ;;  %v829_v2 = vld [vmem:[%s6751_s0 + $0x54] sm:$0xff] }
  0x50   :  { %4787 = vmatmul.mubr.msk.f32.gmra.mxu1 %vm97_vm1, %v628_v4  ;;  %4806 = vmatprep.subr.mxu0 %v834_v8  ;;  %v1422_v4 = vld [vmem:[#allocation2 + $0x198] sm:$0xff] }
  0x51   :  { %4789 = vmatprep.mubr.msk.f32.mxu1 %vm97_vm1, %v629_v6  ;;  %4831 = vmatpush3.msk.msra.mxu1 %vm134_vm0, %v1034_v5  ;;  %v1025_v5 = vld [vmem:[%s6751_s0 + $0x55] sm:$0xff] }
  0x52   :  { %4758 = vmatmul.mubr.msk.f32.gmra.mxu0 %vm97_vm1, %v434_v7  ;;  %4832 = vmatprep.subr.mxu1 %v1033_v9  ;;  %v1224_v6 = vld [vmem:[#allocation2 + $0x150] sm:$0xff]  ;;  %v1026_v7 = vld [vmem:[%s6751_s0 + $0x5d] sm:$0xf] }
  0x53   :  { %4760 = vmatprep.mubr.msk.f32.mxu0 %vm97_vm1, %v435_v10  ;;  %4807 = vmatpush3.msra.mxu0 %v834_v8  ;;  %v1421_v8 = vld [vmem:[#allocation2 + $0x190] sm:$0xff] }
  0x54   :  { %4790 = vmatmul.mubr.msk.f32.gmra.mxu1 %vm97_vm1, %v630_v11  ;;  %4808 = vmatprep.subr.mxu0 %v833_v15  ;;  %v1212_v10 = vld [vmem:[%s6751_s0 + $0xe] sm:$0xff] }
  0x55   :  { %4833 = vmatpush3.msra.mxu1 %v1033_v9  ;;  %4792 = vmatprep.mubr.msk.f32.mxu1 %vm97_vm1, %v631_v12  ;;  %v1211_v9 = vld [vmem:[%s6751_s0 + $0x6] sm:$0xff]  ;;  %v1622_v12 = vld [vmem:[#allocation2 + $0x1f0] sm:$0x3] }
  0x56   :  { %4761 = vmatmul.mubr.msk.f32.gmra.mxu0 %vm97_vm1, %v436_v13  ;;  %4834 = vmatprep.subr.mxu1 %v1032_v14  ;;  %v1420_v11 = vld [vmem:[#allocation2 + $0x188] sm:$0xff] }
  0x57   :  { %4835 = vmatpush3.msra.mxu1 %v1032_v14  ;;  %4763 = vmatprep.mubr.msk.f32.mxu0 %vm97_vm1, %v437_v19  ;;  %v1407_v13 = vld [vmem:[%s6751_s0 + $0x7] sm:$0xff]  ;;  %v1408_v14 = vld [vmem:[%s6751_s0 + $0xf] sm:$0xff]  ;;  %v1409_v19 = vld [vmem:[%s6751_s0 + $0x17] sm:$0xff] }
  0x58   :  { %4793 = vmatmul.mubr.msk.f32.gmra.mxu1 %vm97_vm1, %v632_v16  ;;  %4836 = vmatprep.subr.mxu1 %v1031_v18  ;;  %v1621_v16 = vld [vmem:[#allocation2 + $0x1e8] sm:$0xff] }
  0x59   :  { %4809 = vmatpush3.msra.mxu0 %v833_v15  ;;  %4837 = vmatpush3.msra.mxu1 %v1031_v18  ;;  %v1213_v15 = vld [vmem:[%s6751_s0 + $0x16] sm:$0xff]  ;;  %v1214_v18 = vld [vmem:[%s6751_s0 + $0x1e] sm:$0xff] }
  0x5a   :  { %4764 = vmatmul.mubr.msk.f32.gmra.mxu0 %vm97_vm1, %v438_v21  ;;  %4838 = vmatprep.subr.mxu1 %v1030_v22  ;;  %v1215_v21 = vld [vmem:[%s6751_s0 + $0x26] sm:$0xff] }
  0x5b   :  { %4795 = vmatprep.mubr.msk.f32.mxu1 %vm97_vm1, %v633_v23  ;;  %4810 = vmatprep.subr.mxu0 %v832_v25  ;;  %v1620_v23 = vld [vmem:[#allocation2 + $0x1e0] sm:$0xff] }
  0x5c   :  { %4839 = vmatpush3.msra.mxu1 %v1030_v22  ;;  %4811 = vmatpush3.msra.mxu0 %v832_v25  ;;  %v1410_v22 = vld [vmem:[%s6751_s0 + $0x1f] sm:$0xff]  ;;  %v1411_v25 = vld [vmem:[%s6751_s0 + $0x27] sm:$0xff] }
  0x5d   :  { %4796 = vmatmul.mubr.msk.f32.gmra.mxu1 %vm97_vm1, %v634_v27  ;;  %4840 = vmatprep.subr.mxu1 %v1029_v28  ;;  %v1216_v27 = vld [vmem:[%s6751_s0 + $0x2e] sm:$0xff] }
  0x5e   :  { %4812 = vmatprep.mubr.msk.f32.mxu0 %vm97_vm1, %v819_v30  ;;  %4841 = vmatpush3.msra.mxu1 %v1029_v28  ;;  %v1619_v28 = vld [vmem:[#allocation2 + $0x1d8] sm:$0xff] }
  0x5f   :  { %4813 = vmatmul.mubr.msk.f32.vlgmr.msra.gmra.mxu0 %vm97_vm1, %v820_v32  ;;  %4842 = vmatprep.subr.mxu1 %v1028_v33  ;;  %v1217_v30 = vld [vmem:[%s6751_s0 + $0x36] sm:$0xff] }
  0x60   :  { %4862 = vmatprep.subr.msk.mxu0 %vm134_vm0, %v1230_v34  ;;  %4843 = vmatpush3.msra.mxu1 %v1028_v33  ;;  %v1412_v32 = vld [vmem:[%s6751_s0 + $0x2f] sm:$0xff] }
  0x61   :  { %4844 = vmatprep.mubr.msk.f32.mxu1 %vm97_vm1, %v1015_v36  ;;  %4863 = vmatpush3.msk.msra.mxu0 %vm134_vm0, %v1230_v34  ;;  %v1618_v33 = vld [vmem:[#allocation2 + $0x1d0] sm:$0xff]  ;;  %v1218_v36 = vld [vmem:[%s6751_s0 + $0x3e] sm:$0xff] }
  0x62   :  { %4845 = vmatmul.mubr.msk.f32.vlgmr.msra.gmra.mxu1 %vm97_vm1, %v1016_v37  ;;  %4815 = vmatprep.mubr.msk.f32.mxu0 %vm97_vm1, %v821_v39  ;;  %v1413_v34 = vld [vmem:[%s6751_s0 + $0x37] sm:$0xff]  ;;  %v1617_v37 = vld [vmem:[#allocation2 + $0x1c8] sm:$0xff] }
  0x63   :  { %4864 = vmatprep.subr.mxu0 %v1229_v40  ;;  %4816 = vmatmul.mubr.msk.f32.gmra.mxu0 %vm97_vm1, %v822_v41  ;;  %v1219_v39 = vld [vmem:[%s6751_s0 + $0x46] sm:$0xff] }
  0x64   :  { %4847 = vmatprep.mubr.msk.f32.mxu1 %vm97_vm1, %v1017_v43  ;;  %4865 = vmatpush3.msra.mxu0 %v1229_v40  ;;  %v1414_v40 = vld [vmem:[%s6751_s0 + $0x3f] sm:$0xff]  ;;  %v1415_v43 = vld [vmem:[%s6751_s0 + $0x47] sm:$0xff] }
  0x65   :  { %4818 = vmatprep.mubr.msk.f32.mxu0 %vm97_vm1, %v823_v44  ;;  %4866 = vmatprep.subr.mxu0 %v1228_v47  ;;  %v1616_v41 = vld [vmem:[#allocation2 + $0x1c0] sm:$0xff]  ;;  %v1220_v44 = vld [vmem:[%s6751_s0 + $0x4e] sm:$0xff] }
  0x66   :  { %4848 = vmatmul.mubr.msk.f32.gmra.mxu1 %vm97_vm1, %v1018_v46  ;;  %4867 = vmatpush3.msra.mxu0 %v1228_v47  ;;  %v1221_v46 = vld [vmem:[%s6751_s0 + $0x56] sm:$0xff] }
  0x67   :  { %4850 = vmatprep.mubr.msk.f32.mxu1 %vm97_vm1, %v1019_v48  ;;  %4819 = vmatmul.mubr.msk.f32.gmra.mxu0 %vm97_vm1, %v824_v49  ;;  %v1416_v47 = vld [vmem:[%s6751_s0 + $0x4f] sm:$0xff]  ;;  %v1417_v48 = vld [vmem:[%s6751_s0 + $0x57] sm:$0xff] }
  0x68   :  { %4868 = vmatprep.subr.mxu0 %v1227_v50  ;;  %4821 = vmatprep.mubr.msk.f32.mxu0 %vm97_vm1, %v825_v51  ;;  %v1222_v49 = vld [vmem:[%s6751_s0 + $0x5e] sm:$0xf] }
  0x69   :  { %4869 = vmatpush3.msra.mxu0 %v1227_v50  ;;  %4894 = vmatprep.subr.msk.mxu1 %vm134_vm0, %v1426_v53  ;;  %v1418_v50 = vld [vmem:[%s6751_s0 + $0x5f] sm:$0xf] }
  0x6a   :  { %4851 = vmatmul.mubr.msk.f32.gmra.mxu1 %vm97_vm1, %v1020_v52  ;;  %4870 = vmatprep.subr.mxu0 %v1226_v56 }
  0x6b   :  { %4853 = vmatprep.mubr.msk.f32.mxu1 %vm97_vm1, %v1021_v54  ;;  %4895 = vmatpush3.msk.msra.mxu1 %vm134_vm0, %v1426_v53 }
  0x6c   :  { %4822 = vmatmul.mubr.msk.f32.gmra.mxu0 %vm97_vm1, %v826_v55  ;;  %4896 = vmatprep.subr.mxu1 %v1425_v57 }
  0x6d   :  { %4824 = vmatprep.mubr.msk.f32.mxu0 %vm97_vm1, %v827_v58  ;;  %4871 = vmatpush3.msra.mxu0 %v1226_v56 }
  0x6e   :  { %4854 = vmatmul.mubr.msk.f32.gmra.mxu1 %vm97_vm1, %v1022_v59  ;;  %4872 = vmatprep.subr.mxu0 %v1225_v63 }
  0x6f   :  { %4897 = vmatpush3.msra.mxu1 %v1425_v57  ;;  %4856 = vmatprep.mubr.msk.f32.mxu1 %vm97_vm1, %v1023_v60 }
  0x70   :  { %4825 = vmatmul.mubr.msk.f32.gmra.mxu0 %vm97_vm1, %v828_v61  ;;  %4898 = vmatprep.subr.mxu1 %v1424_v62 }
  0x71   :  { %4899 = vmatpush3.msra.mxu1 %v1424_v62  ;;  %4827 = vmatprep.mubr.msk.f32.mxu0 %vm97_vm1, %v829_v2 }
  0x72   :  { %4857 = vmatmul.mubr.msk.f32.gmra.mxu1 %vm97_vm1, %v1024_v0  ;;  %4900 = vmatprep.subr.mxu1 %v1423_v1 }
  0x73   :  { %4873 = vmatpush3.msra.mxu0 %v1225_v63  ;;  %4901 = vmatpush3.msra.mxu1 %v1423_v1 }
  0x74   :  { %4828 = vmatmul.mubr.msk.f32.gmra.mxu0 %vm97_vm1, %v830_v3  ;;  %4902 = vmatprep.subr.mxu1 %v1422_v4 }
  0x75   :  { %4859 = vmatprep.mubr.msk.f32.mxu1 %vm97_vm1, %v1025_v5  ;;  %4874 = vmatprep.subr.mxu0 %v1224_v6 }
  0x76   :  { %4903 = vmatpush3.msra.mxu1 %v1422_v4  ;;  %4875 = vmatpush3.msra.mxu0 %v1224_v6 }
  0x77   :  { %4860 = vmatmul.mubr.msk.f32.gmra.mxu1 %vm97_vm1, %v1026_v7  ;;  %4904 = vmatprep.subr.mxu1 %v1421_v8 }
  0x78   :  { %4876 = vmatprep.mubr.msk.f32.mxu0 %vm97_vm1, %v1211_v9  ;;  %4905 = vmatpush3.msra.mxu1 %v1421_v8 }
  0x79   :  { %4877 = vmatmul.mubr.msk.f32.vlgmr.msra.gmra.mxu0 %vm97_vm1, %v1212_v10  ;;  %4906 = vmatprep.subr.mxu1 %v1420_v11 }
  0x7a   :  { %4926 = vmatprep.subr.msk.mxu0 %vm134_vm0, %v1622_v12  ;;  %4907 = vmatpush3.msra.mxu1 %v1420_v11 }
  0x7b   :  { %4908 = vmatprep.mubr.msk.f32.mxu1 %vm97_vm1, %v1407_v13  ;;  %4927 = vmatpush3.msk.msra.mxu0 %vm134_vm0, %v1622_v12 }
  0x7c   :  { %4909 = vmatmul.mubr.msk.f32.vlgmr.msra.gmra.mxu1 %vm97_vm1, %v1408_v14  ;;  %4879 = vmatprep.mubr.msk.f32.mxu0 %vm97_vm1, %v1213_v15 }
  0x7d   :  { %4928 = vmatprep.subr.mxu0 %v1621_v16  ;;  %4880 = vmatmul.mubr.msk.f32.gmra.mxu0 %vm97_vm1, %v1214_v18 }
  0x7e   :  { %4911 = vmatprep.mubr.msk.f32.mxu1 %vm97_vm1, %v1409_v19  ;;  %4929 = vmatpush3.msra.mxu0 %v1621_v16 }
  0x7f   :  { %4882 = vmatprep.mubr.msk.f32.mxu0 %vm97_vm1, %v1215_v21  ;;  %4930 = vmatprep.subr.mxu0 %v1620_v23  ;;  %v1890_v21 = vld [vmem:[%s6754_s3] sm:$0xff] }
  0x80   :  { %4912 = vmatmul.mubr.msk.f32.gmra.mxu1 %vm97_vm1, %v1410_v22  ;;  %4931 = vmatpush3.msra.mxu0 %v1620_v23 }
  0x81   :  { %4914 = vmatprep.mubr.msk.f32.mxu1 %vm97_vm1, %v1411_v25  ;;  %4883 = vmatmul.mubr.msk.f32.gmra.mxu0 %vm97_vm1, %v1216_v27 }
  0x82   :  { %4932 = vmatprep.subr.mxu0 %v1619_v28  ;;  %4885 = vmatprep.mubr.msk.f32.mxu0 %vm97_vm1, %v1217_v30 }
  0x83   :  { %4933 = vmatpush3.msra.mxu0 %v1619_v28 }
  0x84   :  { %4915 = vmatmul.mubr.msk.f32.gmra.mxu1 %vm97_vm1, %v1412_v32  ;;  %4934 = vmatprep.subr.mxu0 %v1618_v33 }
  0x85   :  { %4917 = vmatprep.mubr.msk.f32.mxu1 %vm97_vm1, %v1413_v34  ;;  %4935 = vmatpush3.msra.mxu0 %v1618_v33 }
  0x86   :  { %4886 = vmatmul.mubr.msk.f32.gmra.mxu0 %vm97_vm1, %v1218_v36  ;;  %4936 = vmatprep.subr.mxu0 %v1617_v37 }
  0x87   :  { %4888 = vmatprep.mubr.msk.f32.mxu0 %vm97_vm1, %v1219_v39  ;;  %4937 = vmatpush3.msra.mxu0 %v1617_v37 }
  0x88   :  { %4918 = vmatmul.mubr.msk.f32.gmra.mxu1 %vm97_vm1, %v1414_v40  ;;  %4938 = vmatprep.subr.mxu0 %v1616_v41 }
  0x89   :  { %4920 = vmatprep.mubr.msk.f32.mxu1 %vm97_vm1, %v1415_v43  ;;  %4939 = vmatpush3.msra.mxu0 %v1616_v41 }
  0x8a   :  { %4889 = vmatmul.mubr.msk.f32.gmra.mxu0 %vm97_vm1, %v1220_v44 }
  0x8b   :  { %4891 = vmatprep.mubr.msk.f32.mxu0 %vm97_vm1, %v1221_v46 }
  0x8c   :  { %4921 = vmatmul.mubr.msk.f32.gmra.mxu1 %vm97_vm1, %v1416_v47 }
  0x8d   :  { %4923 = vmatprep.mubr.msk.f32.mxu1 %vm97_vm1, %v1417_v48 }
  0x8e   :  { %4892 = vmatmul.mubr.msk.f32.gmra.mxu0 %vm97_vm1, %v1222_v49 }
  0x8f   :  { %4940 = vmatprep.mubr.msk.f32.mxu0 %vm97_vm1, %v5704_v17  ;;  %v1613_v17 = vld [vmem:[%s6751_s0 + $0x58] sm:$0xff] }
  0x90   :  { %4924 = vmatmul.mubr.msk.f32.gmra.mxu1 %vm97_vm1, %v1418_v50 }
  0x91   :  { %4982 = vmatprep.mubr.msk.f32.mxu1 %vm1896_vm2, %v1890_v21 }
  0x92   :  { %4941 = vmatmul.mubr.msk.f32.vlgmr.msra.gmra.mxu0 %vm97_vm1, %v5714_v20  ;;  %v1614_v20 = vld [vmem:[%s6751_s0 + $0x60] sm:$0xf] }
  0x93   :  { %4943 = vmatprep.mubr.msk.f32.mxu0 %vm97_vm1, %v5727_v24 }
  0x96   :  { %4944 = vmatmul.mubr.msk.f32.gmra.mxu0 %vm97_vm1, %v5738_v26 }
  0x97   :  { %4946 = vmatprep.mubr.msk.f32.mxu0 %vm97_vm1, %v5751_v29 }
  0x9a   :  { %4947 = vmatmul.mubr.msk.f32.gmra.mxu0 %vm97_vm1, %v5761_v31 }
  0x9b   :  { %4949 = vmatprep.mubr.msk.f32.mxu0 %vm97_vm1, %v5776_v35 }
  0x9e   :  { %4950 = vmatmul.mubr.msk.f32.gmra.mxu0 %vm97_vm1, %v5784_v38 }
  0x9f   :  { %4952 = vmatprep.mubr.msk.f32.mxu0 %vm97_vm1, %v5796_v42 }
  0xa2   :  { %4953 = vmatmul.mubr.msk.f32.gmra.mxu0 %vm97_vm1, %v5806_v45 }
  0xa3   :  { %4955 = vmatprep.mubr.msk.f32.mxu0 %vm97_vm1, %v1613_v17 }
  0xa6   :  { %4956 = vmatmul.mubr.msk.f32.gmra.mxu0 %vm97_vm1, %v1614_v20 }
  0xec   :  { %v4686_v24 = vpop.f32.mrf.mxu0 }
  0xed   :  { %v4718_v26 = vpop.f32.mrf.mxu1 }
  0xee   :  { %v374_v29 = vadd.f32 %v4718_v26, %v4686_v24  ;;  %v204_v31 = vpop.f32.mrf.mxu0 }
  0xef   :  { %v368_v35 = vpop.f32.mrf.mxu1 }
  0xf0   :  { %v369_v38 = vadd.f32 %v368_v35, %v204_v31  ;;  %v4689_v42 = vpop.f32.mrf.mxu0 }
  0xf1   :  { %v4721_v51 = vpop.f32.mrf.mxu1 }
  0xf2   :  { %v384_v52 = vadd.f32 %v4721_v51, %v4689_v42  ;;  %v214_v53 = vpop.f32.mrf.mxu0 }
  0xf3   :  { %v378_v54 = vpop.f32.mrf.mxu1 }
  0xf4   :  { %v379_v45 = vadd.f32 %v378_v54, %v214_v53 }
  0xf5   :  { %v4692_v55 = vpop.f32.mrf.mxu0  ;;  %v4724_v56 = vpop.f32.mrf.mxu1 }
  0xf6   :  { %v394_v57 = vadd.f32 %v4724_v56, %v4692_v55 }
  0xf7   :  { %v224_v58 = vpop.f32.mrf.mxu0  ;;  %v388_v59 = vpop.f32.mrf.mxu1 }
  0xf8   :  { %v389_v60 = vadd.f32 %v388_v59, %v224_v58 }
  0xf9   :  { %v4695_v61 = vpop.f32.mrf.mxu0  ;;  %v4727_v62 = vpop.f32.mrf.mxu1 }
  0xfa   :  { %v404_v63 = vadd.f32 %v4727_v62, %v4695_v61 }
  0xfb   :  { %v234_v0 = vpop.f32.mrf.mxu0  ;;  %v398_v1 = vpop.f32.mrf.mxu1 }
  0xfc   :  { %v399_v2 = vadd.f32 %v398_v1, %v234_v0 }
  0xfd   :  { %v4698_v3 = vpop.f32.mrf.mxu0  ;;  %v4730_v4 = vpop.f32.mrf.mxu1 }
  0xfe   :  { %v414_v5 = vadd.f32 %v4730_v4, %v4698_v3 }
  0xff   :  { %v244_v6 = vpop.f32.mrf.mxu0  ;;  %v408_v7 = vpop.f32.mrf.mxu1 }
 0x100   :  { %v409_v8 = vadd.f32 %v408_v7, %v244_v6 }
 0x101   :  { %v6148_v9 = vpop.f32.mrf.mxu0  ;;  %v6150_v10 = vpop.f32.mrf.mxu1 }
 0x103   :  { %v6152_v11 = vpop.f32.mrf.mxu0  ;;  %v6154_v13 = vpop.f32.mrf.mxu1 }
 0x105   :  { %v4750_v12 = vpop.f32.mrf.mxu0 }
 0x106   :  { %v612_v14 = vadd.f32 %v4750_v12, %v374_v29 }
 0x107   :  { %v552_v15 = vpop.f32.mrf.mxu0 }
 0x108   :  { %v611_v16 = vadd.f32 %v552_v15, %v369_v38  ;;  %v4782_v18 = vpop.f32.mrf.mxu1 }
 0x109   :  { %v808_v19 = vadd.f32 %v4782_v18, %v612_v14  ;;  %v4753_v22 = vpop.f32.mrf.mxu0 }
 0x10a   :  { %v748_v23 = vpop.f32.mrf.mxu1  ;;  %v614_v25 = vadd.f32 %v4753_v22, %v384_v52 }
 0x10b   :  { %v807_v27 = vadd.f32 %v748_v23, %v611_v16  ;;  %v562_v28 = vpop.f32.mrf.mxu0 }
 0x10c   :  { %v4785_v30 = vpop.f32.mrf.mxu1  ;;  %v613_v32 = vadd.f32 %v562_v28, %v379_v45 }
 0x10d   :  { %v810_v33 = vadd.f32 %v4785_v30, %v614_v25  ;;  %v4756_v34 = vpop.f32.mrf.mxu0 }
 0x10e   :  { %v758_v36 = vpop.f32.mrf.mxu1  ;;  %v616_v37 = vadd.f32 %v4756_v34, %v394_v57 }
 0x10f   :  { %v809_v39 = vadd.f32 %v758_v36, %v613_v32  ;;  %v572_v40 = vpop.f32.mrf.mxu0 }
 0x110   :  { %v4788_v41 = vpop.f32.mrf.mxu1  ;;  %v615_v43 = vadd.f32 %v572_v40, %v389_v60 }
 0x111   :  { %v812_v44 = vadd.f32 %v4788_v41, %v616_v37 }
 0x112   :  { %v4759_v46 = vpop.f32.mrf.mxu0  ;;  %v768_v47 = vpop.f32.mrf.mxu1 }
 0x113   :  { %v6160_v48 = vadd.f32 %v4759_v46, %v404_v63  ;;  %v811_v49 = vadd.f32 %v768_v47, %v615_v43 }
 0x114   :  { %v582_v50 = vpop.f32.mrf.mxu0  ;;  %v6162_v17 = vpop.f32.mrf.mxu1 }
 0x115   :  { %v6164_v20 = vadd.f32 %v582_v50, %v399_v2 }
 0x116   :  { %v4762_v24 = vpop.f32.mrf.mxu0  ;;  %v6166_v26 = vpop.f32.mrf.mxu1 }
 0x117   :  { %v6168_v29 = vadd.f32 %v4762_v24, %v414_v5 }
 0x118   :  { %v592_v31 = vpop.f32.mrf.mxu0  ;;  %v6170_v35 = vpop.f32.mrf.mxu1 }
 0x119   :  { %v6172_v38 = vadd.f32 %v592_v31, %v409_v8 }
 0x11a   :  { %v6174_v42 = vpop.f32.mrf.mxu0  ;;  %v6176_v51 = vpop.f32.mrf.mxu1 }
 0x11c   :  { %v6178_v52 = vpop.f32.mrf.mxu0 }
 0x11d   :  { %v6180_v53 = vpop.f32.mrf.mxu1 }
 0x11f   :  { %v6182_v54 = vpop.f32.mrf.mxu1  ;;  %v4814_v45 = vpop.f32.mrf.mxu0 }
 0x120   :  { %v1004_v55 = vadd.f32 %v4814_v45, %v808_v19 }
 0x121   :  { %v944_v56 = vpop.f32.mrf.mxu0 }
 0x122   :  { %v1003_v57 = vadd.f32 %v944_v56, %v807_v27  ;;  %v4846_v58 = vpop.f32.mrf.mxu1 }
 0x123   :  { %v4817_v59 = vpop.f32.mrf.mxu0 }
 0x124   :  { %v1140_v60 = vpop.f32.mrf.mxu1  ;;  %v1006_v61 = vadd.f32 %v4817_v59, %v810_v33 }
 0x125   :  { %v954_v62 = vpop.f32.mrf.mxu0  ;;  %v1199_v31 = vadd.f32 %v1140_v60, %v1003_v57  ;;  %v813_v57 = vadd.f32 %v6166_v26, %v6164_v20  ;;  %v816_v20 = vadd.f32 %v6170_v35, %v6168_v29  ;;  %v815_v26 = vadd.f32 %v6176_v51, %v6172_v38 }
 0x126   :  { %v4849_v63 = vpop.f32.mrf.mxu1  ;;  %v1005_v0 = vadd.f32 %v954_v62, %v809_v39 }
 0x127   :  { %v4820_v1 = vpop.f32.mrf.mxu0  ;;  %v1202_v59 = vadd.f32 %v4849_v63, %v1006_v61 }
 0x128   :  { %v1150_v2 = vpop.f32.mrf.mxu1  ;;  %v1008_v3 = vadd.f32 %v4820_v1, %v812_v44 }
 0x129   :  { %v964_v4 = vpop.f32.mrf.mxu0  ;;  %v1201_v60 = vadd.f32 %v1150_v2, %v1005_v0 }
 0x12a   :  { %v4852_v5 = vpop.f32.mrf.mxu1  ;;  %v1007_v6 = vadd.f32 %v964_v4, %v811_v49  ;;  %v1200_v49 = vadd.f32 %v4846_v58, %v1004_v55  ;;  %v424_v4 = vadd.f32 %v6150_v10, %v6148_v9  ;;  %v814_v55 = vadd.f32 %v6162_v17, %v6160_v48 }
 0x12c   :  { %v4823_v7 = vpop.f32.mrf.mxu0  ;;  %v1160_v8 = vpop.f32.mrf.mxu1  ;;  %v622_v63 = vadd.f32 %v6174_v42, %v424_v4 }
 0x12d   :  { %v1010_v9 = vadd.f32 %v4823_v7, %v814_v55  ;;  %v1203_v2 = vadd.f32 %v1160_v8, %v1007_v6 }
 0x12e   :  { %v974_v12 = vpop.f32.mrf.mxu0  ;;  %v6184_v14 = vpop.f32.mrf.mxu1 }
 0x12f   :  { %v1009_v42 = vadd.f32 %v974_v12, %v813_v57 }
 0x130   :  { %v6186_v15 = vpop.f32.mrf.mxu0  ;;  %v6188_v16 = vpop.f32.mrf.mxu1 }
 0x131   :  { %v1012_v29 = vadd.f32 %v6186_v15, %v816_v20  ;;  %v1205_v8 = vadd.f32 %v6188_v16, %v1009_v42 }
 0x132   :  { %v6190_v18 = vpop.f32.mrf.mxu0  ;;  %v6192_v19 = vpop.f32.mrf.mxu1 }
 0x134   :  { %v6194_v21 = vpop.f32.mrf.mxu0  ;;  %v6196_v22 = vpop.f32.mrf.mxu1 }
 0x136   :  { %v6198_v23 = vpop.f32.mrf.mxu0 }
 0x137   :  { %v6200_v25 = vpop.f32.mrf.mxu1 }
 0x139   :  { %v6202_v27 = vpop.f32.mrf.mxu1  ;;  %v4878_v28 = vpop.f32.mrf.mxu0 }
 0x13a   :  { %6760 = vst [vmem:[#allocation11_spill] sm:$0xff] %v6202_v27  ;;  %v1396_v45 = vadd.f32 %v4878_v28, %v1200_v49  ;;  %v419_v27 = vadd.f32 %v6154_v13, %v6152_v11  ;;  %v1204_v49 = vadd.f32 %v4852_v5, %v1008_v3  ;;  %v6227_v11 = vld [vmem:[%s6753_s2] ss:$0 sm:$0xff] }
 0x13b   :  { %v1336_v30 = vpop.f32.mrf.mxu0 }
 0x13c   :  { %v4910_v32 = vpop.f32.mrf.mxu1  ;;  %v1395_v62 = vadd.f32 %v1336_v30, %v1199_v31  ;;  %v621_v30 = vadd.f32 %v6178_v52, %v419_v27  ;;  %v818_v27 = vadd.f32 %v6180_v53, %v622_v63 }
 0x13d   :  { %v4881_v33 = vpop.f32.mrf.mxu0  ;;  %v1592_v28 = vadd.f32 %v4910_v32, %v1396_v45 }
 0x13e   :  { %v1532_v34 = vpop.f32.mrf.mxu1  ;;  %v1398_v61 = vadd.f32 %v4881_v33, %v1202_v59  ;;  %v817_v32 = vadd.f32 %v6182_v54, %v621_v30  ;;  %v1206_v33 = vadd.f32 %v6184_v14, %v1010_v9 }
 0x13f   :  { %v1346_v36 = vpop.f32.mrf.mxu0  ;;  %v1591_v13 = vadd.f32 %v1532_v34, %v1395_v62 }
 0x140   :  { %v4913_v37 = vpop.f32.mrf.mxu1  ;;  %v1397_v48 = vadd.f32 %v1346_v36, %v1201_v60  ;;  %v1011_v36 = vadd.f32 %v6190_v18, %v815_v26  ;;  %v1013_v59 = vadd.f32 %v6198_v23, %v817_v32 }
 0x141   :  { %v4884_v39 = vpop.f32.mrf.mxu0  ;;  %v1594_v3 = vadd.f32 %v4913_v37, %v1398_v61  ;;  %v6761_v30 = vld [vmem:[#allocation11_spill] sm:$0xff] }
 0x142   :  { %v1542_v40 = vpop.f32.mrf.mxu1  ;;  %v1400_v52 = vadd.f32 %v4884_v39, %v1204_v49  ;;  %v1209_v49 = vadd.f32 %v6761_v30, %v1013_v59 }
 0x143   :  { %v1356_v41 = vpop.f32.mrf.mxu0  ;;  %v1593_v34 = vadd.f32 %v1542_v40, %v1397_v48  ;;  %v1208_v40 = vadd.f32 %v6192_v19, %v1012_v29 }
 0x144   :  { %v4916_v44 = vpop.f32.mrf.mxu1  ;;  %v1399_v38 = vadd.f32 %v1356_v41, %v1203_v2  ;;  %v1014_v41 = vadd.f32 %v6194_v21, %v818_v27 }
 0x145   :  { %v1596_v37 = vadd.f32 %v4916_v44, %v1400_v52 }
 0x146   :  { %v4887_v43 = vpop.f32.mrf.mxu0  ;;  %v1552_v50 = vpop.f32.mrf.mxu1 }
 0x147   :  { %v1402_v54 = vadd.f32 %v4887_v43, %v1206_v33  ;;  %v1595_v4 = vadd.f32 %v1552_v50, %v1399_v38  ;;  %v1207_v43 = vadd.f32 %v6196_v22, %v1011_v36  ;;  %v1210_v50 = vadd.f32 %v6200_v25, %v1014_v41 }
 0x148   :  { %v1366_v46 = vpop.f32.mrf.mxu0  ;;  %v6210_v1 = vpop.f32.mrf.mxu1 }
 0x149   :  { %v1401_v62 = vadd.f32 %v1366_v46, %v1205_v8  ;;  %v1598_v21 = vadd.f32 %v6210_v1, %v1402_v54 }
 0x14a   :  { %v6204_v47 = vpop.f32.mrf.mxu0  ;;  %v1562_v17 = vpop.f32.mrf.mxu1 }
 0x14b   :  { %v1404_v60 = vadd.f32 %v6204_v47, %v1208_v40  ;;  %v1597_v9 = vadd.f32 %v1562_v17, %v1401_v62 }
 0x14c   :  { %v6206_v24 = vpop.f32.mrf.mxu0  ;;  %v4922_v51 = vpop.f32.mrf.mxu1 }
 0x14d   :  { %v1403_v47 = vadd.f32 %v6206_v24, %v1207_v43  ;;  %v1600_v1 = vadd.f32 %v4922_v51, %v1404_v60 }
 0x14e   :  { %v6208_v56 = vpop.f32.mrf.mxu0  ;;  %v1572_v18 = vpop.f32.mrf.mxu1 }
 0x14f   :  { %v1406_v25 = vadd.f32 %v6208_v56, %v1210_v50  ;;  %v1599_v32 = vadd.f32 %v1572_v18, %v1403_v47 }
 0x150   :  { %v6218_v58 = vpop.f32.mrf.mxu0 }
 0x152   :  { %v4942_v10 = vpop.f32.mrf.mxu0 }
 0x153   :  { %v1788_v31 = vadd.f32 %v4942_v10, %v1592_v28 }
 0x154   :  { %v1728_v0 = vpop.f32.mrf.mxu0 }
 0x155   :  { %v6234_v5 = vadd.f32 %v6227_v11, %v1788_v31  ;;  %v1787_v7 = vadd.f32 %v1728_v0, %v1591_v13  ;;  %v4925_v13 = vpop.f32.mrf.mxu1 }
 0x156   :  { %v4945_v35 = vpop.f32.mrf.mxu0  ;;  %v1602_v8 = vadd.f32 %v4925_v13, %v1406_v25  ;;  %v5633_v25 = vmov 0.0  }
 0x157   :  { %v1806_v12 = vadd.f32 %v6227_v11, %v1787_v7  ;;  %v1790_v6 = vadd.f32 %v4945_v35, %v1594_v3  ;;  %v1819_v53 = vmax.f32 %v6234_v5, 0.0  ;;  %v1405_v5 = vadd.f32 %v6218_v58, %v1209_v49  ;;  %v1582_v33 = vpop.f32.mrf.mxu1  ;;  %5016 = vmatprep.subr.mxu0 %v5633_v25  ;;  %5038 = vmatprep.mubr.msk.f32.mxu0 %vm5634_vm5, %v5633_v25 }
 0x158   :  { %v1738_v39 = vpop.f32.mrf.mxu0 }
 0x159   :  { %v1818_v45 = vmax.f32 %v1806_v12, 0.0  ;;  %v6245_v14 = vadd.f32 %v6227_v11, %v1790_v6  ;;  %v1789_v15 = vadd.f32 %v1738_v39, %v1593_v34  ;;  %v1844_v28 = vrot.slane %v1819_v53, 1 }
 0x15a   :  { %v4948_v16 = vpop.f32.mrf.mxu0  ;;  %v1601_v39 = vadd.f32 %v1582_v33, %v1405_v5  ;;  %v2064_v5 = vld [vmem:[#allocation5 + $0x98] sm:$0xff]  ;;  %v2049_v33 = vld [vmem:[#allocation5 + $0x28] sm:$0xff] }
 0x15b   :  { %v1843_v44 = vrot.slane %v1818_v45, 1  ;;  %v1808_v55 = vadd.f32 %v6227_v11, %v1789_v15  ;;  %v1792_v57 = vadd.f32 %v4948_v16, %v1596_v37  ;;  %v1821_v61 = vmax.f32 %v6245_v14, 0.0 }
 0x15c   :  { %v1748_v19 = vpop.f32.mrf.mxu0 }
 0x15d   :  { %v1820_v63 = vmax.f32 %v1808_v55, 0.0  ;;  %v1811_v23 = vadd.f32 %v6227_v11, %v1792_v57  ;;  %v1791_v46 = vadd.f32 %v1748_v19, %v1595_v4  ;;  %v1845_v22 = vsel %vm1842_vm3, %v1843_v44, %v1844_v28 }
 0x15e   :  { %v4951_v10 = vpop.f32.mrf.mxu0  ;;  %v1848_v26 = vrot.slane %v1821_v61, 1  ;;  %v6261_v0 = vmax.f32 %v1818_v45, %v1845_v22 }
 0x15f   :  { %v1846_v48 = vrot.slane %v1820_v63, 1  ;;  %v1810_v31 = vadd.f32 %v6227_v11, %v1791_v46  ;;  %v1794_v20 = vadd.f32 %v4951_v10, %v1598_v21  ;;  %v1823_v42 = vmax.f32 %v1811_v23, 0.0 }
 0x160   :  { %v1758_v52 = vpop.f32.mrf.mxu0 }
 0x161   :  { %v1822_v2 = vmax.f32 %v1810_v31, 0.0  ;;  %v1813_v17 = vadd.f32 %v6227_v11, %v1794_v20  ;;  %v1793_v3 = vadd.f32 %v1758_v52, %v1597_v9  ;;  %v1849_v7 = vsel %vm1842_vm3, %v1846_v48, %v1848_v26  ;;  %v1891_v31 = vld [vmem:[%s6754_s3 + $0x8] sm:$0xff]  ;;  %v1892_v20 = vld [vmem:[%s6754_s3 + $0x10] sm:$0xff] }
 0x162   :  { %v4954_v24 = vpop.f32.mrf.mxu0  ;;  %v1847_v27 = vsel %vm1842_vm3, %v1844_v28, %v1846_v48  ;;  %v1852_v38 = vrot.slane %v1823_v42, 1  ;;  %v1880_v12 = vmax.f32 %v1820_v63, %v1849_v7  ;;  %v2054_v52 = vld [vmem:[#allocation5 + $0x50] sm:$0x7] }
 0x163   :  { %v1850_v29 = vrot.slane %v1822_v2, 1  ;;  %v1812_v35 = vadd.f32 %v6227_v11, %v1793_v3  ;;  %v1796_v34 = vadd.f32 %v4954_v24, %v1600_v1  ;;  %v1825_v51 = vmax.f32 %v1813_v17, 0.0  ;;  %v1893_v1 = vld [vmem:[%s6754_s3 + $0x18] sm:$0xff]  ;;  %5017 = vmatpush3.msk.msra.mxu0 %vm1915_vm4, %v2054_v52  ;;  %v2051_v24 = vld [vmem:[#allocation5 + $0x38] sm:$0xff]  ;;  %v2063_v7 = vld [vmem:[#allocation5 + $0x90] sm:$0xff] }
 0x164   :  { %v1768_v56 = vpop.f32.mrf.mxu0  ;;  %v1879_v6 = vmax.f32 %v1819_v53, %v1847_v27  ;;  %v2065_v17 = vld [vmem:[#allocation5 + $0xa0] sm:$0xff]  ;;  %5018 = vmatprep.subr.mxu0 %v5633_v25  ;;  %v2050_v27 = vld [vmem:[#allocation5 + $0x30] sm:$0xff]  ;;  %v2494_v52 = vld [vmem:[#allocation5 + $0x1e8] sm:$0xff] }
 0x165   :  { %v1824_v36 = vmax.f32 %v1812_v35, 0.0  ;;  %v1815_v58 = vadd.f32 %v6227_v11, %v1796_v34  ;;  %v1795_v37 = vadd.f32 %v1768_v56, %v1599_v32  ;;  %v1853_v45 = vsel %vm1842_vm3, %v1850_v29, %v1852_v38  ;;  %v2052_v3 = vld [vmem:[#allocation5 + $0x40] sm:$0xff]  ;;  %v2062_v32 = vld [vmem:[#allocation5 + $0x88] sm:$0xff]  ;;  %v2060_v34 = vld [vmem:[#allocation5 + $0x78] sm:$0xff] }
 0x166   :  { %v4957_v54 = vpop.f32.mrf.mxu0  ;;  %v1851_v14 = vsel %vm1842_vm3, %v1848_v26, %v1850_v29  ;;  %v1856_v62 = vrot.slane %v1825_v51, 1  ;;  %v1882_v4 = vmax.f32 %v1822_v2, %v1853_v45  ;;  %v1894_v26 = vld [vmem:[%s6754_s3 + $0x20] sm:$0xff]  ;;  %v2061_v29 = vld [vmem:[#allocation5 + $0x80] sm:$0xff]  ;;  %v2046_v56 = vld [vmem:[#allocation5 + $0x10] sm:$0xff] }
 0x167   :  { %v1854_v15 = vrot.slane %v1824_v36, 1  ;;  %v1827_v40 = vmax.f32 %v1815_v58, 0.0  ;;  %v1814_v41 = vadd.f32 %v6227_v11, %v1795_v37  ;;  %v1798_v59 = vadd.f32 %v4957_v54, %v1602_v8  ;;  %v2053_v2 = vld [vmem:[#allocation5 + $0x48] sm:$0xff]  ;;  %v2048_v35 = vld [vmem:[#allocation5 + $0x20] sm:$0xff]  ;;  %v2056_v58 = vld [vmem:[#allocation5 + $0x58] sm:$0xff] }
 0x168   :  { %v1778_v16 = vpop.f32.mrf.mxu0  ;;  %v1881_v53 = vmax.f32 %v1821_v61, %v1851_v14  ;;  %5019 = vmatpush3.msra.mxu0 %v2053_v2  ;;  %v2057_v8 = vld [vmem:[#allocation5 + $0x60] sm:$0xff] }
 0x169   :  { %v1826_v18 = vmax.f32 %v1814_v41, 0.0  ;;  %v1817_v44 = vadd.f32 %v6227_v11, %v1798_v59  ;;  %v1797_v55 = vadd.f32 %v1778_v16, %v1601_v39  ;;  %v1860_v57 = vrot.slane %v1827_v40, 1  ;;  %5020 = vmatprep.subr.mxu0 %v5633_v25  ;;  %v2320_v59 = vld [vmem:[#allocation5 + $0x158] sm:$0x7]  ;;  %v2231_v16 = vld [vmem:[#allocation5 + $0x100] sm:$0x7] }
 0x16a   :  { %v1857_v43 = vsel %vm1842_vm3, %v1854_v15, %v1856_v62  ;;  %v1855_v60 = vsel %vm1842_vm3, %v1852_v38, %v1854_v15  ;;  %5021 = vmatpush3.msra.mxu0 %v2052_v3  ;;  %v2047_v38 = vld [vmem:[#allocation5 + $0x18] sm:$0xff]  ;;  %v2493_v2 = vld [vmem:[#allocation5 + $0x1e0] sm:$0xff] }
 0x16b   :  { %v1858_v28 = vrot.slane %v1826_v18, 1  ;;  %v1829_v19 = vmax.f32 %v1817_v44, 0.0  ;;  %v1816_v21 = vadd.f32 %v6227_v11, %v1797_v55  ;;  %v1884_v63 = vmax.f32 %v1824_v36, %v1857_v43  ;;  %5022 = vmatprep.subr.mxu0 %v5633_v25  ;;  %v2044_v36 = vld [vmem:[#allocation5] sm:$0xff]  ;;  %v2229_v44 = vld [vmem:[#allocation5 + $0xf0] sm:$0xff]  ;;  %v2316_v43 = vld [vmem:[#allocation5 + $0x138] sm:$0xff] }
 0x16c   :  { %v1883_v23 = vmax.f32 %v1823_v42, %v1855_v60  ;;  %v1895_v42 = vld [vmem:[%s6754_s3 + $0x28] sm:$0x3]  ;;  %5023 = vmatpush3.msra.mxu0 %v2051_v24  ;;  %s5635_s3 = smov 127   ;;  %v2317_v55 = vld [vmem:[#allocation5 + $0x140] sm:$0xff]  ;;  %v2492_v3 = vld [vmem:[#allocation5 + $0x1d8] sm:$0xff] }
 0x16d   :  { %v1864_v46 = vrot.slane %v1829_v19, 1  ;;  %v1828_v50 = vmax.f32 %v1816_v21, 0.0  ;;  %v1861_v30 = vsel %vm1842_vm3, %v1858_v28, %v1860_v57  ;;  %v1859_v61 = vsel %vm1842_vm3, %v1856_v62, %v1858_v28  ;;  %5024 = vmatprep.subr.mxu0 %v5633_v25  ;;  %v2227_v60 = vld [vmem:[#allocation5 + $0xe0] sm:$0xff]  ;;  %v2315_v28 = vld [vmem:[#allocation5 + $0x130] sm:$0xff]  ;;  %v2314_v21 = vld [vmem:[#allocation5 + $0x128] sm:$0xff] }
 0x16e   :  { %v1886_v49 = vmax.f32 %v1826_v18, %v1861_v30  ;;  %v1885_v9 = vmax.f32 %v1825_v51, %v1859_v61  ;;  %5025 = vmatpush3.msra.mxu0 %v2050_v27  ;;  %v2059_v51 = vld [vmem:[#allocation5 + $0x70] sm:$0xff]  ;;  %v2318_v18 = vld [vmem:[#allocation5 + $0x148] sm:$0xff]  ;;  %v2223_v30 = vld [vmem:[#allocation5 + $0xc0] sm:$0xff] }
 0x16f   :  { %v1889_v10 = vmax.f32 %v1829_v19, %v1864_v46  ;;  %v1862_v22 = vrot.slane %v1828_v50, 1  ;;  %5026 = vmatprep.subr.mxu0 %v5633_v25  ;;  %v2226_v19 = vld [vmem:[#allocation5 + $0xd8] sm:$0xff]  ;;  %v2311_v61 = vld [vmem:[#allocation5 + $0x110] sm:$0xff] }
 0x170   :  { %5027 = vmatpush3.msra.mxu0 %v2049_v33  ;;  %v2491_v24 = vld [vmem:[#allocation5 + $0x1d0] sm:$0xff]  ;;  %v2402_v27 = vld [vmem:[#allocation5 + $0x178] sm:$0xff] }
 0x171   :  { %4958 = vmatprep.subr.msk.mxu1 %vm1915_vm4, %v1889_v10  ;;  %v1865_v47 = vsel %vm1842_vm3, %v1862_v22, %v1864_v46  ;;  %v1863_v13 = vsel %vm1842_vm3, %v1860_v57, %v1862_v22  ;;  %5028 = vmatprep.subr.mxu0 %v5633_v25  ;;  %v2228_v57 = vld [vmem:[#allocation5 + $0xe8] sm:$0xff]  ;;  %v2221_v22 = vld [vmem:[#allocation5 + $0xb0] sm:$0xff] }
 0x172   :  { %4959 = vmatpush3.msk.msra.mxu1 %vm1915_vm4, %v1889_v10  ;;  %v1888_v11 = vmax.f32 %v1828_v50, %v1865_v47  ;;  %v1887_v48 = vmax.f32 %v1827_v40, %v1863_v13  ;;  %5029 = vmatpush3.msra.mxu0 %v2048_v35  ;;  %v2224_v46 = vld [vmem:[#allocation5 + $0xc8] sm:$0xff]  ;;  %v2312_v50 = vld [vmem:[#allocation5 + $0x118] sm:$0xff]  ;;  %v2401_v33 = vld [vmem:[#allocation5 + $0x170] sm:$0xff] }
 0x173   :  { %5030 = vmatprep.subr.mxu0 %v5633_v25  ;;  %v2498_v47 = vld [vmem:[#allocation5 + $0x208] sm:$0x7]  ;;  %v2489_v35 = vld [vmem:[#allocation5 + $0x1c0] sm:$0xff] }
 0x174   :  { %4960 = vmatprep.subr.mxu1 %v1888_v11  ;;  %5031 = vmatpush3.msra.mxu0 %v2047_v38  ;;  %v2488_v38 = vld [vmem:[#allocation5 + $0x1b8] sm:$0xff] }
 0x175   :  { %4961 = vmatpush3.msra.mxu1 %v1888_v11  ;;  %5032 = vmatprep.subr.mxu0 %v5633_v25  ;;  %v2409_v11 = vld [vmem:[#allocation5 + $0x1b0] sm:$0x7] }
 0x176   :  { %4962 = vmatprep.subr.mxu1 %v1887_v48  ;;  %5033 = vmatpush3.msra.mxu0 %v2046_v56  ;;  %v2399_v56 = vld [vmem:[#allocation5 + $0x160] sm:$0xff] }
 0x177   :  { %4963 = vmatpush3.msra.mxu1 %v1887_v48  ;;  %5034 = vmatprep.subr.mxu0 %v5633_v25  ;;  %v2497_v48 = vld [vmem:[#allocation5 + $0x200] sm:$0xff] }
 0x178   :  { %4964 = vmatprep.subr.mxu1 %v1886_v49 }
 0x179   :  { %4965 = vmatpush3.msra.mxu1 %v1886_v49  ;;  %v2222_v49 = vld [vmem:[#allocation5 + $0xb8] sm:$0xff] }
 0x17a   :  { %4966 = vmatprep.subr.mxu1 %v1885_v9 }
 0x17b   :  { %4967 = vmatpush3.msra.mxu1 %v1885_v9  ;;  %v2310_v9 = vld [vmem:[#allocation5 + $0x108] sm:$0xff] }
 0x17c   :  { %4968 = vmatprep.subr.mxu1 %v1884_v63 }
 0x17d   :  { %4969 = vmatpush3.msra.mxu1 %v1884_v63  ;;  %v2225_v63 = vld [vmem:[#allocation5 + $0xd0] sm:$0xff] }
 0x17e   :  { %4970 = vmatprep.subr.mxu1 %v1883_v23 }
 0x17f   :  { %4971 = vmatpush3.msra.mxu1 %v1883_v23  ;;  %v2313_v23 = vld [vmem:[#allocation5 + $0x120] sm:$0xff] }
 0x180   :  { %4972 = vmatprep.subr.mxu1 %v1882_v4 }
 0x181   :  { %4973 = vmatpush3.msra.mxu1 %v1882_v4  ;;  %v2319_v4 = vld [vmem:[#allocation5 + $0x150] sm:$0xff] }
 0x182   :  { %4974 = vmatprep.subr.mxu1 %v1881_v53 }
 0x183   :  { %4975 = vmatpush3.msra.mxu1 %v1881_v53  ;;  %v2230_v53 = vld [vmem:[#allocation5 + $0xf8] sm:$0xff] }
 0x184   :  { %4976 = vmatprep.subr.mxu1 %v1880_v12 }
 0x185   :  { %4977 = vmatpush3.msra.mxu1 %v1880_v12  ;;  %v2058_v12 = vld [vmem:[#allocation5 + $0x68] sm:$0xff] }
 0x186   :  { %4978 = vmatprep.subr.mxu1 %v1879_v6 }
 0x187   :  { %4979 = vmatpush3.msra.mxu1 %v1879_v6  ;;  %v2045_v6 = vld [vmem:[#allocation5 + $0x8] sm:$0xff] }
 0x188   :  { %4980 = vmatprep.subr.mxu1 %v6261_v0  ;;  %5035 = vmatpush3.msra.mxu0 %v2045_v6  ;;  %v2587_v6 = vld [vmem:[#allocation5 + $0x260] sm:$0x7] }
 0x189   :  { %4981 = vmatpush3.msra.mxu1 %v6261_v0  ;;  %v2066_v0 = vld [vmem:[#allocation5 + $0xa8] sm:$0x7]  ;;  %5036 = vmatprep.subr.mxu0 %v5633_v25 }
 0x18a   :  { %4983 = vmatmul.mubr.msk.f32.vlgmr.msra.gmra.mxu1 %vm1896_vm2, %v1891_v31  ;;  %4991 = vmatprep.subr.mxu1 %v5633_v25  ;;  %v2408_v31 = vld [vmem:[#allocation5 + $0x1a8] sm:$0xff] }
 0x18b   :  { %4985 = vmatprep.mubr.msk.f32.mxu1 %vm1896_vm2, %v1892_v20  ;;  %4992 = vmatpush3.msk.msra.mxu1 %vm1915_vm4, %v2066_v0  ;;  %v2496_v20 = vld [vmem:[#allocation5 + $0x1f8] sm:$0xff]  ;;  %v2405_v0 = vld [vmem:[#allocation5 + $0x190] sm:$0xff] }
 0x18c   :  { %4993 = vmatprep.subr.mxu1 %v5633_v25  ;;  %5037 = vmatpush3.msra.mxu0 %v2044_v36  ;;  %v2586_v36 = vld [vmem:[#allocation5 + $0x258] sm:$0xff] }
 0x18d   :  { %4994 = vmatpush3.msra.mxu1 %v2065_v17  ;;  %5066 = vmatprep.subr.mxu0 %v5633_v25  ;;  %v2404_v17 = vld [vmem:[#allocation5 + $0x188] sm:$0xff] }
 0x18e   :  { %4986 = vmatmul.mubr.msk.f32.gmra.mxu1 %vm1896_vm2, %v1893_v1  ;;  %4995 = vmatprep.subr.mxu1 %v5633_v25  ;;  %v2407_v1 = vld [vmem:[#allocation5 + $0x1a0] sm:$0xff] }
 0x18f   :  { %4988 = vmatprep.mubr.msk.f32.mxu1 %vm1896_vm2, %v1894_v26  ;;  %4996 = vmatpush3.msra.mxu1 %v2064_v5  ;;  %v2495_v26 = vld [vmem:[#allocation5 + $0x1f0] sm:$0xff]  ;;  %v2403_v5 = vld [vmem:[#allocation5 + $0x180] sm:$0xff] }
 0x190   :  { %4997 = vmatprep.subr.mxu1 %v5633_v25 }
 0x191   :  { %4998 = vmatpush3.msra.mxu1 %v2063_v7 }
 0x192   :  { %4989 = vmatmul.mubr.msk.f32.gmra.mxu1 %vm1896_vm2, %v1895_v42  ;;  %4999 = vmatprep.subr.mxu1 %v5633_v25  ;;  %v2406_v42 = vld [vmem:[#allocation5 + $0x198] sm:$0xff] }
 0x193   :  { %5000 = vmatpush3.msra.mxu1 %v2062_v32  ;;  %5013 = vmatprep.mubr.msk.f32.mxu1 %vm5634_vm5, %v5633_v25  ;;  %v2490_v32 = vld [vmem:[#allocation5 + $0x1c8] sm:$0xff] }
 0x194   :  { %5001 = vmatprep.subr.mxu1 %v5633_v25 }
 0x195   :  { %5002 = vmatpush3.msra.mxu1 %v2061_v29 }
 0x196   :  { %5003 = vmatprep.subr.mxu1 %v5633_v25 }
 0x197   :  { %5004 = vmatpush3.msra.mxu1 %v2060_v34  ;;  %v2400_v34 = vld [vmem:[#allocation5 + $0x168] sm:$0xff] }
 0x198   :  { %5005 = vmatprep.subr.mxu1 %v5633_v25 }
 0x199   :  { %5006 = vmatpush3.msra.mxu1 %v2059_v51 }
 0x19a   :  { %5007 = vmatprep.subr.mxu1 %v5633_v25 }
 0x19b   :  { %5008 = vmatpush3.msra.mxu1 %v2058_v12  ;;  %v2676_v12 = vld [vmem:[#allocation5 + $0x2b8] sm:$0x7] }
 0x19c   :  { %5009 = vmatprep.subr.mxu1 %v5633_v25 }
 0x19d   :  { %5010 = vmatpush3.msra.mxu1 %v2057_v8  ;;  %v2675_v8 = vld [vmem:[#allocation5 + $0x2b0] sm:$0xff] }
 0x19e   :  { %5011 = vmatprep.subr.mxu1 %v5633_v25 }
 0x19f   :  { %5012 = vmatpush3.msra.mxu1 %v2056_v58  ;;  %v2674_v58 = vld [vmem:[#allocation5 + $0x2a8] sm:$0xff] }
 0x1a0   :  { %5041 = vmatprep.subr.mxu1 %v5633_v25 }
 0x24a   :  { %v6335_v37 = vpop.f32.mrf.mxu1 }
 0x24c   :  { %v1985_v39 = vpop.f32.mrf.mxu1 }
 0x24d   :  { %2020 = vrot.lane.b32.xlu0 %v1985_v39, %s5635_s3 }
 0x24e   :  { %v6337_v54 = vpop.f32.mrf.mxu1 }
 0x250   :  { %v6339_v45 = vpop.f32.mrf.mxu1 }
 0x251   :  { %2022 = vrot.lane.b32.xlu0 %v6335_v37, %s5635_s3  ;;  %2024 = vrot.lane.b32.xlu1 %v6339_v45, %s5635_s3 }
 0x252   :  { %v6343_v14 = vpop.f32.mrf.mxu1 }
 0x254   :  { %v6345_v15 = vpop.f32.mrf.mxu1 }
 0x255   :  { %2026 = vrot.lane.b32.xlu1 %v6337_v54, %s5635_s3  ;;  %2028 = vrot.lane.b32.xlu0 %v6345_v15, %s5635_s3 }
 0x259   :  { %2030 = vrot.lane.b32.xlu1 %v6343_v14, %s5635_s3 }
 0x2bf   :  { %v2021_v40 = vpop.permute.xlu0 %2020 }
 0x2c0   :  { %v6350_v41 = vmax.f32 %v1985_v39, %v2021_v40  ;;  %v2673_v39 = vld [vmem:[#allocation5 + $0x2a0] sm:$0xff]  ;;  %v2584_v40 = vld [vmem:[#allocation5 + $0x248] sm:$0xff] }
 0x2c2   :  { %v2068_v62 = vrot.slane %v6350_v41, 2  ;;  %5039 = vmatmul.mubr.msk.f32.vlgmr.msra.gmra.mxu0 %vm2069_vm6, %v6350_v41  ;;  %v2321_v10 = vrot.slane %v6350_v41, 6  ;;  %v2232_v13 = vrot.slane %v6350_v41, 4  ;;  %v2672_v41 = vld [vmem:[#allocation5 + $0x298] sm:$0xff] }
 0x2c3   :  { %5067 = vmatpush3.msk.msra.mxu0 %vm1915_vm4, %v2320_v59  ;;  %5088 = vmatprep.mubr.msk.f32.mxu0 %vm5634_vm5, %v5633_v25  ;;  %v2023_v7 = vpop.permute.xlu0 %2022  ;;  %v2583_v59 = vld [vmem:[#allocation5 + $0x240] sm:$0xff] }
 0x2c4   :  { %5068 = vmatprep.subr.mxu0 %v5633_v25  ;;  %5014 = vmatmul.mubr.msk.f32.vlgmr.msra.gmra.mxu1 %vm2069_vm6, %v2068_v62  ;;  %v6405_v29 = vmax.f32 %v6335_v37, %v2023_v7  ;;  %v2585_v37 = vld [vmem:[#allocation5 + $0x250] sm:$0xff]  ;;  %v2943_v7 = vld [vmem:[#allocation5 + $0x3c0] sm:$0x7] }
 0x2c5   :  { %5042 = vmatpush3.msk.msra.mxu1 %vm1915_vm4, %v2231_v16  ;;  %5069 = vmatpush3.msra.mxu0 %v2319_v4  ;;  %v2671_v62 = vld [vmem:[#allocation5 + $0x290] sm:$0xff]  ;;  %v2582_v16 = vld [vmem:[#allocation5 + $0x238] sm:$0xff]  ;;  %v2670_v4 = vld [vmem:[#allocation5 + $0x288] sm:$0xff] }
 0x2c6   :  { %5043 = vmatprep.subr.mxu1 %v5633_v25  ;;  %5070 = vmatprep.subr.mxu0 %v5633_v25  ;;  %v2499_v51 = vrot.slane %v6405_v29, 2 }
 0x2c7   :  { %5044 = vmatpush3.msra.mxu1 %v2230_v53  ;;  %5071 = vmatpush3.msra.mxu0 %v2318_v18  ;;  %v2581_v53 = vld [vmem:[#allocation5 + $0x230] sm:$0xff]  ;;  %v2669_v18 = vld [vmem:[#allocation5 + $0x280] sm:$0xff] }
 0x2c8   :  { %5045 = vmatprep.subr.mxu1 %v5633_v25  ;;  %5072 = vmatprep.subr.mxu0 %v5633_v25 }
 0x2c9   :  { %5046 = vmatpush3.msra.mxu1 %v2229_v44  ;;  %5073 = vmatpush3.msra.mxu0 %v2317_v55  ;;  %v2580_v44 = vld [vmem:[#allocation5 + $0x228] sm:$0xff]  ;;  %v2668_v55 = vld [vmem:[#allocation5 + $0x278] sm:$0xff] }
 0x2ca   :  { %5047 = vmatprep.subr.mxu1 %v5633_v25  ;;  %5074 = vmatprep.subr.mxu0 %v5633_v25 }
 0x2cb   :  { %5048 = vmatpush3.msra.mxu1 %v2228_v57  ;;  %5075 = vmatpush3.msra.mxu0 %v2316_v43  ;;  %v2579_v57 = vld [vmem:[#allocation5 + $0x220] sm:$0xff]  ;;  %v2667_v43 = vld [vmem:[#allocation5 + $0x270] sm:$0xff] }
 0x2cc   :  { %5049 = vmatprep.subr.mxu1 %v5633_v25  ;;  %5076 = vmatprep.subr.mxu0 %v5633_v25 }
 0x2cd   :  { %5050 = vmatpush3.msra.mxu1 %v2227_v60  ;;  %5077 = vmatpush3.msra.mxu0 %v2315_v28  ;;  %v2578_v60 = vld [vmem:[#allocation5 + $0x218] sm:$0xff]  ;;  %v2666_v28 = vld [vmem:[#allocation5 + $0x268] sm:$0xff] }
 0x2ce   :  { %5051 = vmatprep.subr.mxu1 %v5633_v25  ;;  %5078 = vmatprep.subr.mxu0 %v5633_v25 }
 0x2cf   :  { %5052 = vmatpush3.msra.mxu1 %v2226_v19  ;;  %5079 = vmatpush3.msra.mxu0 %v2314_v21  ;;  %v2677_v19 = vrot.slane %v6405_v29, 6  ;;  %v2577_v21 = vld [vmem:[#allocation5 + $0x210] sm:$0xff] }
 0x2d0   :  { %5053 = vmatprep.subr.mxu1 %v5633_v25  ;;  %5080 = vmatprep.subr.mxu0 %v5633_v25 }
 0x2d1   :  { %5054 = vmatpush3.msra.mxu1 %v2225_v63  ;;  %5081 = vmatpush3.msra.mxu0 %v2313_v23  ;;  %v2854_v63 = vld [vmem:[#allocation5 + $0x368] sm:$0x7]  ;;  %v2588_v23 = vrot.slane %v6405_v29, 4 }
 0x2d2   :  { %5055 = vmatprep.subr.mxu1 %v5633_v25  ;;  %5082 = vmatprep.subr.mxu0 %v5633_v25 }
 0x2d3   :  { %5056 = vmatpush3.msra.mxu1 %v2224_v46  ;;  %5083 = vmatpush3.msra.mxu0 %v2312_v50  ;;  %v2765_v46 = vld [vmem:[#allocation5 + $0x310] sm:$0x7]  ;;  %v2853_v50 = vld [vmem:[#allocation5 + $0x360] sm:$0xff] }
 0x2d4   :  { %5057 = vmatprep.subr.mxu1 %v5633_v25  ;;  %5084 = vmatprep.subr.mxu0 %v5633_v25 }
 0x2d5   :  { %5058 = vmatpush3.msra.mxu1 %v2223_v30  ;;  %5085 = vmatpush3.msra.mxu0 %v2311_v61  ;;  %v2764_v30 = vld [vmem:[#allocation5 + $0x308] sm:$0xff]  ;;  %v2852_v61 = vld [vmem:[#allocation5 + $0x358] sm:$0xff] }
 0x2d6   :  { %5059 = vmatprep.subr.mxu1 %v5633_v25  ;;  %5086 = vmatprep.subr.mxu0 %v5633_v25 }
 0x2d7   :  { %5060 = vmatpush3.msra.mxu1 %v2222_v49  ;;  %5087 = vmatpush3.msra.mxu0 %v2310_v9  ;;  %v2763_v49 = vld [vmem:[#allocation5 + $0x300] sm:$0xff]  ;;  %v2851_v9 = vld [vmem:[#allocation5 + $0x350] sm:$0xff] }
 0x2d8   :  { %5061 = vmatprep.subr.mxu1 %v5633_v25  ;;  %5089 = vmatmul.mubr.msk.f32.vlgmr.msra.gmra.mxu0 %vm2069_vm6, %v2321_v10  ;;  %v2762_v10 = vld [vmem:[#allocation5 + $0x2f8] sm:$0xff] }
 0x2d9   :  { %5116 = vmatprep.subr.mxu0 %v5633_v25  ;;  %5062 = vmatpush3.msra.mxu1 %v2221_v22  ;;  %v2850_v22 = vld [vmem:[#allocation5 + $0x348] sm:$0xff] }
 0x2da   :  { %5063 = vmatprep.mubr.msk.f32.mxu1 %vm5634_vm5, %v5633_v25  ;;  %5117 = vmatpush3.msk.msra.mxu0 %vm1915_vm4, %v2498_v47  ;;  %v2761_v47 = vld [vmem:[#allocation5 + $0x2f0] sm:$0xff] }
 0x2db   :  { %5064 = vmatmul.mubr.msk.f32.vlgmr.msra.gmra.mxu1 %vm2069_vm6, %v2232_v13  ;;  %5091 = vmatprep.subr.mxu1 %v5633_v25  ;;  %v2849_v13 = vld [vmem:[#allocation5 + $0x340] sm:$0xff] }
 0x2dc   :  { %5118 = vmatprep.subr.mxu0 %v5633_v25  ;;  %5092 = vmatpush3.msk.msra.mxu1 %vm1915_vm4, %v2409_v11  ;;  %v2760_v11 = vld [vmem:[#allocation5 + $0x2e8] sm:$0xff] }
 0x2dd   :  { %5119 = vmatpush3.msra.mxu0 %v2497_v48  ;;  %5093 = vmatprep.subr.mxu1 %v5633_v25  ;;  %v2848_v48 = vld [vmem:[#allocation5 + $0x338] sm:$0xff] }
 0x2de   :  { %5120 = vmatprep.subr.mxu0 %v5633_v25  ;;  %5094 = vmatpush3.msra.mxu1 %v2408_v31  ;;  %v2759_v31 = vld [vmem:[#allocation5 + $0x2e0] sm:$0xff] }
 0x2df   :  { %5121 = vmatpush3.msra.mxu0 %v2496_v20  ;;  %5095 = vmatprep.subr.mxu1 %v5633_v25  ;;  %v2847_v20 = vld [vmem:[#allocation5 + $0x330] sm:$0xff] }
 0x2e0   :  { %5122 = vmatprep.subr.mxu0 %v5633_v25  ;;  %5096 = vmatpush3.msra.mxu1 %v2407_v1  ;;  %v2025_v1 = vpop.permute.xlu1 %2024 }
 0x2e1   :  { %5123 = vmatpush3.msra.mxu0 %v2495_v26  ;;  %5097 = vmatprep.subr.mxu1 %v5633_v25  ;;  %v2758_v26 = vld [vmem:[#allocation5 + $0x2d8] sm:$0xff] }
 0x2e2   :  { %5124 = vmatprep.subr.mxu0 %v5633_v25  ;;  %5098 = vmatpush3.msra.mxu1 %v2406_v42  ;;  %v2846_v42 = vld [vmem:[#allocation5 + $0x328] sm:$0xff] }
 0x2e3   :  { %5125 = vmatpush3.msra.mxu0 %v2494_v52  ;;  %5099 = vmatprep.subr.mxu1 %v5633_v25  ;;  %v2757_v52 = vld [vmem:[#allocation5 + $0x2d0] sm:$0xff] }
 0x2e4   :  { %5126 = vmatprep.subr.mxu0 %v5633_v25  ;;  %5100 = vmatpush3.msra.mxu1 %v2405_v0  ;;  %v6472_v0 = vmax.f32 %v6339_v45, %v2025_v1  ;;  %v2755_v45 = vld [vmem:[#allocation5 + $0x2c0] sm:$0xff]  ;;  %v3387_v1 = vld [vmem:[#allocation5 + $0x570] sm:$0xff] }
 0x2e5   :  { %5127 = vmatpush3.msra.mxu0 %v2493_v2  ;;  %5101 = vmatprep.subr.mxu1 %v5633_v25  ;;  %v2845_v2 = vld [vmem:[#allocation5 + $0x320] sm:$0xff] }
 0x2e6   :  { %5128 = vmatprep.subr.mxu0 %v5633_v25  ;;  %5102 = vmatpush3.msra.mxu1 %v2404_v17  ;;  %v2756_v17 = vld [vmem:[#allocation5 + $0x2c8] sm:$0xff] }
 0x2e7   :  { %5129 = vmatpush3.msra.mxu0 %v2492_v3  ;;  %5103 = vmatprep.subr.mxu1 %v5633_v25  ;;  %v2844_v3 = vld [vmem:[#allocation5 + $0x318] sm:$0xff] }
 0x2e8   :  { %5130 = vmatprep.subr.mxu0 %v5633_v25  ;;  %5104 = vmatpush3.msra.mxu1 %v2403_v5  ;;  %v2855_v5 = vrot.slane %v6472_v0, 2 }
 0x2e9   :  { %5131 = vmatpush3.msra.mxu0 %v2491_v24  ;;  %5105 = vmatprep.subr.mxu1 %v5633_v25  ;;  %v3032_v24 = vld [vmem:[#allocation5 + $0x418] sm:$0x7] }
 0x2ea   :  { %5132 = vmatprep.subr.mxu0 %v5633_v25  ;;  %5106 = vmatpush3.msra.mxu1 %v2402_v27  ;;  %v3031_v27 = vld [vmem:[#allocation5 + $0x410] sm:$0xff] }
 0x2eb   :  { %5133 = vmatpush3.msra.mxu0 %v2490_v32  ;;  %5107 = vmatprep.subr.mxu1 %v5633_v25  ;;  %v2942_v32 = vld [vmem:[#allocation5 + $0x3b8] sm:$0xff] }
 0x2ec   :  { %5134 = vmatprep.subr.mxu0 %v5633_v25  ;;  %5108 = vmatpush3.msra.mxu1 %v2401_v33  ;;  %v3030_v33 = vld [vmem:[#allocation5 + $0x408] sm:$0xff] }
 0x2ed   :  { %5135 = vmatpush3.msra.mxu0 %v2489_v35  ;;  %5109 = vmatprep.subr.mxu1 %v5633_v25  ;;  %v3029_v35 = vld [vmem:[#allocation5 + $0x400] sm:$0xff] }
 0x2ee   :  { %5136 = vmatprep.subr.mxu0 %v5633_v25  ;;  %5110 = vmatpush3.msra.mxu1 %v2400_v34  ;;  %v2940_v34 = vld [vmem:[#allocation5 + $0x3a8] sm:$0xff] }
 0x2ef   :  { %5137 = vmatpush3.msra.mxu0 %v2488_v38  ;;  %5138 = vmatprep.mubr.msk.f32.mxu0 %vm5634_vm5, %v5633_v25  ;;  %v3028_v38 = vld [vmem:[#allocation5 + $0x3f8] sm:$0xff] }
 0x2f0   :  { %5111 = vmatprep.subr.mxu1 %v5633_v25  ;;  %5139 = vmatmul.mubr.msk.f32.vlgmr.msra.gmra.mxu0 %vm2069_vm6, %v2499_v51  ;;  %v2939_v51 = vld [vmem:[#allocation5 + $0x3a0] sm:$0xff] }
 0x2f1   :  { %5166 = vmatprep.subr.mxu0 %v5633_v25  ;;  %5112 = vmatpush3.msra.mxu1 %v2399_v56  ;;  %v3027_v56 = vld [vmem:[#allocation5 + $0x3f0] sm:$0xff] }
 0x2f2   :  { %5113 = vmatprep.mubr.msk.f32.mxu1 %vm5634_vm5, %v5633_v25  ;;  %5167 = vmatpush3.msk.msra.mxu0 %vm1915_vm4, %v2676_v12  ;;  %v2938_v12 = vld [vmem:[#allocation5 + $0x398] sm:$0xff] }
 0x2f3   :  { %5114 = vmatmul.mubr.msk.f32.vlgmr.msra.gmra.mxu1 %vm2069_vm6, %v6405_v29  ;;  %5141 = vmatprep.subr.mxu1 %v5633_v25  ;;  %v2941_v29 = vld [vmem:[#allocation5 + $0x3b0] sm:$0xff] }
 0x2f4   :  { %5168 = vmatprep.subr.mxu0 %v5633_v25  ;;  %5142 = vmatpush3.msk.msra.mxu1 %vm1915_vm4, %v2587_v6  ;;  %v3026_v6 = vld [vmem:[#allocation5 + $0x3e8] sm:$0xff] }
 0x2f5   :  { %5169 = vmatpush3.msra.mxu0 %v2675_v8  ;;  %5143 = vmatprep.subr.mxu1 %v5633_v25  ;;  %v2937_v8 = vld [vmem:[#allocation5 + $0x390] sm:$0xff] }
 0x2f6   :  { %5170 = vmatprep.subr.mxu0 %v5633_v25  ;;  %5144 = vmatpush3.msra.mxu1 %v2586_v36  ;;  %v3025_v36 = vld [vmem:[#allocation5 + $0x3e0] sm:$0xff] }
 0x2f7   :  { %5171 = vmatpush3.msra.mxu0 %v2674_v58  ;;  %5145 = vmatprep.subr.mxu1 %v5633_v25  ;;  %v2936_v58 = vld [vmem:[#allocation5 + $0x388] sm:$0xff] }
 0x2f8   :  { %5172 = vmatprep.subr.mxu0 %v5633_v25  ;;  %5146 = vmatpush3.msra.mxu1 %v2585_v37  ;;  %v3024_v37 = vld [vmem:[#allocation5 + $0x3d8] sm:$0xff] }
 0x2f9   :  { %5173 = vmatpush3.msra.mxu0 %v2673_v39  ;;  %5147 = vmatprep.subr.mxu1 %v5633_v25  ;;  %v2935_v39 = vld [vmem:[#allocation5 + $0x380] sm:$0xff] }
 0x2fa   :  { %5174 = vmatprep.subr.mxu0 %v5633_v25  ;;  %5148 = vmatpush3.msra.mxu1 %v2584_v40  ;;  %v3023_v40 = vld [vmem:[#allocation5 + $0x3d0] sm:$0xff] }
 0x2fb   :  { %5175 = vmatpush3.msra.mxu0 %v2672_v41  ;;  %5149 = vmatprep.subr.mxu1 %v5633_v25  ;;  %v2934_v41 = vld [vmem:[#allocation5 + $0x378] sm:$0xff] }
 0x2fc   :  { %5176 = vmatprep.subr.mxu0 %v5633_v25  ;;  %5150 = vmatpush3.msra.mxu1 %v2583_v59  ;;  %v3022_v59 = vld [vmem:[#allocation5 + $0x3c8] sm:$0xff] }
 0x2fd   :  { %5177 = vmatpush3.msra.mxu0 %v2671_v62  ;;  %5151 = vmatprep.subr.mxu1 %v5633_v25  ;;  %v3033_v62 = vrot.slane %v6472_v0, 6 }
 0x2fe   :  { %5178 = vmatprep.subr.mxu0 %v5633_v25  ;;  %5152 = vmatpush3.msra.mxu1 %v2582_v16  ;;  %v2933_v16 = vld [vmem:[#allocation5 + $0x370] sm:$0xff] }
 0x2ff   :  { %5179 = vmatpush3.msra.mxu0 %v2670_v4  ;;  %5153 = vmatprep.subr.mxu1 %v5633_v25  ;;  %v3210_v4 = vld [vmem:[#allocation5 + $0x4c8] sm:$0x7] }
 0x300   :  { %5180 = vmatprep.subr.mxu0 %v5633_v25  ;;  %5154 = vmatpush3.msra.mxu1 %v2581_v53  ;;  %v2944_v53 = vrot.slane %v6472_v0, 4 }
 0x301   :  { %5181 = vmatpush3.msra.mxu0 %v2669_v18  ;;  %5155 = vmatprep.subr.mxu1 %v5633_v25  ;;  %v3121_v18 = vld [vmem:[#allocation5 + $0x470] sm:$0x7] }
 0x302   :  { %5182 = vmatprep.subr.mxu0 %v5633_v25  ;;  %5156 = vmatpush3.msra.mxu1 %v2580_v44  ;;  %v3209_v44 = vld [vmem:[#allocation5 + $0x4c0] sm:$0xff] }
 0x303   :  { %5183 = vmatpush3.msra.mxu0 %v2668_v55  ;;  %5157 = vmatprep.subr.mxu1 %v5633_v25  ;;  %v3120_v55 = vld [vmem:[#allocation5 + $0x468] sm:$0xff] }
 0x304   :  { %5184 = vmatprep.subr.mxu0 %v5633_v25  ;;  %5158 = vmatpush3.msra.mxu1 %v2579_v57  ;;  %v3208_v57 = vld [vmem:[#allocation5 + $0x4b8] sm:$0xff] }
 0x305   :  { %5185 = vmatpush3.msra.mxu0 %v2667_v43  ;;  %5159 = vmatprep.subr.mxu1 %v5633_v25  ;;  %v3119_v43 = vld [vmem:[#allocation5 + $0x460] sm:$0xff] }
 0x306   :  { %5186 = vmatprep.subr.mxu0 %v5633_v25  ;;  %5160 = vmatpush3.msra.mxu1 %v2578_v60  ;;  %v3207_v60 = vld [vmem:[#allocation5 + $0x4b0] sm:$0xff] }
 0x307   :  { %5187 = vmatpush3.msra.mxu0 %v2666_v28  ;;  %5188 = vmatprep.mubr.msk.f32.mxu0 %vm5634_vm5, %v5633_v25  ;;  %v3118_v28 = vld [vmem:[#allocation5 + $0x458] sm:$0xff] }
 0x308   :  { %5161 = vmatprep.subr.mxu1 %v5633_v25  ;;  %5189 = vmatmul.mubr.msk.f32.vlgmr.msra.gmra.mxu0 %vm2069_vm6, %v2677_v19  ;;  %v3206_v19 = vld [vmem:[#allocation5 + $0x4a8] sm:$0xff] }
 0x309   :  { %5216 = vmatprep.subr.mxu0 %v5633_v25  ;;  %5162 = vmatpush3.msra.mxu1 %v2577_v21  ;;  %v3117_v21 = vld [vmem:[#allocation5 + $0x450] sm:$0xff] }
 0x30a   :  { %5163 = vmatprep.mubr.msk.f32.mxu1 %vm5634_vm5, %v5633_v25  ;;  %5217 = vmatpush3.msk.msra.mxu0 %vm1915_vm4, %v2854_v63  ;;  %v3205_v63 = vld [vmem:[#allocation5 + $0x4a0] sm:$0xff] }
 0x30b   :  { %5164 = vmatmul.mubr.msk.f32.vlgmr.msra.gmra.mxu1 %vm2069_vm6, %v2588_v23  ;;  %5191 = vmatprep.subr.mxu1 %v5633_v25  ;;  %v3116_v23 = vld [vmem:[#allocation5 + $0x448] sm:$0xff] }
 0x30c   :  { %5218 = vmatprep.subr.mxu0 %v5633_v25  ;;  %5192 = vmatpush3.msk.msra.mxu1 %vm1915_vm4, %v2765_v46  ;;  %v3204_v46 = vld [vmem:[#allocation5 + $0x498] sm:$0xff] }
 0x30d   :  { %5219 = vmatpush3.msra.mxu0 %v2853_v50  ;;  %5193 = vmatprep.subr.mxu1 %v5633_v25  ;;  %v3115_v50 = vld [vmem:[#allocation5 + $0x440] sm:$0xff] }
 0x30e   :  { %5220 = vmatprep.subr.mxu0 %v5633_v25  ;;  %5194 = vmatpush3.msra.mxu1 %v2764_v30  ;;  %v3203_v30 = vld [vmem:[#allocation5 + $0x490] sm:$0xff] }
 0x30f   :  { %5221 = vmatpush3.msra.mxu0 %v2852_v61  ;;  %5195 = vmatprep.subr.mxu1 %v5633_v25  ;;  %v2027_v61 = vpop.permute.xlu1 %2026 }
 0x310   :  { %5222 = vmatprep.subr.mxu0 %v5633_v25  ;;  %5196 = vmatpush3.msra.mxu1 %v2763_v49  ;;  %v3114_v49 = vld [vmem:[#allocation5 + $0x438] sm:$0xff] }
 0x311   :  { %5223 = vmatpush3.msra.mxu0 %v2851_v9  ;;  %5197 = vmatprep.subr.mxu1 %v5633_v25  ;;  %v3202_v9 = vld [vmem:[#allocation5 + $0x488] sm:$0xff] }
 0x312   :  { %5224 = vmatprep.subr.mxu0 %v5633_v25  ;;  %5198 = vmatpush3.msra.mxu1 %v2762_v10  ;;  %v3113_v10 = vld [vmem:[#allocation5 + $0x430] sm:$0xff] }
 0x313   :  { %5225 = vmatpush3.msra.mxu0 %v2850_v22  ;;  %5199 = vmatprep.subr.mxu1 %v5633_v25  ;;  %v6539_v22 = vmax.f32 %v6337_v54, %v2027_v61  ;;  %v3111_v54 = vld [vmem:[#allocation5 + $0x420] sm:$0xff] }
 0x314   :  { %5226 = vmatprep.subr.mxu0 %v5633_v25  ;;  %5200 = vmatpush3.msra.mxu1 %v2761_v47  ;;  %v3201_v47 = vld [vmem:[#allocation5 + $0x480] sm:$0xff] }
 0x315   :  { %5227 = vmatpush3.msra.mxu0 %v2849_v13  ;;  %5201 = vmatprep.subr.mxu1 %v5633_v25  ;;  %v3112_v13 = vld [vmem:[#allocation5 + $0x428] sm:$0xff] }
 0x316   :  { %5228 = vmatprep.subr.mxu0 %v5633_v25  ;;  %5202 = vmatpush3.msra.mxu1 %v2760_v11  ;;  %v3200_v11 = vld [vmem:[#allocation5 + $0x478] sm:$0xff] }
 0x317   :  { %5229 = vmatpush3.msra.mxu0 %v2848_v48  ;;  %5203 = vmatprep.subr.mxu1 %v5633_v25  ;;  %v3211_v48 = vrot.slane %v6539_v22, 2 }
 0x318   :  { %5230 = vmatprep.subr.mxu0 %v5633_v25  ;;  %5204 = vmatpush3.msra.mxu1 %v2759_v31  ;;  %v3388_v31 = vld [vmem:[#allocation5 + $0x578] sm:$0x7] }
 0x319   :  { %5231 = vmatpush3.msra.mxu0 %v2847_v20  ;;  %5205 = vmatprep.subr.mxu1 %v5633_v25  ;;  %v3299_v20 = vld [vmem:[#allocation5 + $0x520] sm:$0x7] }
 0x31a   :  { %5232 = vmatprep.subr.mxu0 %v5633_v25  ;;  %5206 = vmatpush3.msra.mxu1 %v2758_v26  ;;  %v3298_v26 = vld [vmem:[#allocation5 + $0x518] sm:$0xff] }
 0x31b   :  { %5233 = vmatpush3.msra.mxu0 %v2846_v42  ;;  %5207 = vmatprep.subr.mxu1 %v5633_v25  ;;  %v3386_v42 = vld [vmem:[#allocation5 + $0x568] sm:$0xff] }
 0x31c   :  { %5234 = vmatprep.subr.mxu0 %v5633_v25  ;;  %5208 = vmatpush3.msra.mxu1 %v2757_v52  ;;  %v3297_v52 = vld [vmem:[#allocation5 + $0x510] sm:$0xff] }
 0x31d   :  { %5235 = vmatpush3.msra.mxu0 %v2845_v2  ;;  %5209 = vmatprep.subr.mxu1 %v5633_v25  ;;  %v3296_v2 = vld [vmem:[#allocation5 + $0x508] sm:$0xff] }
 0x31e   :  { %5236 = vmatprep.subr.mxu0 %v5633_v25  ;;  %5210 = vmatpush3.msra.mxu1 %v2756_v17  ;;  %v3384_v17 = vld [vmem:[#allocation5 + $0x558] sm:$0xff] }
 0x31f   :  { %5237 = vmatpush3.msra.mxu0 %v2844_v3  ;;  %5238 = vmatprep.mubr.msk.f32.mxu0 %vm5634_vm5, %v5633_v25  ;;  %v3295_v3 = vld [vmem:[#allocation5 + $0x500] sm:$0xff] }
 0x320   :  { %5211 = vmatprep.subr.mxu1 %v5633_v25  ;;  %5239 = vmatmul.mubr.msk.f32.vlgmr.msra.gmra.mxu0 %vm2069_vm6, %v2855_v5  ;;  %v3383_v5 = vld [vmem:[#allocation5 + $0x550] sm:$0xff] }
 0x321   :  { %5266 = vmatprep.subr.mxu0 %v5633_v25  ;;  %5212 = vmatpush3.msra.mxu1 %v2755_v45  ;;  %v3294_v45 = vld [vmem:[#allocation5 + $0x4f8] sm:$0xff] }
 0x322   :  { %5213 = vmatprep.mubr.msk.f32.mxu1 %vm5634_vm5, %v5633_v25  ;;  %5267 = vmatpush3.msk.msra.mxu0 %vm1915_vm4, %v3032_v24  ;;  %v3382_v24 = vld [vmem:[#allocation5 + $0x548] sm:$0xff] }
 0x323   :  { %5214 = vmatmul.mubr.msk.f32.vlgmr.msra.gmra.mxu1 %vm2069_vm6, %v6472_v0  ;;  %5241 = vmatprep.subr.mxu1 %v5633_v25  ;;  %v3385_v0 = vld [vmem:[#allocation5 + $0x560] sm:$0xff] }
 0x324   :  { %5268 = vmatprep.subr.mxu0 %v5633_v25  ;;  %5242 = vmatpush3.msk.msra.mxu1 %vm1915_vm4, %v2943_v7  ;;  %v3293_v7 = vld [vmem:[#allocation5 + $0x4f0] sm:$0xff] }
 0x325   :  { %5269 = vmatpush3.msra.mxu0 %v3031_v27  ;;  %5243 = vmatprep.subr.mxu1 %v5633_v25  ;;  %v3381_v27 = vld [vmem:[#allocation5 + $0x540] sm:$0xff] }
 0x326   :  { %5270 = vmatprep.subr.mxu0 %v5633_v25  ;;  %5244 = vmatpush3.msra.mxu1 %v2942_v32  ;;  %v3292_v32 = vld [vmem:[#allocation5 + $0x4e8] sm:$0xff] }
 0x327   :  { %5271 = vmatpush3.msra.mxu0 %v3030_v33  ;;  %5245 = vmatprep.subr.mxu1 %v5633_v25  ;;  %v3380_v33 = vld [vmem:[#allocation5 + $0x538] sm:$0xff] }
 0x328   :  { %5272 = vmatprep.subr.mxu0 %v5633_v25  ;;  %5246 = vmatpush3.msra.mxu1 %v2941_v29  ;;  %v3291_v29 = vld [vmem:[#allocation5 + $0x4e0] sm:$0xff] }
 0x329   :  { %5273 = vmatpush3.msra.mxu0 %v3029_v35  ;;  %5247 = vmatprep.subr.mxu1 %v5633_v25  ;;  %v3379_v35 = vld [vmem:[#allocation5 + $0x530] sm:$0xff] }
 0x32a   :  { %5274 = vmatprep.subr.mxu0 %v5633_v25  ;;  %5248 = vmatpush3.msra.mxu1 %v2940_v34  ;;  %v3290_v34 = vld [vmem:[#allocation5 + $0x4d8] sm:$0xff] }
 0x32b   :  { %5275 = vmatpush3.msra.mxu0 %v3028_v38  ;;  %5249 = vmatprep.subr.mxu1 %v5633_v25  ;;  %v3378_v38 = vld [vmem:[#allocation5 + $0x528] sm:$0xff] }
 0x32c   :  { %5276 = vmatprep.subr.mxu0 %v5633_v25  ;;  %5250 = vmatpush3.msra.mxu1 %v2939_v51  ;;  %v3389_v51 = vrot.slane %v6539_v22, 6 }
 0x32d   :  { %5277 = vmatpush3.msra.mxu0 %v3027_v56  ;;  %5251 = vmatprep.subr.mxu1 %v5633_v25  ;;  %v3289_v56 = vld [vmem:[#allocation5 + $0x4d0] sm:$0xff] }
 0x32e   :  { %5278 = vmatprep.subr.mxu0 %v5633_v25  ;;  %5252 = vmatpush3.msra.mxu1 %v2938_v12  ;;  %v3566_v12 = vld [vmem:[#allocation5 + $0x628] sm:$0x7] }
 0x32f   :  { %5279 = vmatpush3.msra.mxu0 %v3026_v6  ;;  %5253 = vmatprep.subr.mxu1 %v5633_v25  ;;  %v3300_v6 = vrot.slane %v6539_v22, 4 }
 0x330   :  { %5280 = vmatprep.subr.mxu0 %v5633_v25  ;;  %5254 = vmatpush3.msra.mxu1 %v2937_v8  ;;  %v3477_v8 = vld [vmem:[#allocation5 + $0x5d0] sm:$0x7] }
 0x331   :  { %5281 = vmatpush3.msra.mxu0 %v3025_v36  ;;  %5255 = vmatprep.subr.mxu1 %v5633_v25  ;;  %v3565_v36 = vld [vmem:[#allocation5 + $0x620] sm:$0xff] }
 0x332   :  { %5282 = vmatprep.subr.mxu0 %v5633_v25  ;;  %5256 = vmatpush3.msra.mxu1 %v2936_v58  ;;  %v3476_v58 = vld [vmem:[#allocation5 + $0x5c8] sm:$0xff] }
 0x333   :  { %5283 = vmatpush3.msra.mxu0 %v3024_v37  ;;  %5257 = vmatprep.subr.mxu1 %v5633_v25  ;;  %v3564_v37 = vld [vmem:[#allocation5 + $0x618] sm:$0xff] }
 0x334   :  { %5284 = vmatprep.subr.mxu0 %v5633_v25  ;;  %5258 = vmatpush3.msra.mxu1 %v2935_v39  ;;  %v3475_v39 = vld [vmem:[#allocation5 + $0x5c0] sm:$0xff] }
 0x335   :  { %5285 = vmatpush3.msra.mxu0 %v3023_v40  ;;  %5259 = vmatprep.subr.mxu1 %v5633_v25  ;;  %v3563_v40 = vld [vmem:[#allocation5 + $0x610] sm:$0xff] }
 0x336   :  { %5286 = vmatprep.subr.mxu0 %v5633_v25  ;;  %5260 = vmatpush3.msra.mxu1 %v2934_v41  ;;  %v3474_v41 = vld [vmem:[#allocation5 + $0x5b8] sm:$0xff] }
 0x337   :  { %5287 = vmatpush3.msra.mxu0 %v3022_v59  ;;  %5288 = vmatprep.mubr.msk.f32.mxu0 %vm5634_vm5, %v5633_v25  ;;  %v3562_v59 = vld [vmem:[#allocation5 + $0x608] sm:$0xff] }
 0x338   :  { %5261 = vmatprep.subr.mxu1 %v5633_v25  ;;  %5289 = vmatmul.mubr.msk.f32.vlgmr.msra.gmra.mxu0 %vm2069_vm6, %v3033_v62  ;;  %v3473_v62 = vld [vmem:[#allocation5 + $0x5b0] sm:$0xff] }
 0x339   :  { %5316 = vmatprep.subr.mxu0 %v5633_v25  ;;  %5262 = vmatpush3.msra.mxu1 %v2933_v16  ;;  %v3561_v16 = vld [vmem:[#allocation5 + $0x600] sm:$0xff] }
 0x33a   :  { %5263 = vmatprep.mubr.msk.f32.mxu1 %vm5634_vm5, %v5633_v25  ;;  %5317 = vmatpush3.msk.msra.mxu0 %vm1915_vm4, %v3210_v4  ;;  %v3472_v4 = vld [vmem:[#allocation5 + $0x5a8] sm:$0xff] }
 0x33b   :  { %5264 = vmatmul.mubr.msk.f32.vlgmr.msra.gmra.mxu1 %vm2069_vm6, %v2944_v53  ;;  %5291 = vmatprep.subr.mxu1 %v5633_v25  ;;  %v3560_v53 = vld [vmem:[#allocation5 + $0x5f8] sm:$0xff] }
 0x33c   :  { %5318 = vmatprep.subr.mxu0 %v5633_v25  ;;  %5292 = vmatpush3.msk.msra.mxu1 %vm1915_vm4, %v3121_v18  ;;  %v3471_v18 = vld [vmem:[#allocation5 + $0x5a0] sm:$0xff] }
 0x33d   :  { %5319 = vmatpush3.msra.mxu0 %v3209_v44  ;;  %5293 = vmatprep.subr.mxu1 %v5633_v25  ;;  %v3559_v44 = vld [vmem:[#allocation5 + $0x5f0] sm:$0xff] }
 0x33e   :  { %5320 = vmatprep.subr.mxu0 %v5633_v25  ;;  %5294 = vmatpush3.msra.mxu1 %v3120_v55  ;;  %v2029_v55 = vpop.permute.xlu0 %2028 }
 0x33f   :  { %5321 = vmatpush3.msra.mxu0 %v3208_v57  ;;  %5295 = vmatprep.subr.mxu1 %v5633_v25  ;;  %v3470_v57 = vld [vmem:[#allocation5 + $0x598] sm:$0xff] }
 0x340   :  { %5322 = vmatprep.subr.mxu0 %v5633_v25  ;;  %5296 = vmatpush3.msra.mxu1 %v3119_v43  ;;  %v3558_v43 = vld [vmem:[#allocation5 + $0x5e8] sm:$0xff] }
 0x341   :  { %5323 = vmatpush3.msra.mxu0 %v3207_v60  ;;  %5297 = vmatprep.subr.mxu1 %v5633_v25  ;;  %v3469_v60 = vld [vmem:[#allocation5 + $0x590] sm:$0xff] }
 0x342   :  { %5324 = vmatprep.subr.mxu0 %v5633_v25  ;;  %5298 = vmatpush3.msra.mxu1 %v3118_v28  ;;  %v6606_v28 = vmax.f32 %v6345_v15, %v2029_v55  ;;  %v3467_v15 = vld [vmem:[#allocation5 + $0x580] sm:$0xff] }
 0x343   :  { %5325 = vmatpush3.msra.mxu0 %v3206_v19  ;;  %5299 = vmatprep.subr.mxu1 %v5633_v25  ;;  %v3557_v19 = vld [vmem:[#allocation5 + $0x5e0] sm:$0xff] }
 0x344   :  { %5326 = vmatprep.subr.mxu0 %v5633_v25  ;;  %5300 = vmatpush3.msra.mxu1 %v3117_v21  ;;  %v3468_v21 = vld [vmem:[#allocation5 + $0x588] sm:$0xff] }
 0x345   :  { %5327 = vmatpush3.msra.mxu0 %v3205_v63  ;;  %5301 = vmatprep.subr.mxu1 %v5633_v25  ;;  %v3556_v63 = vld [vmem:[#allocation5 + $0x5d8] sm:$0xff] }
 0x346   :  { %5328 = vmatprep.subr.mxu0 %v5633_v25  ;;  %5302 = vmatpush3.msra.mxu1 %v3116_v23  ;;  %v3567_v23 = vrot.slane %v6606_v28, 2 }
 0x347   :  { %5329 = vmatpush3.msra.mxu0 %v3204_v46  ;;  %5303 = vmatprep.subr.mxu1 %v5633_v25  ;;  %v3744_v46 = vld [vmem:[#allocation5 + $0x6d8] sm:$0x7] }
 0x348   :  { %5330 = vmatprep.subr.mxu0 %v5633_v25  ;;  %5304 = vmatpush3.msra.mxu1 %v3115_v50  ;;  %v3655_v50 = vld [vmem:[#allocation5 + $0x680] sm:$0x7] }
 0x349   :  { %5331 = vmatpush3.msra.mxu0 %v3203_v30  ;;  %5305 = vmatprep.subr.mxu1 %v5633_v25  ;;  %v3743_v30 = vld [vmem:[#allocation5 + $0x6d0] sm:$0xff] }
 0x34a   :  { %5332 = vmatprep.subr.mxu0 %v5633_v25  ;;  %5306 = vmatpush3.msra.mxu1 %v3114_v49  ;;  %v3654_v49 = vld [vmem:[#allocation5 + $0x678] sm:$0xff] }
 0x34b   :  { %5333 = vmatpush3.msra.mxu0 %v3202_v9  ;;  %5307 = vmatprep.subr.mxu1 %v5633_v25  ;;  %v3742_v9 = vld [vmem:[#allocation5 + $0x6c8] sm:$0xff] }
 0x34c   :  { %5334 = vmatprep.subr.mxu0 %v5633_v25  ;;  %5308 = vmatpush3.msra.mxu1 %v3113_v10 }
 0x34d   :  { %5335 = vmatpush3.msra.mxu0 %v3201_v47  ;;  %5309 = vmatprep.subr.mxu1 %v5633_v25  ;;  %v3653_v47 = vld [vmem:[#allocation5 + $0x670] sm:$0xff] }
 0x34e   :  { %5336 = vmatprep.subr.mxu0 %v5633_v25  ;;  %5310 = vmatpush3.msra.mxu1 %v3112_v13 }
 0x34f   :  { %5337 = vmatpush3.msra.mxu0 %v3200_v11  ;;  %5338 = vmatprep.mubr.msk.f32.mxu0 %vm5634_vm5, %v5633_v25  ;;  %v3741_v11 = vld [vmem:[#allocation5 + $0x6c0] sm:$0xff] }
 0x350   :  { %5311 = vmatprep.subr.mxu1 %v5633_v25  ;;  %5339 = vmatmul.mubr.msk.f32.vlgmr.msra.gmra.mxu0 %vm2069_vm6, %v3211_v48 }
 0x351   :  { %5366 = vmatprep.subr.mxu0 %v5633_v25  ;;  %5312 = vmatpush3.msra.mxu1 %v3111_v54  ;;  %v3652_v54 = vld [vmem:[#allocation5 + $0x668] sm:$0xff] }
 0x352   :  { %5313 = vmatprep.mubr.msk.f32.mxu1 %vm5634_vm5, %v5633_v25  ;;  %5367 = vmatpush3.msk.msra.mxu0 %vm1915_vm4, %v3388_v31  ;;  %v3740_v31 = vld [vmem:[#allocation5 + $0x6b8] sm:$0xff] }
 0x353   :  { %5314 = vmatmul.mubr.msk.f32.vlgmr.msra.gmra.mxu1 %vm2069_vm6, %v6539_v22  ;;  %5341 = vmatprep.subr.mxu1 %v5633_v25 }
 0x354   :  { %5368 = vmatprep.subr.mxu0 %v5633_v25  ;;  %5342 = vmatpush3.msk.msra.mxu1 %vm1915_vm4, %v3299_v20  ;;  %v3651_v20 = vld [vmem:[#allocation5 + $0x660] sm:$0xff] }
 0x355   :  { %5369 = vmatpush3.msra.mxu0 %v3387_v1  ;;  %5343 = vmatprep.subr.mxu1 %v5633_v25  ;;  %v3739_v1 = vld [vmem:[#allocation5 + $0x6b0] sm:$0xff] }
 0x356   :  { %5370 = vmatprep.subr.mxu0 %v5633_v25  ;;  %5344 = vmatpush3.msra.mxu1 %v3298_v26  ;;  %v3650_v26 = vld [vmem:[#allocation5 + $0x658] sm:$0xff] }
 0x357   :  { %5371 = vmatpush3.msra.mxu0 %v3386_v42  ;;  %5345 = vmatprep.subr.mxu1 %v5633_v25  ;;  %v3738_v42 = vld [vmem:[#allocation5 + $0x6a8] sm:$0xff] }
 0x358   :  { %5372 = vmatprep.subr.mxu0 %v5633_v25  ;;  %5346 = vmatpush3.msra.mxu1 %v3297_v52  ;;  %v3649_v52 = vld [vmem:[#allocation5 + $0x650] sm:$0xff] }
 0x359   :  { %5373 = vmatpush3.msra.mxu0 %v3385_v0  ;;  %5347 = vmatprep.subr.mxu1 %v5633_v25  ;;  %v3737_v0 = vld [vmem:[#allocation5 + $0x6a0] sm:$0xff] }
 0x35a   :  { %5374 = vmatprep.subr.mxu0 %v5633_v25  ;;  %5348 = vmatpush3.msra.mxu1 %v3296_v2  ;;  %v3648_v2 = vld [vmem:[#allocation5 + $0x648] sm:$0xff] }
 0x35b   :  { %5375 = vmatpush3.msra.mxu0 %v3384_v17  ;;  %5349 = vmatprep.subr.mxu1 %v5633_v25  ;;  %v3736_v17 = vld [vmem:[#allocation5 + $0x698] sm:$0xff] }
 0x35c   :  { %5376 = vmatprep.subr.mxu0 %v5633_v25  ;;  %5350 = vmatpush3.msra.mxu1 %v3295_v3  ;;  %v3647_v3 = vld [vmem:[#allocation5 + $0x640] sm:$0xff] }
 0x35d   :  { %5377 = vmatpush3.msra.mxu0 %v3383_v5  ;;  %5351 = vmatprep.subr.mxu1 %v5633_v25  ;;  %v3735_v5 = vld [vmem:[#allocation5 + $0x690] sm:$0xff] }
 0x35e   :  { %5378 = vmatprep.subr.mxu0 %v5633_v25  ;;  %5352 = vmatpush3.msra.mxu1 %v3294_v45  ;;  %v3646_v45 = vld [vmem:[#allocation5 + $0x638] sm:$0xff] }
 0x35f   :  { %5379 = vmatpush3.msra.mxu0 %v3382_v24  ;;  %5353 = vmatprep.subr.mxu1 %v5633_v25  ;;  %v3734_v24 = vld [vmem:[#allocation5 + $0x688] sm:$0xff] }
 0x360   :  { %5380 = vmatprep.subr.mxu0 %v5633_v25  ;;  %5354 = vmatpush3.msra.mxu1 %v3293_v7  ;;  %v3745_v7 = vrot.slane %v6606_v28, 6 }
 0x361   :  { %5381 = vmatpush3.msra.mxu0 %v3381_v27  ;;  %5355 = vmatprep.subr.mxu1 %v5633_v25  ;;  %v3645_v27 = vld [vmem:[#allocation5 + $0x630] sm:$0xff] }
 0x362   :  { %5382 = vmatprep.subr.mxu0 %v5633_v25  ;;  %5356 = vmatpush3.msra.mxu1 %v3292_v32  ;;  %v3656_v32 = vrot.slane %v6606_v28, 4 }
 0x363   :  { %5383 = vmatpush3.msra.mxu0 %v3380_v33  ;;  %5357 = vmatprep.subr.mxu1 %v5633_v25  ;;  %v3833_v33 = vld [vmem:[#allocation5 + $0x730] sm:$0x7] }
 0x364   :  { %5384 = vmatprep.subr.mxu0 %v5633_v25  ;;  %5358 = vmatpush3.msra.mxu1 %v3291_v29 }
 0x365   :  { %5385 = vmatpush3.msra.mxu0 %v3379_v35  ;;  %5359 = vmatprep.subr.mxu1 %v5633_v25  ;;  %v3832_v35 = vld [vmem:[#allocation5 + $0x728] sm:$0xff] }
 0x366   :  { %5386 = vmatprep.subr.mxu0 %v5633_v25  ;;  %5360 = vmatpush3.msra.mxu1 %v3290_v34 }
 0x367   :  { %5387 = vmatpush3.msra.mxu0 %v3378_v38  ;;  %5388 = vmatprep.mubr.msk.f32.mxu0 %vm5634_vm5, %v5633_v25 }
 0x368   :  { %5361 = vmatprep.subr.mxu1 %v5633_v25  ;;  %5389 = vmatmul.mubr.msk.f32.vlgmr.msra.gmra.mxu0 %vm2069_vm6, %v3389_v51  ;;  %v3831_v51 = vld [vmem:[#allocation5 + $0x720] sm:$0xff] }
 0x369   :  { %5416 = vmatprep.subr.mxu0 %v5633_v25  ;;  %5362 = vmatpush3.msra.mxu1 %v3289_v56 }
 0x36a   :  { %5363 = vmatprep.mubr.msk.f32.mxu1 %vm5634_vm5, %v5633_v25  ;;  %5417 = vmatpush3.msk.msra.mxu0 %vm1915_vm4, %v3566_v12 }
 0x36b   :  { %5364 = vmatmul.mubr.msk.f32.vlgmr.msra.gmra.mxu1 %vm2069_vm6, %v3300_v6  ;;  %5391 = vmatprep.subr.mxu1 %v5633_v25  ;;  %v3830_v6 = vld [vmem:[#allocation5 + $0x718] sm:$0xff] }
 0x36c   :  { %5418 = vmatprep.subr.mxu0 %v5633_v25  ;;  %5392 = vmatpush3.msk.msra.mxu1 %vm1915_vm4, %v3477_v8 }
 0x36d   :  { %5419 = vmatpush3.msra.mxu0 %v3565_v36  ;;  %5393 = vmatprep.subr.mxu1 %v5633_v25  ;;  %v3829_v36 = vld [vmem:[#allocation5 + $0x710] sm:$0xff] }
 0x36e   :  { %5420 = vmatprep.subr.mxu0 %v5633_v25  ;;  %5394 = vmatpush3.msra.mxu1 %v3476_v58  ;;  %v3828_v58 = vld [vmem:[#allocation5 + $0x708] sm:$0xff] }
 0x36f   :  { %5421 = vmatpush3.msra.mxu0 %v3564_v37  ;;  %5395 = vmatprep.subr.mxu1 %v5633_v25  ;;  %v3827_v37 = vld [vmem:[#allocation5 + $0x700] sm:$0xff] }
 0x370   :  { %5422 = vmatprep.subr.mxu0 %v5633_v25  ;;  %5396 = vmatpush3.msra.mxu1 %v3475_v39  ;;  %v3826_v39 = vld [vmem:[#allocation5 + $0x6f8] sm:$0xff] }
 0x371   :  { %5423 = vmatpush3.msra.mxu0 %v3563_v40  ;;  %5397 = vmatprep.subr.mxu1 %v5633_v25  ;;  %v3825_v40 = vld [vmem:[#allocation5 + $0x6f0] sm:$0xff] }
 0x372   :  { %5424 = vmatprep.subr.mxu0 %v5633_v25  ;;  %5398 = vmatpush3.msra.mxu1 %v3474_v41  ;;  %v3824_v41 = vld [vmem:[#allocation5 + $0x6e8] sm:$0xff] }
 0x373   :  { %5425 = vmatpush3.msra.mxu0 %v3562_v59  ;;  %5399 = vmatprep.subr.mxu1 %v5633_v25  ;;  %v2031_v59 = vpop.permute.xlu1 %2030 }
 0x374   :  { %5426 = vmatprep.subr.mxu0 %v5633_v25  ;;  %5400 = vmatpush3.msra.mxu1 %v3473_v62  ;;  %v3823_v62 = vld [vmem:[#allocation5 + $0x6e0] sm:$0xff] }
 0x375   :  { %5427 = vmatpush3.msra.mxu0 %v3561_v16  ;;  %5401 = vmatprep.subr.mxu1 %v5633_v25  ;;  %v2043_v16 = vmax.f32 %v6343_v14, %v2031_v59  ;;  %v3935_v14 = vld [vmem:[%s6757_s6 + $0x78] sm:$0xff] }
 0x376   :  { %5428 = vmatprep.subr.mxu0 %v5633_v25  ;;  %5402 = vmatpush3.msra.mxu1 %v3472_v4 }
 0x377   :  { %5429 = vmatpush3.msra.mxu0 %v3560_v53  ;;  %5403 = vmatprep.subr.mxu1 %v5633_v25 }
 0x378   :  { %5430 = vmatprep.subr.mxu0 %v5633_v25  ;;  %5404 = vmatpush3.msra.mxu1 %v3471_v18 }
 0x379   :  { %5431 = vmatpush3.msra.mxu0 %v3559_v44  ;;  %5405 = vmatprep.subr.mxu1 %v5633_v25 }
 0x37a   :  { %5432 = vmatprep.subr.mxu0 %v5633_v25  ;;  %5406 = vmatpush3.msra.mxu1 %v3470_v57 }
 0x37b   :  { %5433 = vmatpush3.msra.mxu0 %v3558_v43  ;;  %5407 = vmatprep.subr.mxu1 %v5633_v25 }
 0x37c   :  { %5434 = vmatprep.subr.mxu0 %v5633_v25  ;;  %5408 = vmatpush3.msra.mxu1 %v3469_v60 }
 0x37d   :  { %5435 = vmatpush3.msra.mxu0 %v3557_v19  ;;  %5409 = vmatprep.subr.mxu1 %v5633_v25 }
 0x37e   :  { %5436 = vmatprep.subr.mxu0 %v5633_v25  ;;  %5410 = vmatpush3.msra.mxu1 %v3468_v21 }
 0x37f   :  { %5437 = vmatpush3.msra.mxu0 %v3556_v63  ;;  %5438 = vmatprep.mubr.msk.f32.mxu0 %vm5634_vm5, %v5633_v25 }
 0x380   :  { %5411 = vmatprep.subr.mxu1 %v5633_v25  ;;  %5439 = vmatmul.mubr.msk.f32.vlgmr.msra.gmra.mxu0 %vm2069_vm6, %v3567_v23  ;;  %v3934_v23 = vld [vmem:[%s6757_s6 + $0x70] sm:$0xff] }
 0x381   :  { %5466 = vmatprep.subr.mxu0 %v5633_v25  ;;  %5412 = vmatpush3.msra.mxu1 %v3467_v15  ;;  %v3933_v15 = vld [vmem:[%s6757_s6 + $0x68] sm:$0xff] }
 0x382   :  { %5413 = vmatprep.mubr.msk.f32.mxu1 %vm5634_vm5, %v5633_v25  ;;  %5467 = vmatpush3.msk.msra.mxu0 %vm1915_vm4, %v3744_v46  ;;  %v2216_v61 = vpop.f32.mrf.mxu0  ;;  %v3932_v46 = vld [vmem:[%s6757_s6 + $0x60] sm:$0xff] }
 0x383   :  { %5414 = vmatmul.mubr.msk.f32.vlgmr.msra.gmra.mxu1 %vm2069_vm6, %v6606_v28  ;;  %5441 = vmatprep.subr.mxu1 %v5633_v25 }
 0x384   :  { %5468 = vmatprep.subr.mxu0 %v5633_v25  ;;  %5442 = vmatpush3.msk.msra.mxu1 %vm1915_vm4, %v3655_v50  ;;  %v2141_v10 = vpop.f32.mrf.mxu1  ;;  %v5040_v22 = vpop.f32.mrf.mxu0  ;;  %v3931_v50 = vld [vmem:[%s6757_s6 + $0x58] sm:$0xff] }
 0x385   :  { %5469 = vmatpush3.msra.mxu0 %v3743_v30  ;;  %5443 = vmatprep.subr.mxu1 %v5633_v25  ;;  %v6628_v13 = vadd.f32 %v2216_v61, %v2141_v10  ;;  %v3930_v30 = vld [vmem:[%s6757_s6 + $0x50] sm:$0xff]  ;;  %v3928_v22 = vld [vmem:[%s6757_s6 + $0x40] sm:$0xff] }
 0x386   :  { %5470 = vmatprep.subr.mxu0 %v5633_v25  ;;  %5444 = vmatpush3.msra.mxu1 %v3654_v49  ;;  %v5015_v48 = vpop.f32.mrf.mxu1  ;;  %v3929_v49 = vld [vmem:[%s6757_s6 + $0x48] sm:$0xff] }
 0x387   :  { %5471 = vmatpush3.msra.mxu0 %v3742_v9  ;;  %5445 = vmatprep.subr.mxu1 %v5633_v25 }
 0x388   :  { %5472 = vmatprep.subr.mxu0 %v5633_v25  ;;  %5446 = vmatpush3.msra.mxu1 %v3653_v47 }
 0x389   :  { %5473 = vmatpush3.msra.mxu0 %v3741_v11  ;;  %5447 = vmatprep.subr.mxu1 %v5633_v25  ;;  %v3927_v11 = vld [vmem:[%s6757_s6 + $0x38] sm:$0xff] }
 0x38a   :  { %5474 = vmatprep.subr.mxu0 %v5633_v25  ;;  %5448 = vmatpush3.msra.mxu1 %v3652_v54  ;;  %v3926_v54 = vld [vmem:[%s6757_s6 + $0x30] sm:$0xff] }
 0x38b   :  { %5475 = vmatpush3.msra.mxu0 %v3740_v31  ;;  %5449 = vmatprep.subr.mxu1 %v5633_v25  ;;  %v3925_v31 = vld [vmem:[%s6757_s6 + $0x28] sm:$0xff] }
 0x38c   :  { %5476 = vmatprep.subr.mxu0 %v5633_v25  ;;  %5450 = vmatpush3.msra.mxu1 %v3651_v20  ;;  %v3924_v20 = vld [vmem:[%s6757_s6 + $0x20] sm:$0xff] }
 0x38d   :  { %5477 = vmatpush3.msra.mxu0 %v3739_v1  ;;  %5451 = vmatprep.subr.mxu1 %v5633_v25  ;;  %v3923_v1 = vld [vmem:[%s6757_s6 + $0x18] sm:$0xff] }
 0x38e   :  { %5478 = vmatprep.subr.mxu0 %v5633_v25  ;;  %5452 = vmatpush3.msra.mxu1 %v3650_v26  ;;  %v3922_v26 = vld [vmem:[%s6757_s6 + $0x10] sm:$0xff] }
 0x38f   :  { %5479 = vmatpush3.msra.mxu0 %v3738_v42  ;;  %5453 = vmatprep.subr.mxu1 %v5633_v25  ;;  %v3921_v42 = vld [vmem:[%s6757_s6 + $0x8] sm:$0xff] }
 0x390   :  { %5480 = vmatprep.subr.mxu0 %v5633_v25  ;;  %5454 = vmatpush3.msra.mxu1 %v3649_v52  ;;  %v3920_v52 = vld [vmem:[%s6757_s6] sm:$0xff] }
 0x391   :  { %5481 = vmatpush3.msra.mxu0 %v3737_v0  ;;  %5455 = vmatprep.subr.mxu1 %v5633_v25 }
 0x392   :  { %5482 = vmatprep.subr.mxu0 %v5633_v25  ;;  %5456 = vmatpush3.msra.mxu1 %v3648_v2 }
 0x393   :  { %5483 = vmatpush3.msra.mxu0 %v3736_v17  ;;  %5457 = vmatprep.subr.mxu1 %v5633_v25 }
 0x394   :  { %5484 = vmatprep.subr.mxu0 %v5633_v25  ;;  %5458 = vmatpush3.msra.mxu1 %v3647_v3 }
 0x395   :  { %5485 = vmatpush3.msra.mxu0 %v3735_v5  ;;  %5459 = vmatprep.subr.mxu1 %v5633_v25 }
 0x396   :  { %5486 = vmatprep.subr.mxu0 %v5633_v25  ;;  %5460 = vmatpush3.msra.mxu1 %v3646_v45 }
 0x397   :  { %5487 = vmatpush3.msra.mxu0 %v3734_v24  ;;  %5488 = vmatprep.mubr.msk.f32.mxu0 %vm5634_vm5, %v5633_v25 }
 0x398   :  { %5461 = vmatprep.subr.mxu1 %v5633_v25  ;;  %5489 = vmatmul.mubr.msk.f32.vlgmr.msra.gmra.mxu0 %vm2069_vm6, %v3745_v7  ;;  %v2393_v29 = vpop.f32.mrf.mxu0 }
 0x399   :  { %5462 = vmatpush3.msra.mxu1 %v3645_v27  ;;  %5463 = vmatprep.mubr.msk.f32.mxu1 %vm5634_vm5, %v5633_v25 }
 0x39a   :  { %5464 = vmatmul.mubr.msk.f32.vlgmr.msra.gmra.mxu1 %vm2069_vm6, %v3656_v32  ;;  %5491 = vmatprep.subr.mxu1 %v5633_v25  ;;  %v5090_v34 = vpop.f32.mrf.mxu0 }
 0x39b   :  { %5492 = vmatpush3.msk.msra.mxu1 %vm1915_vm4, %v3833_v33  ;;  %v2304_v38 = vpop.f32.mrf.mxu1  ;;  %5513 = vmatprep.mubr.msk.f32.mxu1 %vm5634_vm5, %v5633_v25 }
 0x39c   :  { %5493 = vmatprep.subr.mxu1 %v5633_v25  ;;  %v2308_v56 = vadd.f32 %v2304_v38, %v6628_v13  ;;  %5516 = vmatprep.subr.mxu0 %v5633_v25 }
 0x39d   :  { %5494 = vmatpush3.msra.mxu1 %v3832_v35  ;;  %v5065_v12 = vpop.f32.mrf.mxu1  ;;  %5548 = vmatprep.mubr.msk.f32.mxu0 %vm5634_vm5, %v5633_v25 }
 0x39e   :  { %5495 = vmatprep.subr.mxu1 %v5633_v25  ;;  %v2397_v8 = vadd.f32 %v2393_v29, %v2308_v56  ;;  %5517 = vmatpush3.msra.mxu0 %v3935_v14 }
 0x39f   :  { %5496 = vmatpush3.msra.mxu1 %v3831_v51  ;;  %5518 = vmatprep.subr.mxu0 %v5633_v25 }
 0x3a0   :  { %5497 = vmatprep.subr.mxu1 %v5633_v25  ;;  %5519 = vmatpush3.msra.mxu0 %v3934_v23 }
 0x3a1   :  { %5498 = vmatpush3.msra.mxu1 %v3830_v6  ;;  %5520 = vmatprep.subr.mxu0 %v5633_v25 }
 0x3a2   :  { %5499 = vmatprep.subr.mxu1 %v5633_v25  ;;  %5521 = vmatpush3.msra.mxu0 %v3933_v15 }
 0x3a3   :  { %5500 = vmatpush3.msra.mxu1 %v3829_v36  ;;  %5522 = vmatprep.subr.mxu0 %v5633_v25 }
 0x3a4   :  { %5501 = vmatprep.subr.mxu1 %v5633_v25  ;;  %5523 = vmatpush3.msra.mxu0 %v3932_v46 }
 0x3a5   :  { %5502 = vmatpush3.msra.mxu1 %v3828_v58  ;;  %5524 = vmatprep.subr.mxu0 %v5633_v25 }
 0x3a6   :  { %5503 = vmatprep.subr.mxu1 %v5633_v25  ;;  %5525 = vmatpush3.msra.mxu0 %v3931_v50 }
 0x3a7   :  { %5504 = vmatpush3.msra.mxu1 %v3827_v37  ;;  %5526 = vmatprep.subr.mxu0 %v5633_v25 }
 0x3a8   :  { %5505 = vmatprep.subr.mxu1 %v5633_v25  ;;  %5527 = vmatpush3.msra.mxu0 %v3930_v30 }
 0x3a9   :  { %5506 = vmatpush3.msra.mxu1 %v3826_v39  ;;  %5528 = vmatprep.subr.mxu0 %v5633_v25 }
 0x3aa   :  { %5507 = vmatprep.subr.mxu1 %v5633_v25  ;;  %5529 = vmatpush3.msra.mxu0 %v3929_v49 }
 0x3ab   :  { %5508 = vmatpush3.msra.mxu1 %v3825_v40  ;;  %5530 = vmatprep.subr.mxu0 %v5633_v25 }
 0x3ac   :  { %5509 = vmatprep.subr.mxu1 %v5633_v25  ;;  %5531 = vmatpush3.msra.mxu0 %v3928_v22 }
 0x3ad   :  { %5510 = vmatpush3.msra.mxu1 %v3824_v41  ;;  %5532 = vmatprep.subr.mxu0 %v5633_v25 }
 0x3ae   :  { %5511 = vmatprep.subr.mxu1 %v5633_v25  ;;  %5533 = vmatpush3.msra.mxu0 %v3927_v11 }
 0x3af   :  { %5512 = vmatpush3.msra.mxu1 %v3823_v62  ;;  %5534 = vmatprep.subr.mxu0 %v5633_v25 }
 0x3b0   :  { %5514 = vmatmul.mubr.msk.f32.vlgmr.msra.gmra.mxu1 %vm2069_vm6, %v2043_v16  ;;  %v2571_v4 = vpop.f32.mrf.mxu0  ;;  %5535 = vmatpush3.msra.mxu0 %v3926_v54 }
 0x3b1   :  { %5536 = vmatprep.subr.mxu0 %v5633_v25 }
 0x3b2   :  { %v5140_v53 = vpop.f32.mrf.mxu0  ;;  %5537 = vmatpush3.msra.mxu0 %v3925_v31 }
 0x3b3   :  { %v2482_v18 = vpop.f32.mrf.mxu1  ;;  %5538 = vmatprep.subr.mxu0 %v5633_v25  ;;  %v4210_v53 = vld [vmem:[%s6756_s5] ss:$0 sm:$0xff]  ;;  %s5636_s5 = smov [#allocation7]  }
 0x3b4   :  { %v2486_v44 = vadd.f32 %v2482_v18, %v2397_v8  ;;  %5539 = vmatpush3.msra.mxu0 %v3924_v20 }
 0x3b5   :  { %v5115_v55 = vpop.f32.mrf.mxu1  ;;  %5540 = vmatprep.subr.mxu0 %v5633_v25 }
 0x3b6   :  { %v2575_v57 = vadd.f32 %v2571_v4, %v2486_v44  ;;  %5541 = vmatpush3.msra.mxu0 %v3923_v1 }
 0x3b7   :  { %5542 = vmatprep.subr.mxu0 %v5633_v25 }
 0x3b8   :  { %5543 = vmatpush3.msra.mxu0 %v3922_v26 }
 0x3b9   :  { %5544 = vmatprep.subr.mxu0 %v5633_v25 }
 0x3ba   :  { %5545 = vmatpush3.msra.mxu0 %v3921_v42 }
 0x3bb   :  { %5546 = vmatprep.subr.mxu0 %v5633_v25 }
 0x3bc   :  { %5547 = vmatpush3.msra.mxu0 %v3920_v52 }
 0x3c8   :  { %v2749_v43 = vpop.f32.mrf.mxu0 }
 0x3ca   :  { %v5190_v60 = vpop.f32.mrf.mxu0 }
 0x3cb   :  { %v2660_v28 = vpop.f32.mrf.mxu1 }
 0x3cc   :  { %v2664_v19 = vadd.f32 %v2660_v28, %v2575_v57 }
 0x3cd   :  { %v5165_v21 = vpop.f32.mrf.mxu1 }
 0x3ce   :  { %v2753_v63 = vadd.f32 %v2749_v43, %v2664_v19  ;;  %v4211_v43 = vld [vmem:[%s6758_s7] ss:$0 sm:$0xff]  ;;  %s4033_s7 = sshll.u32 %s5636_s5, 4  ;;  %s4034_s7 = int_to_ptr.vmem [resolvable:$true] %s4033_s7 }
 0x3cf   :  { %s5603_s1 = scalar_lea.vmem %s4034_s7, 32  ;;  %p5608_p11 = scmp.lt.s32.totalorder %s4034_s7, %s4034_s7 }
 0x3d0   :  { %p5604_p10 = scmp.ne.s32.totalorder %s4034_s7, %s5603_s1  ;;  %p5609_p12 = scmp.lt.s32.totalorder %s5603_s1, %s5603_s1 }
 0x3d2   :  { %p5610_p13 = por %p5609_p12, %p5608_p11 }
 0x3d4   :  { %p5611_p0 = pnand %p5610_p13, %p5604_p10 }
 0x3e0   :  { %v2927_v61 = vpop.f32.mrf.mxu0 }
 0x3e2   :  { %v5240_v9 = vpop.f32.mrf.mxu0 }
 0x3e3   :  { %v2838_v10 = vpop.f32.mrf.mxu1 }
 0x3e4   :  { %v2842_v47 = vadd.f32 %v2838_v10, %v2753_v63 }
 0x3e5   :  { %v5215_v13 = vpop.f32.mrf.mxu1 }
 0x3e6   :  { %v2931_v48 = vadd.f32 %v2927_v61, %v2842_v47 }
 0x3f8   :  { %v3105_v0 = vpop.f32.mrf.mxu0 }
 0x3fa   :  { %v5290_v2 = vpop.f32.mrf.mxu0 }
 0x3fb   :  { %v3016_v17 = vpop.f32.mrf.mxu1 }
 0x3fc   :  { %v3020_v3 = vadd.f32 %v3016_v17, %v2931_v48 }
 0x3fd   :  { %v5265_v5 = vpop.f32.mrf.mxu1 }
 0x3fe   :  { %v3109_v45 = vadd.f32 %v3105_v0, %v3020_v3 }
 0x410   :  { %v3283_v24 = vpop.f32.mrf.mxu0 }
 0x412   :  { %v5340_v7 = vpop.f32.mrf.mxu0 }
 0x413   :  { %v3194_v27 = vpop.f32.mrf.mxu1 }
 0x414   :  { %v3198_v32 = vadd.f32 %v3194_v27, %v3109_v45 }
 0x415   :  { %v5315_v33 = vpop.f32.mrf.mxu1 }
 0x416   :  { %v3287_v29 = vadd.f32 %v3283_v24, %v3198_v32 }
 0x428   :  { %v3461_v35 = vpop.f32.mrf.mxu0 }
 0x42a   :  { %v5390_v34 = vpop.f32.mrf.mxu0 }
 0x42b   :  { %v3372_v25 = vpop.f32.mrf.mxu1 }
 0x42c   :  { %v3376_v39 = vadd.f32 %v3372_v25, %v3287_v29 }
 0x42d   :  { %v5365_v38 = vpop.f32.mrf.mxu1 }
 0x42e   :  { %v3465_v40 = vadd.f32 %v3461_v35, %v3376_v39 }
 0x440   :  { %v3639_v51 = vpop.f32.mrf.mxu0 }
 0x442   :  { %v5440_v56 = vpop.f32.mrf.mxu0 }
 0x443   :  { %v3550_v12 = vpop.f32.mrf.mxu1 }
 0x444   :  { %v3554_v41 = vadd.f32 %v3550_v12, %v3465_v40 }
 0x445   :  { %v5415_v6 = vpop.f32.mrf.mxu1 }
 0x446   :  { %v3643_v59 = vadd.f32 %v3639_v51, %v3554_v41 }
 0x458   :  { %v3817_v8 = vpop.f32.mrf.mxu0 }
 0x45a   :  { %v3728_v36 = vpop.f32.mrf.mxu1  ;;  %v5490_v58 = vpop.f32.mrf.mxu0 }
 0x45b   :  { %v3732_v62 = vadd.f32 %v3728_v36, %v3643_v59 }
 0x45c   :  { %v5465_v37 = vpop.f32.mrf.mxu1 }
 0x45d   :  { %v3821_v16 = vadd.f32 %v3817_v8, %v3732_v62 }
 0x470   :  { %v3906_v4 = vpop.f32.mrf.mxu1 }
 0x471   :  { %v3910_v18 = vadd.f32 %v3906_v4, %v3821_v16 }
 0x472   :  { %v5515_v44 = vpop.f32.mrf.mxu1 }
 0x473   :  { %v3918_v55 = vadd.f32 %v4210_v53, %v3910_v18 }
 0x475   :  { %v3919_v57 = vmax.f32 %v3918_v55, 0.0 }
 0x477   :  { %5549 = vmatmul.mubr.f32.vlgmr.msra.gmra.mxu0 %v3919_v57 }
 0x537   :  { %v4009_v60 = vpop.f32.mrf.mxu0 }
 0x538   :  { %v4010_v28 = vadd.f32 %v4211_v43, %v4009_v60 }
 0x539   :  { %v5550_v19 = vpop.f32.mrf.mxu0 }
 0x53a   :  { %v4014_v21 = vsel %vm4013_vm7, %v4010_v28, -inf }
 0x53b   :  { %4015 = vmax.xlane.f32.xlu0 %v4014_v21 }
 0x5c4   :  { %v4016_v63 = vpop.xlane.xlu0 %4015 }
 0x5c5   :  { %v4017_v14 = vsub.f32 %v4010_v28, %v4016_v63 }
 0x5c7   :  { %v4018_v23 = vmul.f32 1.442695, %v4017_v14 }
 0x5c9   :  { %5559 = vpow2.f32 %v4018_v23 }
 0x5d6   :  { %v5560_v15 = vpop.eup %5559 }
 0x5d7   :  { %v4020_v46 = vsel %vm4013_vm7, %v5560_v15, 0.0 }
 0x5d8   :  { %4021 = vadd.xlane.f32.xlu1 %v4020_v46 }
 0x661   :  { %v4022_v50 = vpop.xlane.xlu1 %4021 }
 0x662   :  { %5561 = vlog2.f32 %v4022_v50 }
 0x66f   :  { %v5562_v30 = vpop.eup %5561 }
 0x670   :  { %v4024_v61 = vmul.f32 0.6931472, %v5562_v30 }
 0x672   :  { %v4025_v49 = vsub.f32 %v4017_v14, %v4024_v61 }
 0x674   :  { %4026 = vst.msk [vmem:[#allocation7] sm:$0x3] %vm4013_vm7, %v4025_v49 }
 0x675   :  { %5614 = shalt.err (!%p5611_p0)
}
 0x676   :  { %4036 = dma.vmem_to_hbm [thread:$0]  %s4034_s7, 32, %s6759_s8, [#allocation4]  }
 0x677   :  { %5627 = dma.done.wait [#allocation4], 32  }
 0x678   :  { %5628 = vsyncadd [#allocation4], 4294967264 }
 0x679   :  { %4040 = vsyncpa [#allocation3], 1 }
 0x67a   :  { %4041 = vsyncpa [#allocation6], 1 }
 0x67b   :  { %4042 = vsyncpa [#allocation4], 1 }

</bundles_post_ra>
